<compile_context>
chip_gen: v7x
topology: tpu7x:2x2x1
jax: 0.10.0
libtpu: 0.0.40
codegen_flags: <defaults>
</compile_context>

<pallas_src>
import functools

import jax
import jax.numpy as jnp
from jax.experimental import pallas as pl
from jax.experimental.pallas import tpu as pltpu

KH, KW = 3, 3        # conv kernel (stride 1, pad 1 -> "SAME")
LANES = 128          # TPU lane width
SUBLANES = 8         # TPU sublane count


def _round_up(x, m):
    return ((x + m - 1) // m) * m


def _pad_to(a, axis, size):
    pad = [(0, 0)] * a.ndim
    pad[axis] = (0, size - a.shape[axis])
    return jnp.pad(a, pad)


def _vmem_bytes(tile_rows, W, C, F_pad):
    """Rough per-grid-step VMEM footprint (bytes), incl. double buffering."""
    sub = lambda n: _round_up(max(n, 1), SUBLANES)
    n_px = tile_rows * W
    # Input band block: (tile_rows+2, W+2, C) bf16; C sits on lanes -> padded to 128 lanes.
    x_block = (tile_rows + 2) * sub(W + 2) * LANES * 2
    weights = KH * KW * sub(C) * F_pad * 2 + sub(1) * F_pad * 4   # conv w + bias (resident)
    out_blk = sub(1) * F_pad * 4
    pool_scr = SUBLANES * F_pad * 4
    # f32 pre-activation/activation temporaries + one bf16 tap operand (C -> 128 lanes).
    temps = 2 * n_px * F_pad * 4 + sub(n_px) * LANES * 2
    return 2 * x_block + 2 * weights + 2 * out_blk + pool_scr + temps


def _choose_tile_rows(H, W, C, F_pad, *, budget_bytes=12 << 20, max_pixels=4096):
    """Largest divisor of H whose per-step footprint fits the VMEM budget / pixel cap.

    Using a divisor of H (rather than padding + masking a partial last band) keeps the
    kernel mask-free and guarantees we never fall back to a whole-image block.
    """
    best = 1
    for d in range(1, H + 1):
        if H % d:
            continue
        if d * W <= max_pixels and _vmem_bytes(d, W, C, F_pad) <= budget_bytes:
            best = d
    return best


def _conv_pool_kernel(x_ref, w_ref, b_ref, pool_ref, acc_ref, *,
                      tile_rows, w_out, aligned_px, inv_px):
    """One (sample, row-band) grid step.

    x_ref    : (tile_rows+2, W+2, C)   bf16  halo'd NHWC input band (zero spatial border)
    w_ref    : (KH*KW, C, F_pad)       bf16  conv weight, one (C, F_pad) slab per tap
    b_ref    : (1, F_pad)              f32   conv bias (zero-padded)
    pool_ref : (1, F_pad)              f32   pooled features (written at the last band)
    acc_ref  : (8|1, F_pad)            f32   running pooled partial sums (VMEM scratch)
    """
    band = pl.program_id(1)
    f_pad = w_ref.shape[-1]
    n_px = tile_rows * w_out

    @pl.when(band == 0)
    def _init():
        acc_ref[...] = jnp.zeros_like(acc_ref)

    # 3x3 conv over this band as nine K=C MXU matmuls with f32 accumulation.  The halo rows
    # live in the band block, so the tap slices are plain static in-VMEM slices (no im2col
    # materialization and no overlapping DMA windows).
    pre = None
    for tap in range(KH * KW):
        kh, kw = divmod(tap, KW)
        lhs = x_ref[pl.ds(kh, tile_rows), pl.ds(kw, w_out), :].reshape(n_px, -1)
        part = jnp.dot(lhs, w_ref[tap], preferred_element_type=jnp.float32)
        pre = part if pre is None else pre + part
    act = jnp.maximum(pre + b_ref[...], 0.0)                 # f32 bias + ReLU (v5e-safe)

    # Fused global-average-pool: keep 8 sublane-parallel partial sums (pure VPU adds);
    # the single 8->1 cross-sublane reduce happens once in the finalize below.
    if aligned_px:
        acc_ref[...] += act.reshape(-1, SUBLANES, f_pad).sum(axis=0)
    else:
        acc_ref[...] += jnp.sum(act, axis=0, keepdims=True)

    @pl.when(band == pl.num_programs(1) - 1)
    def _finalize():
        pool_ref[...] = jnp.sum(acc_ref[...], axis=0, keepdims=True) * inv_px


def _classifier_kernel(pooled_ref, wf_ref, bf_ref, out_ref):
    """Batched classifier: (N, F_pad) @ (F_pad, NC_pad) + bias, single block."""
    logits = jnp.dot(pooled_ref[...].astype(jnp.bfloat16), wf_ref[...],
                     preferred_element_type=jnp.float32)
    out_ref[...] = logits + bf_ref[...]


def base_module_forward(x_nchw, conv_w, conv_b, fc_w, fc_b):
    """Forward pass. x_nchw: [N, C, H, W] float32 (PyTorch layout)."""
    N, C, H, W = x_nchw.shape
    F = conv_w.shape[-1]
    num_classes = fc_w.shape[-1]
    F_pad = _round_up(F, LANES)
    NC_pad = _round_up(num_classes, LANES)

    tile_rows = _choose_tile_rows(H, W, C, F_pad)
    n_bands = H // tile_rows
    n_px = tile_rows * W
    aligned = (n_px % SUBLANES == 0)
    acc_rows = SUBLANES if aligned else 1

    # ---- wrapper-side layout plumbing (one fused XLA pass, no im2col expansion) ----------
    # NCHW f32 -> NHWC bf16 with a 1-pixel zero border, then halo'd row bands:
    # band b holds padded rows [b*tile_rows, b*tile_rows + tile_rows + 2).
    x_pad = jnp.pad(jnp.transpose(x_nchw, (0, 2, 3, 1)),
                    ((0, 0), (1, 1), (1, 1), (0, 0))).astype(jnp.bfloat16)
    x_bands = jnp.stack(
        [x_pad[:, b * tile_rows: b * tile_rows + tile_rows + 2] for b in range(n_bands)],
        axis=1)                                    # (N, n_bands, tile_rows+2, W+2, C)

    # Lane-dense, zero-padded weights/biases (padding does not change the logits).
    wc = _pad_to(conv_w.reshape(KH * KW, C, F), 2, F_pad).astype(jnp.bfloat16)
    bc = _pad_to(conv_b.reshape(1, F), 1, F_pad).astype(jnp.float32)
    wf = _pad_to(_pad_to(fc_w, 0, F_pad), 1, NC_pad).astype(jnp.bfloat16)
    bf = _pad_to(fc_b.reshape(1, num_classes), 1, NC_pad).astype(jnp.float32)

    kernel = functools.partial(_conv_pool_kernel, tile_rows=tile_rows, w_out=W,
                               aligned_px=aligned, inv_px=1.0 / (H * W))

    est = _vmem_bytes(tile_rows, W, C, F_pad)
    vmem_limit = min(max(2 * est, est + (8 << 20)), 32 << 20)   # from buffer math + headroom
    flops = 2 * N * H * W * KH * KW * C * F_pad
    bytes_accessed = x_bands.size * 2 + wc.size * 2 + bc.size * 4 + N * F_pad * 4

    pooled = pl.pallas_call(
        kernel,
        out_shape=jax.ShapeDtypeStruct((N, 1, F_pad), jnp.float32),
        grid=(N, n_bands),
        in_specs=[
            # Halo'd input row band; leading (sample, band) dims squeezed away.
            pl.BlockSpec((None, None, tile_rows + 2, W + 2, C),
                         lambda n, b: (n, b, 0, 0, 0)),
            pl.BlockSpec((KH * KW, C, F_pad), lambda n, b: (0, 0, 0)),  # conv w (resident)
            pl.BlockSpec((1, F_pad), lambda n, b: (0, 0)),              # conv bias (resident)
        ],
        out_specs=pl.BlockSpec((None, 1, F_pad), lambda n, b: (n, 0, 0)),
        scratch_shapes=[pltpu.VMEM((acc_rows, F_pad), jnp.float32)],    # pooled-sum accum
        compiler_params=pltpu.CompilerParams(
            # NOTE: the band axis carries the pooled-sum accumulator and must remain the
            # innermost "arbitrary" axis; only the batch axis is megacore-"parallel".
            dimension_semantics=("parallel", "arbitrary"),
            vmem_limit_bytes=vmem_limit),
        cost_estimate=pl.CostEstimate(flops=flops, transcendentals=0,
                                      bytes_accessed=bytes_accessed),
    )(x_bands, wc, bc)

    # Classifier as one batched (N, F_pad) @ (F_pad, NC_pad) Pallas call (whole-array blocks).
    logits = pl.pallas_call(
        _classifier_kernel,
        out_shape=jax.ShapeDtypeStruct((N, NC_pad), jnp.float32),
    )(pooled.reshape(N, F_pad), wf, bf)

    return logits[:, :num_classes]


def _reference_forward(x_nchw, conv_w, conv_b, fc_w, fc_b):
    """Pure-JAX reference (operands rounded to bf16 to match the kernel's MXU path)."""
    f32 = jnp.float32
    xb = x_nchw.astype(jnp.bfloat16).astype(f32)
    wb = conv_w.astype(jnp.bfloat16).astype(f32)
    y = jax.lax.conv_general_dilated(
        jnp.transpose(xb, (0, 2, 3, 1)), wb, window_strides=(1, 1), padding="SAME",
        dimension_numbers=("NHWC", "HWIO", "NHWC"))
    y = jnp.maximum(y + conv_b, 0.0)
    pooled = jnp.mean(y, axis=(1, 2))
    pooled_b = pooled.astype(jnp.bfloat16).astype(f32)
    wfb = fc_w.astype(jnp.bfloat16).astype(f32)
    return pooled_b @ wfb + fc_b


if __name__ == "__main__":
    # Small shapes consistent with an image-classification forward pass.
    N, C, H, W = 2, 4, 16, 16
    F, NUM_CLASSES = 32, 10

    key = jax.random.PRNGKey(0)
    kx, kw1, kb1, kw2, kb2 = jax.random.split(key, 5)

    x = jax.random.normal(kx, (N, C, H, W), dtype=jnp.float32)
    conv_w = jax.random.normal(kw1, (KH, KW, C, F), dtype=jnp.float32) * 0.1
    conv_b = jax.random.normal(kb1, (F,), dtype=jnp.float32) * 0.1
    fc_w = jax.random.normal(kw2, (F, NUM_CLASSES), dtype=jnp.float32) * 0.1
    fc_b = jax.random.normal(kb2, (NUM_CLASSES,), dtype=jnp.float32) * 0.1

    logits = jax.block_until_ready(
        base_module_forward(x, conv_w, conv_b, fc_w, fc_b))

    ref = _reference_forward(x, conv_w, conv_b, fc_w, fc_b)
    assert logits.shape == (N, NUM_CLASSES)
    assert jnp.allclose(logits, ref, atol=2e-3, rtol=2e-3), "mismatch vs reference"

    print("KERNEL_OK")
</pallas_src>

<mosaic_0001>
module attributes {stable_mosaic.version = 11 : i64} {
  func.func @_conv_pool_kernel(%arg0: i32, %arg1: i32, %arg2: memref<1x1x18x18x4xbf16, #tpu.memory_space<vmem>>, %arg3: memref<9x4x128xbf16, #tpu.memory_space<vmem>>, %arg4: memref<1x128xf32, #tpu.memory_space<vmem>>, %arg5: memref<1x1x128xf32, #tpu.memory_space<vmem>>, %arg6: memref<8x128xf32, #tpu.memory_space<vmem>>) attributes {dimension_semantics = [#tpu.dimension_semantics<parallel>, #tpu.dimension_semantics<arbitrary>], iteration_bounds = array<i64: 2, 1>, scalar_prefetch = 0 : i64, scratch_operands = 1 : i64, tpu.core_type = #tpu.core_type<tc>, window_params = [{transform_indices = @transform_0, window_bounds = array<i64: 1, 1, 18, 18, 4>}, {pipeline_mode = #tpu.pipeline_mode<synchronous>, transform_indices = @transform_1, window_bounds = array<i64: 9, 4, 128>}, {pipeline_mode = #tpu.pipeline_mode<synchronous>, transform_indices = @transform_2, window_bounds = array<i64: 1, 128>}, {transform_indices = @transform_3, window_bounds = array<i64: 1, 1, 128>}]} {
    %c0_i32 = arith.constant 0 : i32
    %0 = arith.cmpi eq, %arg1, %c0_i32 : i32
    %1 = arith.extui %0 : i1 to i32
    %c0_i32_0 = arith.constant 0 : i32
    %2 = arith.cmpi ne, %1, %c0_i32_0 : i32
    scf.if %2 {
      %cst_82 = arith.constant 0.000000e+00 : f32
      %78 = vector.broadcast %cst_82 : f32 to vector<8x128xf32>
      %c0_83 = arith.constant 0 : index
      %c0_84 = arith.constant 0 : index
      %79 = vector.load %arg6[%c0_83, %c0_84] : memref<8x128xf32, #tpu.memory_space<vmem>>, vector<8x128xf32>
      tpu.vector_store %arg6[%c0_83, %c0_84], %78 {strides = array<i32>} : memref<8x128xf32, #tpu.memory_space<vmem>>, vector<8x128xf32>,
    } else {
    }
    %c0 = arith.constant 0 : index
    %c0_1 = arith.constant 0 : index
    %c0_2 = arith.constant 0 : index
    %c0_3 = arith.constant 0 : index
    %c0_4 = arith.constant 0 : index
    %3 = vector.load %arg2[%c0, %c0_1, %c0_2, %c0_3, %c0_4] : memref<1x1x18x18x4xbf16, #tpu.memory_space<vmem>>, vector<1x1x16x16x4xbf16>
    %4 = vector.shape_cast %3 : vector<1x1x16x16x4xbf16> to vector<16x16x4xbf16>
    %5 = vector.shape_cast %4 : vector<16x16x4xbf16> to vector<256x4xbf16>
    %c0_5 = arith.constant 0 : index
    %c0_6 = arith.constant 0 : index
    %c0_7 = arith.constant 0 : index
    %6 = vector.load %arg3[%c0_5, %c0_6, %c0_7] : memref<9x4x128xbf16, #tpu.memory_space<vmem>>, vector<1x4x128xbf16>
    %7 = vector.shape_cast %6 : vector<1x4x128xbf16> to vector<4x128xbf16>
    %cst = arith.constant dense<0.000000e+00> : vector<256x128xf32>
    %8 = tpu.matmul %5, %7, %cst {dimension_numbers = #tpu.dot_dimension_numbers<[1], [0], [0], [1], [0, 0, 1, 1], [], []>} : vector<256x4xbf16>, vector<4x128xbf16>, vector<256x128xf32> -> vector<256x128xf32>
    %c0_8 = arith.constant 0 : index
    %c0_9 = arith.constant 0 : index
    %c0_10 = arith.constant 0 : index
    %c1 = arith.constant 1 : index
    %c0_11 = arith.constant 0 : index
    %9 = vector.load %arg2[%c0_8, %c0_9, %c0_10, %c1, %c0_11] : memref<1x1x18x18x4xbf16, #tpu.memory_space<vmem>>, vector<1x1x16x16x4xbf16>
    %10 = vector.shape_cast %9 : vector<1x1x16x16x4xbf16> to vector<16x16x4xbf16>
    %11 = vector.shape_cast %10 : vector<16x16x4xbf16> to vector<256x4xbf16>
    %c1_12 = arith.constant 1 : index
    %c0_13 = arith.constant 0 : index
    %c0_14 = arith.constant 0 : index
    %12 = vector.load %arg3[%c1_12, %c0_13, %c0_14] : memref<9x4x128xbf16, #tpu.memory_space<vmem>>, vector<1x4x128xbf16>
    %13 = vector.shape_cast %12 : vector<1x4x128xbf16> to vector<4x128xbf16>
    %cst_15 = arith.constant dense<0.000000e+00> : vector<256x128xf32>
    %14 = tpu.matmul %11, %13, %cst_15 {dimension_numbers = #tpu.dot_dimension_numbers<[1], [0], [0], [1], [0, 0, 1, 1], [], []>} : vector<256x4xbf16>, vector<4x128xbf16>, vector<256x128xf32> -> vector<256x128xf32>
    %15 = arith.addf %8, %14 : vector<256x128xf32>
    %c0_16 = arith.constant 0 : index
    %c0_17 = arith.constant 0 : index
    %c0_18 = arith.constant 0 : index
    %c2 = arith.constant 2 : index
    %c0_19 = arith.constant 0 : index
    %16 = vector.load %arg2[%c0_16, %c0_17, %c0_18, %c2, %c0_19] : memref<1x1x18x18x4xbf16, #tpu.memory_space<vmem>>, vector<1x1x16x16x4xbf16>
    %17 = vector.shape_cast %16 : vector<1x1x16x16x4xbf16> to vector<16x16x4xbf16>
    %18 = vector.shape_cast %17 : vector<16x16x4xbf16> to vector<256x4xbf16>
    %c2_20 = arith.constant 2 : index
    %c0_21 = arith.constant 0 : index
    %c0_22 = arith.constant 0 : index
    %19 = vector.load %arg3[%c2_20, %c0_21, %c0_22] : memref<9x4x128xbf16, #tpu.memory_space<vmem>>, vector<1x4x128xbf16>
    %20 = vector.shape_cast %19 : vector<1x4x128xbf16> to vector<4x128xbf16>
    %cst_23 = arith.constant dense<0.000000e+00> : vector<256x128xf32>
    %21 = tpu.matmul %18, %20, %cst_23 {dimension_numbers = #tpu.dot_dimension_numbers<[1], [0], [0], [1], [0, 0, 1, 1], [], []>} : vector<256x4xbf16>, vector<4x128xbf16>, vector<256x128xf32> -> vector<256x128xf32>
    %22 = arith.addf %15, %21 : vector<256x128xf32>
    %c0_24 = arith.constant 0 : index
    %c0_25 = arith.constant 0 : index
    %c1_26 = arith.constant 1 : index
    %c0_27 = arith.constant 0 : index
    %c0_28 = arith.constant 0 : index
    %23 = vector.load %arg2[%c0_24, %c0_25, %c1_26, %c0_27, %c0_28] : memref<1x1x18x18x4xbf16, #tpu.memory_space<vmem>>, vector<1x1x16x16x4xbf16>
    %24 = vector.shape_cast %23 : vector<1x1x16x16x4xbf16> to vector<16x16x4xbf16>
    %25 = vector.shape_cast %24 : vector<16x16x4xbf16> to vector<256x4xbf16>
    %c3 = arith.constant 3 : index
    %c0_29 = arith.constant 0 : index
    %c0_30 = arith.constant 0 : index
    %26 = vector.load %arg3[%c3, %c0_29, %c0_30] : memref<9x4x128xbf16, #tpu.memory_space<vmem>>, vector<1x4x128xbf16>
    %27 = vector.shape_cast %26 : vector<1x4x128xbf16> to vector<4x128xbf16>
    %cst_31 = arith.constant dense<0.000000e+00> : vector<256x128xf32>
    %28 = tpu.matmul %25, %27, %cst_31 {dimension_numbers = #tpu.dot_dimension_numbers<[1], [0], [0], [1], [0, 0, 1, 1], [], []>} : vector<256x4xbf16>, vector<4x128xbf16>, vector<256x128xf32> -> vector<256x128xf32>
    %29 = arith.addf %22, %28 : vector<256x128xf32>
    %c0_32 = arith.constant 0 : index
    %c0_33 = arith.constant 0 : index
    %c1_34 = arith.constant 1 : index
    %c1_35 = arith.constant 1 : index
    %c0_36 = arith.constant 0 : index
    %30 = vector.load %arg2[%c0_32, %c0_33, %c1_34, %c1_35, %c0_36] : memref<1x1x18x18x4xbf16, #tpu.memory_space<vmem>>, vector<1x1x16x16x4xbf16>
    %31 = vector.shape_cast %30 : vector<1x1x16x16x4xbf16> to vector<16x16x4xbf16>
    %32 = vector.shape_cast %31 : vector<16x16x4xbf16> to vector<256x4xbf16>
    %c4 = arith.constant 4 : index
    %c0_37 = arith.constant 0 : index
    %c0_38 = arith.constant 0 : index
    %33 = vector.load %arg3[%c4, %c0_37, %c0_38] : memref<9x4x128xbf16, #tpu.memory_space<vmem>>, vector<1x4x128xbf16>
    %34 = vector.shape_cast %33 : vector<1x4x128xbf16> to vector<4x128xbf16>
    %cst_39 = arith.constant dense<0.000000e+00> : vector<256x128xf32>
    %35 = tpu.matmul %32, %34, %cst_39 {dimension_numbers = #tpu.dot_dimension_numbers<[1], [0], [0], [1], [0, 0, 1, 1], [], []>} : vector<256x4xbf16>, vector<4x128xbf16>, vector<256x128xf32> -> vector<256x128xf32>
    %36 = arith.addf %29, %35 : vector<256x128xf32>
    %c0_40 = arith.constant 0 : index
    %c0_41 = arith.constant 0 : index
    %c1_42 = arith.constant 1 : index
    %c2_43 = arith.constant 2 : index
    %c0_44 = arith.constant 0 : index
    %37 = vector.load %arg2[%c0_40, %c0_41, %c1_42, %c2_43, %c0_44] : memref<1x1x18x18x4xbf16, #tpu.memory_space<vmem>>, vector<1x1x16x16x4xbf16>
    %38 = vector.shape_cast %37 : vector<1x1x16x16x4xbf16> to vector<16x16x4xbf16>
    %39 = vector.shape_cast %38 : vector<16x16x4xbf16> to vector<256x4xbf16>
    %c5 = arith.constant 5 : index
    %c0_45 = arith.constant 0 : index
    %c0_46 = arith.constant 0 : index
    %40 = vector.load %arg3[%c5, %c0_45, %c0_46] : memref<9x4x128xbf16, #tpu.memory_space<vmem>>, vector<1x4x128xbf16>
    %41 = vector.shape_cast %40 : vector<1x4x128xbf16> to vector<4x128xbf16>
    %cst_47 = arith.constant dense<0.000000e+00> : vector<256x128xf32>
    %42 = tpu.matmul %39, %41, %cst_47 {dimension_numbers = #tpu.dot_dimension_numbers<[1], [0], [0], [1], [0, 0, 1, 1], [], []>} : vector<256x4xbf16>, vector<4x128xbf16>, vector<256x128xf32> -> vector<256x128xf32>
    %43 = arith.addf %36, %42 : vector<256x128xf32>
    %c0_48 = arith.constant 0 : index
    %c0_49 = arith.constant 0 : index
    %c2_50 = arith.constant 2 : index
    %c0_51 = arith.constant 0 : index
    %c0_52 = arith.constant 0 : index
    %44 = vector.load %arg2[%c0_48, %c0_49, %c2_50, %c0_51, %c0_52] : memref<1x1x18x18x4xbf16, #tpu.memory_space<vmem>>, vector<1x1x16x16x4xbf16>
    %45 = vector.shape_cast %44 : vector<1x1x16x16x4xbf16> to vector<16x16x4xbf16>
    %46 = vector.shape_cast %45 : vector<16x16x4xbf16> to vector<256x4xbf16>
    %c6 = arith.constant 6 : index
    %c0_53 = arith.constant 0 : index
    %c0_54 = arith.constant 0 : index
    %47 = vector.load %arg3[%c6, %c0_53, %c0_54] : memref<9x4x128xbf16, #tpu.memory_space<vmem>>, vector<1x4x128xbf16>
    %48 = vector.shape_cast %47 : vector<1x4x128xbf16> to vector<4x128xbf16>
    %cst_55 = arith.constant dense<0.000000e+00> : vector<256x128xf32>
    %49 = tpu.matmul %46, %48, %cst_55 {dimension_numbers = #tpu.dot_dimension_numbers<[1], [0], [0], [1], [0, 0, 1, 1], [], []>} : vector<256x4xbf16>, vector<4x128xbf16>, vector<256x128xf32> -> vector<256x128xf32>
    %50 = arith.addf %43, %49 : vector<256x128xf32>
    %c0_56 = arith.constant 0 : index
    %c0_57 = arith.constant 0 : index
    %c2_58 = arith.constant 2 : index
    %c1_59 = arith.constant 1 : index
    %c0_60 = arith.constant 0 : index
    %51 = vector.load %arg2[%c0_56, %c0_57, %c2_58, %c1_59, %c0_60] : memref<1x1x18x18x4xbf16, #tpu.memory_space<vmem>>, vector<1x1x16x16x4xbf16>
    %52 = vector.shape_cast %51 : vector<1x1x16x16x4xbf16> to vector<16x16x4xbf16>
    %53 = vector.shape_cast %52 : vector<16x16x4xbf16> to vector<256x4xbf16>
    %c7 = arith.constant 7 : index
    %c0_61 = arith.constant 0 : index
    %c0_62 = arith.constant 0 : index
    %54 = vector.load %arg3[%c7, %c0_61, %c0_62] : memref<9x4x128xbf16, #tpu.memory_space<vmem>>, vector<1x4x128xbf16>
    %55 = vector.shape_cast %54 : vector<1x4x128xbf16> to vector<4x128xbf16>
    %cst_63 = arith.constant dense<0.000000e+00> : vector<256x128xf32>
    %56 = tpu.matmul %53, %55, %cst_63 {dimension_numbers = #tpu.dot_dimension_numbers<[1], [0], [0], [1], [0, 0, 1, 1], [], []>} : vector<256x4xbf16>, vector<4x128xbf16>, vector<256x128xf32> -> vector<256x128xf32>
    %57 = arith.addf %50, %56 : vector<256x128xf32>
    %c0_64 = arith.constant 0 : index
    %c0_65 = arith.constant 0 : index
    %c2_66 = arith.constant 2 : index
    %c2_67 = arith.constant 2 : index
    %c0_68 = arith.constant 0 : index
    %58 = vector.load %arg2[%c0_64, %c0_65, %c2_66, %c2_67, %c0_68] : memref<1x1x18x18x4xbf16, #tpu.memory_space<vmem>>, vector<1x1x16x16x4xbf16>
    %59 = vector.shape_cast %58 : vector<1x1x16x16x4xbf16> to vector<16x16x4xbf16>
    %60 = vector.shape_cast %59 : vector<16x16x4xbf16> to vector<256x4xbf16>
    %c8 = arith.constant 8 : index
    %c0_69 = arith.constant 0 : index
    %c0_70 = arith.constant 0 : index
    %61 = vector.load %arg3[%c8, %c0_69, %c0_70] : memref<9x4x128xbf16, #tpu.memory_space<vmem>>, vector<1x4x128xbf16>
    %62 = vector.shape_cast %61 : vector<1x4x128xbf16> to vector<4x128xbf16>
    %cst_71 = arith.constant dense<0.000000e+00> : vector<256x128xf32>
    %63 = tpu.matmul %60, %62, %cst_71 {dimension_numbers = #tpu.dot_dimension_numbers<[1], [0], [0], [1], [0, 0, 1, 1], [], []>} : vector<256x4xbf16>, vector<4x128xbf16>, vector<256x128xf32> -> vector<256x128xf32>
    %64 = arith.addf %57, %63 : vector<256x128xf32>
    %c0_72 = arith.constant 0 : index
    %c0_73 = arith.constant 0 : index
    %65 = vector.load %arg4[%c0_72, %c0_73] : memref<1x128xf32, #tpu.memory_space<vmem>>, vector<1x128xf32>
    %66 = vector.broadcast %65 : vector<1x128xf32> to vector<256x128xf32>
    %67 = arith.addf %64, %66 : vector<256x128xf32>
    %cst_74 = arith.constant 0.000000e+00 : f32
    %68 = vector.broadcast %cst_74 : f32 to vector<256x128xf32>
    %69 = arith.maximumf %67, %68 : vector<256x128xf32>
    %c0_75 = arith.constant 0 : index
    %c0_76 = arith.constant 0 : index
    %70 = vector.load %arg6[%c0_75, %c0_76] : memref<8x128xf32, #tpu.memory_space<vmem>>, vector<8x128xf32>
    %71 = vector.shape_cast %69 : vector<256x128xf32> to vector<32x8x128xf32>
    %cst_77 = arith.constant dense<0.000000e+00> : vector<8x128xf32>
    %72 = vector.multi_reduction <add>, %71, %cst_77 [0] : vector<32x8x128xf32> to vector<8x128xf32>
    %73 = arith.addf %70, %72 : vector<8x128xf32>
    %c0_78 = arith.constant 0 : index
    %c0_79 = arith.constant 0 : index
    %74 = vector.load %arg6[%c0_78, %c0_79] : memref<8x128xf32, #tpu.memory_space<vmem>>, vector<8x128xf32>
    tpu.vector_store %arg6[%c0_78, %c0_79], %73 {strides = array<i32>} : memref<8x128xf32, #tpu.memory_space<vmem>>, vector<8x128xf32>,
    %c0_i32_80 = arith.constant 0 : i32
    %75 = arith.cmpi eq, %arg1, %c0_i32_80 : i32
    %76 = arith.extui %75 : i1 to i32
    %c0_i32_81 = arith.constant 0 : i32
    %77 = arith.cmpi ne, %76, %c0_i32_81 : i32
    scf.if %77 {
      %c0_82 = arith.constant 0 : index
      %c0_83 = arith.constant 0 : index
      %78 = vector.load %arg6[%c0_82, %c0_83] : memref<8x128xf32, #tpu.memory_space<vmem>>, vector<8x128xf32>
      %cst_84 = arith.constant dense<0.000000e+00> : vector<128xf32>
      %79 = vector.multi_reduction <add>, %78, %cst_84 [0] : vector<8x128xf32> to vector<128xf32>
      %80 = vector.shape_cast %79 : vector<128xf32> to vector<1x128xf32>
      %cst_85 = arith.constant 3.906250e-03 : f32
      %81 = vector.broadcast %cst_85 : f32 to vector<1x128xf32>
      %82 = arith.mulf %80, %81 : vector<1x128xf32>
      %c0_86 = arith.constant 0 : index
      %c0_87 = arith.constant 0 : index
      %c0_88 = arith.constant 0 : index
      %83 = vector.load %arg5[%c0_86, %c0_87, %c0_88] : memref<1x1x128xf32, #tpu.memory_space<vmem>>, vector<1x1x128xf32>
      %84 = vector.shape_cast %83 : vector<1x1x128xf32> to vector<1x128xf32>
      %85 = vector.shape_cast %82 : vector<1x128xf32> to vector<1x1x128xf32>
      tpu.vector_store %arg5[%c0_86, %c0_87, %c0_88], %85 {strides = array<i32>} : memref<1x1x128xf32, #tpu.memory_space<vmem>>, vector<1x1x128xf32>,
    } else {
    }
    return
  }
  func.func @transform_0(%arg0: i32, %arg1: i32) -> (i32, i32, i32, i32, i32) {
    %c0_i32 = arith.constant 0 : i32
    %c0_i32_0 = arith.constant 0 : i32
    %c0_i32_1 = arith.constant 0 : i32
    %c0_i32_2 = arith.constant 0 : i32
    return %arg0, %arg1, %c0_i32, %c0_i32_0, %c0_i32_1 : i32, i32, i32, i32, i32
  }
  func.func @transform_1(%arg0: i32, %arg1: i32) -> (i32, i32, i32) {
    %c0_i32 = arith.constant 0 : i32
    %c0_i32_0 = arith.constant 0 : i32
    %c0_i32_1 = arith.constant 0 : i32
    %c0_i32_2 = arith.constant 0 : i32
    return %c0_i32, %c0_i32_0, %c0_i32_1 : i32, i32, i32
  }
  func.func @transform_2(%arg0: i32, %arg1: i32) -> (i32, i32) {
    %c0_i32 = arith.constant 0 : i32
    %c0_i32_0 = arith.constant 0 : i32
    %c0_i32_1 = arith.constant 0 : i32
    return %c0_i32, %c0_i32_0 : i32, i32
  }
  func.func @transform_3(%arg0: i32, %arg1: i32) -> (i32, i32, i32) {
    %c0_i32 = arith.constant 0 : i32
    %c0_i32_0 = arith.constant 0 : i32
    %c0_i32_1 = arith.constant 0 : i32
    return %arg0, %c0_i32, %c0_i32_0 : i32, i32, i32
  }
}

</mosaic_0001>

<bundles_post_ra>
// kernel: tpu_custom_call.1
= control target key start
LH: loop header
LB: loop body
LE: loop exit
PB: predicated region body
PF: predicated region fallthrough
CT: control target
= control target key end

     0   :  { %8 = vsyncpa [#allocation4], 0  ;;  %s8351_s0 = inlined_call_operand.vmem [shape: bf16[2,1,18,18,4], index: 0, kind: input, shape index: {}]   ;;  %s8352_s1 = inlined_call_operand.vmem [shape: bf16[9,4,128], index: 1, kind: input, shape index: {}]   ;;  %s8353_s2 = inlined_call_operand.vmem [shape: f32[1,128], index: 2, kind: input, shape index: {}]   ;;  %s8354_s3 = inlined_call_operand.hbm [shape: f32[2,1,128], index: 3, kind: output, shape index: {}]  }
   0x1   :  { %10 = vsyncpa [#allocation4 + $0x1], 0  ;;  %s6496_s12 = smov 0   ;;  %s6498_s13 = smov 0  }
   0x2   :  { %s6500_s14 = smov 0   ;;  %s6502_s15 = smov 0  }
   0x3   :  { %s6504_s16 = smov 0   ;;  %s6506_s17 = smov 0  }
   0x4 LB: > { %s4961_s18 = sadd.s32 4294967295, %s6473_s17   ;;  %s4962_s19 = sadd.s32 4294967294, %s6473_s17   ;;  %s6473_s17 = sphi %s6506_s17, %s16_s17   ;;  %s6469_s16 = sphi %s6504_s16, %s8428_s16   ;;  %s6465_s15 = sphi %s6502_s15, %s8427_s15   ;;  %s6461_s14 = sphi %s6500_s14, %s8426_s14   ;;  %s6457_s13 = sphi %s6498_s13, %s8425_s13   ;;  %s6453_s12 = sphi %s6496_s12, %s8424_s12  }
   0x5   : > { %s28_s20 = sadd.s32 1, %s6469_s16  ;;  %s105_s21 = sadd.s32 1, %s6461_s14 }
   0x6   : > { %p30_p0 = scmp.ge.s32.totalorder %s28_s20, 2  ;;  %p115_p1 = scmp.ne.s32.totalorder %s6461_s14, %s6457_s13 }
   0x7   : > { %p116_p2 = scmp.eq.s32.totalorder %s4961_s18, 1  ;;  %p121_p3 = scmp.ne.s32.totalorder %s6457_s13, %s6453_s12 }
   0x8   : > { %s8430_s20 = smov (%p30_p0, %s28_s20), 0  ;;  %p122_p5 = scmp.eq.s32.totalorder %s4962_s19, 1 }
   0x9   : > { %p6536_p4 = por %p116_p2, %p115_p1  ;;  %s102_s23 = ssub.s32 %s6469_s16, %s8430_s20 }
   0xa   : > { %p4965_p6 = scmp.ge.s32.totalorder %s6473_s17, 1  ;;  %p103_p7 = scmp.eq.s32.totalorder %s102_s23, 0 }
   0xb   : > { %p6543_p8 = por %p122_p5, %p121_p3  ;;  %p158_p9 = scmp.lt.s32.totalorder %s6473_s17, 3 }
   0xc   : > { %s6549_s25 = scalar_select %p103_p7, %s6461_s14, %s105_s21  }
   0xd   : > { %p159_p10 = pnand %p4965_p6, %p158_p9 }
   0xf   : > { %162 = sbr.rel (%p159_p10) target bundleno = 630 (0x276), region = 32 }
  0x16   : > { %v4967_v0 = vld [vmem:[%s8352_s1 + $0x2] sm:$0x3]  ;;  %vm735_vm0 = vcmask 1041408   ;;  %v5194_v1 = vld [vmem:[%s8352_s1 + $0x8] sm:$0x3]  ;;  %p185_p11 = scmp.lt.s32.totalorder %s6465_s15, 1 }
  0x17   : > { %6224 = vmatprep.subr.msk.bf16.mxu1 %vm735_vm0, %v4967_v0  ;;  %6228 = vmatprep.subr.msk.bf16.mxu0 %vm735_vm0, %v5194_v1  ;;  %v737_v2 = vsel %vm735_vm0, %v4967_v0, 0  ;;  %v6562_v3 = vsel %vm735_vm0, %v5194_v1, 0  ;;  %v232_v4 = vld [vmem:[%s8352_s1] sm:$0x3]  ;;  %v5259_v5 = vld [vmem:[%s8352_s1 + $0xa] sm:$0x3] }
  0x18   : > { %8370 = vst [vmem:[#allocation6_spill] sm:$0xff] %v6562_v3  ;;  %5661 = vmatpush3.bf16.msra.mxu1 %v737_v2  ;;  %5797 = vmatpush3.bf16.msra.mxu0 %v6562_v3  ;;  %s186_s30 = scalar_select %p185_p11, %s6465_s15, 1  ;;  %vm249_vm1 = vsmask.f32 3328  ;;  %vm250_vm2 = vsmask.f32 7440 }
  0x19   : > { %6225 = vmatprep.subr.msk.bf16.mxu1 %vm735_vm0, %v232_v4  ;;  %6230 = vmatprep.subr.msk.bf16.mxu0 %vm735_vm0, %v5259_v5  ;;  %vm686_vm3 = vcmask 31744   ;;  %v6590_v17 = vsel %vm735_vm0, %v232_v4, 0  ;;  %v6596_v26 = vld [vmem:[%s8352_s1 + $0xc] sm:$0x3]  ;;  %vm6603_vm4 = vmor %vm249_vm1, %vm250_vm2  ;;  %v6609_v37 = vsel %vm735_vm0, %v5259_v5, 0  ;;  %vm1240_vm5 = vcmask 1042432  }
  0x1a   : > { %s6234_s8 = smul.u32 216, %s186_s30  ;;  %v6613_v41 = vsel %vm735_vm0, %v6596_v26, 0  ;;  %vm1241_vm6 = vcmask 1046532   ;;  %s5504_s18 = sshll.u32 %s6465_s15, 4 }
  0x1b   : > { %vm6829_vm7 = vmor %vm1240_vm5, %vm1241_vm6  ;;  %s8304_s27 = scalar_lea.hbm %s8354_s3, %s5504_s18  ;;  %s6475_s15 = smov [#allocation3]  }
  0x1c   : > { %s6577_s11 = scalar_lea.vmem %s8351_s0, %s6234_s8  ;;  %s6399_s30 = sshll.u32 %s6475_s15, 4  ;;  %s6400_s30 = int_to_ptr.vmem [resolvable:$false] %s6399_s30 }
  0x1d   : > { %v200_v6 = vld [vmem:[%s6577_s11] sm:$0xf]  ;;  %v201_v7 = vld [vmem:[%s6577_s11 + $0x4] sm:$0xf]  ;;  %v233_v8 = vld [vmem:[%s6577_s11 + $0x8] sm:$0x1] }
  0x1e   : > { %v253_v9 = vshrl.u32 %v200_v6, 16  ;;  %v256_v10 = vshll.u32 %v200_v6, 16  ;;  %v262_v11 = vshll.u32 %v201_v7, 16  ;;  %v266_v12 = vshrl.u32 %v201_v7, 16  ;;  %v5146_v13 = vld [vmem:[%s6577_s11 + $0xc] sm:$0xf] }
  0x1f   : > { %v272_v14 = vshll.u32 %v233_v8, 16  ;;  %v6584_v15 = vld [vmem:[%s6577_s11 + $0x10] sm:$0xf]  ;;  %v6587_v16 = vld [vmem:[%s6577_s11 + $0x14] sm:$0x1]  ;;  %v2057_v23 = vshrl.u32 %v5146_v13, 16 }
  0x20   : > { %v255_v18 = vrot.slane %v253_v9, 4  ;;  %v258_v19 = vrot.slane %v256_v10, 5  ;;  %v264_v20 = vrot.slane %v262_v11, 5  ;;  %v268_v21 = vrot.slane %v266_v12, 4  ;;  %v202_v31 = vld [vmem:[%s6577_s11 + $0xc] sm:$0xf] }
  0x21   : > { %v274_v22 = vrot.slane %v272_v14, 5  ;;  %v2060_v24 = vshll.u32 %v5146_v13, 16  ;;  %v2066_v25 = vshll.u32 %v6584_v15, 16  ;;  %v2070_v29 = vshrl.u32 %v6584_v15, 16  ;;  %v203_v36 = vld [vmem:[%s6577_s11 + $0x10] sm:$0xf] }
  0x22   : > { %v259_v27 = vor.u32 %v258_v19, %v255_v18  ;;  %v269_v28 = vor.u32 %v268_v21, %v264_v20  ;;  %v2076_v30 = vshll.u32 %v6587_v16, 16  ;;  %v2059_v33 = vrot.slane %v2057_v23, 4  ;;  %v234_v44 = vld [vmem:[%s6577_s11 + $0x14] sm:$0x1]  ;;  %v5149_v55 = vld [vmem:[%s6577_s11 + $0x18] sm:$0xf] }
  0x23   : > { %v2062_v34 = vrot.slane %v2060_v24, 5  ;;  %v2068_v35 = vrot.slane %v2066_v25, 5  ;;  %v2072_v40 = vrot.slane %v2070_v29, 4  ;;  %v277_v45 = vshrl.u32 %v202_v31, 16  ;;  %v6622_v60 = vld [vmem:[%s6577_s11 + $0x1c] sm:$0xf] }
  0x24   : > { %v260_v38 = vrot.slane %v259_v27, 4  ;;  %v270_v39 = vrot.slane %v269_v28, 4  ;;  %v2078_v43 = vrot.slane %v2076_v30, 5  ;;  %v280_v46 = vshll.u32 %v202_v31, 16  ;;  %v6630_v1 = vld [vmem:[%s6577_s11 + $0x20] sm:$0x1] }
  0x25   : > { %v2063_v42 = vor.u32 %v2062_v34, %v2059_v33  ;;  %v2073_v49 = vor.u32 %v2072_v40, %v2068_v35  ;;  %v286_v50 = vshll.u32 %v203_v36, 16  ;;  %v279_v53 = vrot.slane %v277_v45, 4  ;;  %v204_v18 = vld [vmem:[%s6577_s11 + $0x18] sm:$0xf]  ;;  %v205_v23 = vld [vmem:[%s6577_s11 + $0x1c] sm:$0xf] }
  0x26   : > { %v265_v47 = vsel %vm6603_vm4, %v260_v38, %v264_v20  ;;  %v275_v48 = vsel %vm6603_vm4, %v270_v39, %v274_v22  ;;  %v282_v54 = vrot.slane %v280_v46, 5  ;;  %v290_v58 = vshrl.u32 %v203_v36, 16  ;;  %v235_v31 = vld [vmem:[%s6577_s11 + $0x20] sm:$0x1]  ;;  %v5152_v40 = vld [vmem:[%s6577_s11 + $0x24] sm:$0xf] }
  0x27   : > { %v4968_v51 = vcombine.low %v265_v47, %v275_v48  ;;  %v2064_v52 = vrot.slane %v2063_v42, 4  ;;  %v2074_v56 = vrot.slane %v2073_v49, 4  ;;  %v288_v57 = vrot.slane %v286_v50, 5  ;;  %v6653_v46 = vld [vmem:[%s6577_s11 + $0x28] sm:$0xf]  ;;  %s6401_s4 = scalar_lea.vmem %s6400_s30, 32 }
  0x28   : > { %v296_v59 = vshll.u32 %v234_v44, 16  ;;  %v2800_v62 = vrot.slane %v6584_v15, 5  ;;  %v2803_v63 = vrot.slane %v6587_v16, 5  ;;  %v283_v0 = vor.u32 %v282_v54, %v279_v53  ;;  %v6662_v54 = vld [vmem:[%s6577_s11 + $0x2c] sm:$0x1] }
  0x29   : > { %5662 = vmatprep.mubr.msk.bf16.mxu1 %vm686_vm3, %v4968_v51  ;;  %v2069_v61 = vsel %vm6603_vm4, %v2064_v52, %v2068_v35  ;;  %v2079_v2 = vsel %vm6603_vm4, %v2074_v56, %v2078_v43  ;;  %v292_v4 = vrot.slane %v290_v58, 4  ;;  %v2081_v6 = vshrl.u32 %v5149_v55, 16  ;;  %v5048_v51 = vld [vmem:[%s8352_s1 + $0x4] sm:$0x3]  ;;  %v6862_v16 = vld [vmem:[%s6577_s11 + $0x7c] sm:$0xf] }
  0x2a   : > { %v298_v5 = vrot.slane %v296_v59, 5  ;;  %v5195_v7 = vcombine.low %v2069_v61, %v2079_v2  ;;  %v284_v8 = vrot.slane %v283_v0, 4  ;;  %v2084_v9 = vshll.u32 %v5149_v55, 16  ;;  %v206_v0 = vld [vmem:[%s6577_s11 + $0x24] sm:$0xf] }
  0x2b   : > { %v2090_v10 = vshll.u32 %v6622_v60, 16  ;;  %v293_v11 = vor.u32 %v292_v4, %v288_v57  ;;  %v2083_v12 = vrot.slane %v2081_v6, 4  ;;  %v2094_v13 = vshrl.u32 %v6622_v60, 16 }
  0x2c   : > { %v2100_v14 = vshll.u32 %v6630_v1, 16  ;;  %5798 = vmatprep.mubr.msk.bf16.mxu0 %vm686_vm3, %v5195_v7  ;;  %v289_v19 = vsel %vm6603_vm4, %v284_v8, %v288_v57  ;;  %v2086_v20 = vrot.slane %v2084_v9, 5  ;;  %v2807_v22 = vrot.slane %v6622_v60, 5  ;;  %v207_v7 = vld [vmem:[%s6577_s11 + $0x28] sm:$0xf] }
  0x2d   : > { %v2092_v21 = vrot.slane %v2090_v10, 5  ;;  %v294_v24 = vrot.slane %v293_v11, 4  ;;  %v2096_v25 = vrot.slane %v2094_v13, 4  ;;  %v2810_v28 = vrot.slane %v6630_v1, 5  ;;  %v236_v13 = vld [vmem:[%s6577_s11 + $0x2c] sm:$0x1] }
  0x2e   : > { %v2102_v27 = vrot.slane %v2100_v14, 5  ;;  %v2087_v29 = vor.u32 %v2086_v20, %v2083_v12  ;;  %v6646_v30 = vrot.slane %v2807_v22, 4  ;;  %v301_v33 = vshrl.u32 %v204_v18, 16 }
  0x2f   : > { %v304_v34 = vshll.u32 %v204_v18, 16  ;;  %v299_v35 = vsel %vm6603_vm4, %v294_v24, %v298_v5  ;;  %v2097_v36 = vor.u32 %v2096_v25, %v2092_v21  ;;  %v310_v38 = vshll.u32 %v205_v23, 16  ;;  %v5155_v24 = vld [vmem:[%s6577_s11 + $0x30] sm:$0xf] }
  0x30   : > { %v314_v39 = vshrl.u32 %v205_v23, 16  ;;  %v4969_v42 = vcombine.low %v289_v19, %v299_v35  ;;  %v2088_v43 = vrot.slane %v2087_v29, 4  ;;  %v303_v44 = vrot.slane %v301_v33, 4  ;;  %v6682_v33 = vld [vmem:[%s6577_s11 + $0x34] sm:$0xf] }
  0x31   : > { %v306_v45 = vrot.slane %v304_v34, 5  ;;  %v2098_v47 = vrot.slane %v2097_v36, 4  ;;  %v312_v48 = vrot.slane %v310_v38, 5  ;;  %v320_v50 = vshll.u32 %v235_v31, 16 }
  0x32   : > { %v316_v49 = vrot.slane %v314_v39, 4  ;;  %5663 = vmatmul.mubr.msk.bf16.vlgmr.msra.gmra.mrb[0].mxu1 %vm686_vm3, %v4969_v42  ;;  %v2093_v52 = vsel %vm6603_vm4, %v2088_v43, %v2092_v21  ;;  %v2105_v55 = vshrl.u32 %v5152_v40, 16  ;;  %v2108_v56 = vshll.u32 %v5152_v40, 16  ;;  %v6690_v40 = vld [vmem:[%s6577_s11 + $0x38] sm:$0x1] }
  0x33   : > { %v307_v53 = vor.u32 %v306_v45, %v303_v44  ;;  %5695 = vmatpush3.bf16.msra.mxu1 %v6590_v17  ;;  %v2103_v57 = vsel %vm6603_vm4, %v2098_v47, %v2102_v27  ;;  %v322_v59 = vrot.slane %v320_v50, 5  ;;  %v2114_v61 = vshll.u32 %v6653_v46, 16 }
  0x34   : > { %v317_v58 = vor.u32 %v316_v49, %v312_v48  ;;  %v5196_v2 = vcombine.low %v2093_v52, %v2103_v57  ;;  %v2107_v5 = vrot.slane %v2105_v55, 4  ;;  %v2110_v6 = vrot.slane %v2108_v56, 5  ;;  %6226 = vmatprep.subr.msk.bf16.mxu1 %vm735_vm0, %v5048_v51  ;;  %v208_v52 = vld [vmem:[%s6577_s11 + $0x30] sm:$0xf] }
  0x35   : > { %v308_v4 = vrot.slane %v307_v53, 4  ;;  %v2116_v9 = vrot.slane %v2114_v61, 5  ;;  %v2118_v17 = vshrl.u32 %v6653_v46, 16  ;;  %v2124_v10 = vshll.u32 %v6662_v54, 16 }
  0x36   : > { %v318_v8 = vrot.slane %v317_v58, 4  ;;  %5799 = vmatmul.mubr.msk.bf16.vlgmr.msra.gmra.mrb[0].mxu0 %vm686_vm3, %v5196_v2  ;;  %v2111_v12 = vor.u32 %v2110_v6, %v2107_v5  ;;  %v325_v14 = vshrl.u32 %v206_v0, 16  ;;  %v328_v18 = vshll.u32 %v206_v0, 16  ;;  %v209_v58 = vld [vmem:[%s6577_s11 + $0x34] sm:$0xf] }
  0x37   : > { %v313_v11 = vsel %vm6603_vm4, %v308_v4, %v312_v48  ;;  %5831 = vmatpush3.bf16.msra.mxu0 %v6609_v37  ;;  %v2120_v20 = vrot.slane %v2118_v17, 4  ;;  %v2126_v21 = vrot.slane %v2124_v10, 5  ;;  %v334_v23 = vshll.u32 %v207_v7, 16  ;;  %v237_v4 = vld [vmem:[%s6577_s11 + $0x38] sm:$0x1] }
  0x38   : > { %v323_v19 = vsel %vm6603_vm4, %v318_v8, %v322_v59  ;;  %v2112_v27 = vrot.slane %v2111_v12, 4  ;;  %v327_v29 = vrot.slane %v325_v14, 4  ;;  %v330_v31 = vrot.slane %v328_v18, 5  ;;  %6231 = vmatprep.subr.msk.bf16.mxu0 %vm735_vm0, %v6596_v26  ;;  %v5158_v12 = vld [vmem:[%s6577_s11 + $0x3c] sm:$0xf] }
  0x39   : > { %v4970_v25 = vcombine.low %v313_v11, %v323_v19  ;;  %v2121_v34 = vor.u32 %v2120_v20, %v2116_v9  ;;  %v336_v35 = vrot.slane %v334_v23, 5  ;;  %v338_v37 = vshrl.u32 %v207_v7, 16  ;;  %v6707_v20 = vld [vmem:[%s6577_s11 + $0x40] sm:$0xf] }
  0x3a   : > { %v344_v36 = vshll.u32 %v236_v13, 16  ;;  %v2117_v38 = vsel %vm6603_vm4, %v2112_v27, %v2116_v9  ;;  %v331_v39 = vor.u32 %v330_v31, %v327_v29  ;;  %v2129_v42 = vshrl.u32 %v5155_v24, 16 }
  0x3b   : > { %5666 = vmatprep.mubr.msk.bf16.mxu1 %vm686_vm3, %v4970_v25  ;;  %v2132_v43 = vshll.u32 %v5155_v24, 16  ;;  %v2122_v44 = vrot.slane %v2121_v34, 4  ;;  %v340_v45 = vrot.slane %v338_v37, 4  ;;  %v2138_v26 = vshll.u32 %v6682_v33, 16  ;;  %v6712_v34 = vld [vmem:[%s6577_s11 + $0x44] sm:$0x1] }
  0x3c   : > { %v346_v47 = vrot.slane %v344_v36, 5  ;;  %v332_v48 = vrot.slane %v331_v39, 4  ;;  %v2131_v49 = vrot.slane %v2129_v42, 4  ;;  %v2142_v51 = vshrl.u32 %v6682_v33, 16  ;;  %v210_v42 = vld [vmem:[%s6577_s11 + $0x3c] sm:$0xf] }
  0x3d   : > { %v2134_v50 = vrot.slane %v2132_v43, 5  ;;  %v2127_v53 = vsel %vm6603_vm4, %v2122_v44, %v2126_v21  ;;  %v341_v55 = vor.u32 %v340_v45, %v336_v35  ;;  %v2140_v56 = vrot.slane %v2138_v26, 5  ;;  %v211_v26 = vld [vmem:[%s6577_s11 + $0x40] sm:$0xf] }
  0x3e   : > { %v2148_v57 = vshll.u32 %v6690_v40, 16  ;;  %v5197_v59 = vcombine.low %v2117_v38, %v2127_v53  ;;  %v337_v61 = vsel %vm6603_vm4, %v332_v48, %v336_v35  ;;  %v2144_v2 = vrot.slane %v2142_v51, 4 }
  0x3f   : > { %v2135_v0 = vor.u32 %v2134_v50, %v2131_v49  ;;  %v342_v5 = vrot.slane %v341_v55, 4  ;;  %v349_v7 = vshrl.u32 %v208_v52, 16  ;;  %v352_v8 = vshll.u32 %v208_v52, 16 }
  0x40   : > { %v2150_v6 = vrot.slane %v2148_v57, 5  ;;  %5802 = vmatprep.mubr.msk.bf16.mxu0 %vm686_vm3, %v5197_v59  ;;  %v2145_v17 = vor.u32 %v2144_v2, %v2140_v56  ;;  %v358_v10 = vshll.u32 %v209_v58, 16  ;;  %v362_v11 = vshrl.u32 %v209_v58, 16  ;;  %v5161_v2 = vld [vmem:[%s6577_s11 + $0x48] sm:$0xf] }
  0x41   : > { %v2136_v9 = vrot.slane %v2135_v0, 4  ;;  %v347_v13 = vsel %vm6603_vm4, %v342_v5, %v346_v47  ;;  %v351_v14 = vrot.slane %v349_v7, 4  ;;  %v354_v18 = vrot.slane %v352_v8, 5  ;;  %v6730_v8 = vld [vmem:[%s6577_s11 + $0x4c] sm:$0xf] }
  0x42   : > { %v368_v19 = vshll.u32 %v237_v4, 16  ;;  %v4971_v21 = vcombine.low %v337_v61, %v347_v13  ;;  %v2146_v24 = vrot.slane %v2145_v17, 4  ;;  %v360_v25 = vrot.slane %v358_v10, 5  ;;  %v238_v61 = vld [vmem:[%s6577_s11 + $0x44] sm:$0x1] }
  0x43   : > { %v2141_v23 = vsel %vm6603_vm4, %v2136_v9, %v2140_v56  ;;  %v355_v27 = vor.u32 %v354_v18, %v351_v14  ;;  %v364_v29 = vrot.slane %v362_v11, 4  ;;  %v2153_v35 = vshrl.u32 %v5158_v12, 16 }
  0x44   : > { %v370_v31 = vrot.slane %v368_v19, 5  ;;  %5667 = vmatmul.mubr.msk.bf16.gmra.mrb[4].mxu1 %vm686_vm3, %v4971_v21  ;;  %v2151_v37 = vsel %vm6603_vm4, %v2146_v24, %v2150_v6  ;;  %v2156_v36 = vshll.u32 %v5158_v12, 16  ;;  %v2162_v38 = vshll.u32 %v6707_v20, 16 }
  0x45   : > { %v2166_v39 = vshrl.u32 %v6707_v20, 16  ;;  %v5198_v43 = vcombine.low %v2141_v23, %v2151_v37  ;;  %v356_v44 = vrot.slane %v355_v27, 4  ;;  %v365_v45 = vor.u32 %v364_v29, %v360_v25  ;;  %v6738_v23 = vld [vmem:[%s6577_s11 + $0x50] sm:$0x1]  ;;  %v6742_v27 = vld [vmem:[%s6577_s11 + $0x48] sm:$0xf] }
  0x46   : > { %v2155_v47 = vrot.slane %v2153_v35, 4  ;;  %v2158_v48 = vrot.slane %v2156_v36, 5  ;;  %v2164_v49 = vrot.slane %v2162_v38, 5  ;;  %v2172_v51 = vshll.u32 %v6712_v34, 16  ;;  %v6745_v36 = vld [vmem:[%s6577_s11 + $0x4c] sm:$0xf] }
  0x47   : > { %v2168_v50 = vrot.slane %v2166_v39, 4  ;;  %5803 = vmatmul.mubr.msk.bf16.gmra.mrb[4].mxu0 %vm686_vm3, %v5198_v43  ;;  %v361_v52 = vsel %vm6603_vm4, %v356_v44, %v360_v25  ;;  %v366_v53 = vrot.slane %v365_v45, 4  ;;  %v373_v55 = vshrl.u32 %v210_v42, 16 }
  0x48   : > { %v376_v56 = vshll.u32 %v210_v42, 16  ;;  %v2159_v57 = vor.u32 %v2158_v48, %v2155_v47  ;;  %v2174_v59 = vrot.slane %v2172_v51, 5  ;;  %v382_v0 = vshll.u32 %v211_v26, 16 }
  0x49   : > { %v2169_v58 = vor.u32 %v2168_v50, %v2164_v49  ;;  %v371_v4 = vsel %vm6603_vm4, %v366_v53, %v370_v31  ;;  %v375_v5 = vrot.slane %v373_v55, 4  ;;  %v386_v7 = vshrl.u32 %v211_v26, 16  ;;  %v239_v26 = vld [vmem:[%s6577_s11 + $0x50] sm:$0x1]  ;;  %v5164_v53 = vld [vmem:[%s6577_s11 + $0x54] sm:$0xf] }
  0x4a   : > { %v378_v6 = vrot.slane %v376_v56, 5  ;;  %v4972_v9 = vcombine.low %v361_v52, %v371_v4  ;;  %v2160_v17 = vrot.slane %v2159_v57, 4  ;;  %v384_v11 = vrot.slane %v382_v0, 5  ;;  %v6761_v4 = vld [vmem:[%s6577_s11 + $0x58] sm:$0xf] }
  0x4b   : > { %v2170_v10 = vrot.slane %v2169_v58, 4  ;;  %v388_v13 = vrot.slane %v386_v7, 4  ;;  %v392_v14 = vshll.u32 %v238_v61, 16  ;;  %v2177_v18 = vshrl.u32 %v5161_v2, 16 }
  0x4c   : > { %v379_v12 = vor.u32 %v378_v6, %v375_v5  ;;  %5670 = vmatprep.mubr.msk.bf16.mxu1 %vm686_vm3, %v4972_v9  ;;  %v2165_v19 = vsel %vm6603_vm4, %v2160_v17, %v2164_v49  ;;  %v2180_v24 = vshll.u32 %v5161_v2, 16  ;;  %v2186_v25 = vshll.u32 %v6730_v8, 16 }
  0x4d   : > { %v2175_v21 = vsel %vm6603_vm4, %v2170_v10, %v2174_v59  ;;  %v389_v35 = vor.u32 %v388_v13, %v384_v11  ;;  %v394_v37 = vrot.slane %v392_v14, 5  ;;  %v2179_v38 = vrot.slane %v2177_v18, 4 }
  0x4e   : > { %v5199_v29 = vcombine.low %v2165_v19, %v2175_v21  ;;  %v380_v31 = vrot.slane %v379_v12, 4  ;;  %v2182_v39 = vrot.slane %v2180_v24, 5  ;;  %v2188_v42 = vrot.slane %v2186_v25, 5  ;;  %v6767_v12 = vld [vmem:[%s6577_s11 + $0x5c] sm:$0x1] }
  0x4f   : > { %v2190_v43 = vshrl.u32 %v6730_v8, 16  ;;  %v390_v45 = vrot.slane %v389_v35, 4  ;;  %v2196_v47 = vshll.u32 %v6738_v23, 16  ;;  %v397_v48 = vshrl.u32 %v6742_v27, 16  ;;  %v6771_v24 = vld [vmem:[%s6577_s11 + $0x54] sm:$0xf] }
  0x50   : > { %5806 = vmatprep.mubr.msk.bf16.mxu0 %vm686_vm3, %v5199_v29  ;;  %v385_v44 = vsel %vm6603_vm4, %v380_v31, %v384_v11  ;;  %v2183_v49 = vor.u32 %v2182_v39, %v2179_v38  ;;  %v400_v51 = vshll.u32 %v6742_v27, 16  ;;  %v406_v52 = vshll.u32 %v6745_v36, 16 }
  0x51   : > { %v2192_v50 = vrot.slane %v2190_v43, 4  ;;  %v395_v55 = vsel %vm6603_vm4, %v390_v45, %v394_v37  ;;  %v2198_v56 = vrot.slane %v2196_v47, 5  ;;  %v399_v57 = vrot.slane %v397_v48, 4  ;;  %v6777_v37 = vld [vmem:[%s6577_s11 + $0x58] sm:$0xf] }
  0x52   : > { %v410_v58 = vshrl.u32 %v6745_v36, 16  ;;  %v4973_v59 = vcombine.low %v385_v44, %v395_v55  ;;  %v2184_v61 = vrot.slane %v2183_v49, 4  ;;  %v402_v2 = vrot.slane %v400_v51, 5 }
  0x53   : > { %v2193_v0 = vor.u32 %v2192_v50, %v2188_v42  ;;  %v408_v5 = vrot.slane %v406_v52, 5  ;;  %v416_v7 = vshll.u32 %v239_v26, 16  ;;  %v2201_v9 = vshrl.u32 %v5164_v53, 16  ;;  %v240_v26 = vld [vmem:[%s6577_s11 + $0x5c] sm:$0x1] }
  0x54   : > { %v412_v6 = vrot.slane %v410_v58, 4  ;;  %5671 = vmatmul.mubr.msk.bf16.gmra.mrb[8].mxu1 %vm686_vm3, %v4973_v59  ;;  %v2189_v17 = vsel %vm6603_vm4, %v2184_v61, %v2188_v42  ;;  %v403_v11 = vor.u32 %v402_v2, %v399_v57  ;;  %v2204_v13 = vshll.u32 %v5164_v53, 16  ;;  %v5167_v53 = vld [vmem:[%s6577_s11 + $0x60] sm:$0xf]  ;;  %v6791_v59 = vld [vmem:[%s6577_s11 + $0x64] sm:$0xf] }
  0x55   : > { %v2194_v10 = vrot.slane %v2193_v0, 4  ;;  %v418_v18 = vrot.slane %v416_v7, 5  ;;  %v2203_v19 = vrot.slane %v2201_v9, 4  ;;  %v2210_v21 = vshll.u32 %v6761_v4, 16  ;;  %v6798_v9 = vld [vmem:[%s6577_s11 + $0x68] sm:$0x1] }
  0x56   : > { %v413_v14 = vor.u32 %v412_v6, %v408_v5  ;;  %v404_v29 = vrot.slane %v403_v11, 4  ;;  %v2206_v31 = vrot.slane %v2204_v13, 5  ;;  %v2214_v35 = vshrl.u32 %v6761_v4, 16 }
  0x57   : > { %v2199_v25 = vsel %vm6603_vm4, %v2194_v10, %v2198_v56  ;;  %v2212_v42 = vrot.slane %v2210_v21, 5  ;;  %v2220_v43 = vshll.u32 %v6767_v12, 16  ;;  %v421_v48 = vshrl.u32 %v6771_v24, 16 }
  0x58   : > { %v5200_v38 = vcombine.low %v2189_v17, %v2199_v25  ;;  %v414_v39 = vrot.slane %v413_v14, 4  ;;  %v409_v44 = vsel %vm6603_vm4, %v404_v29, %v408_v5  ;;  %v2207_v45 = vor.u32 %v2206_v31, %v2203_v19  ;;  %v6802_v19 = vld [vmem:[%s6577_s11 + $0x60] sm:$0xf] }
  0x59   : > { %v2216_v47 = vrot.slane %v2214_v35, 4  ;;  %v2222_v50 = vrot.slane %v2220_v43, 5  ;;  %v424_v51 = vshll.u32 %v6771_v24, 16  ;;  %v430_v52 = vshll.u32 %v6777_v37, 16  ;;  %v6808_v35 = vld [vmem:[%s6577_s11 + $0x64] sm:$0xf] }
  0x5a   : > { %5807 = vmatmul.mubr.msk.bf16.gmra.mrb[8].mxu0 %vm686_vm3, %v5200_v38  ;;  %v419_v49 = vsel %vm6603_vm4, %v414_v39, %v418_v18  ;;  %v2208_v56 = vrot.slane %v2207_v45, 4  ;;  %v423_v58 = vrot.slane %v421_v48, 4  ;;  %v434_v2 = vshrl.u32 %v6777_v37, 16 }
  0x5b   : > { %v4974_v55 = vcombine.low %v409_v44, %v419_v49  ;;  %v2217_v57 = vor.u32 %v2216_v47, %v2212_v42  ;;  %v426_v61 = vrot.slane %v424_v51, 5  ;;  %v432_v0 = vrot.slane %v430_v52, 5 }
  0x5c   : > { %v440_v5 = vshll.u32 %v240_v26, 16  ;;  %v2213_v6 = vsel %vm6603_vm4, %v2208_v56, %v2212_v42  ;;  %v2225_v17 = vshrl.u32 %v5167_v53, 16  ;;  %v2228_v10 = vshll.u32 %v5167_v53, 16 }
  0x5d   : > { %5674 = vmatprep.mubr.msk.bf16.mxu1 %vm686_vm3, %v4974_v55  ;;  %v2218_v7 = vrot.slane %v2217_v57, 4  ;;  %v427_v11 = vor.u32 %v426_v61, %v423_v58  ;;  %v436_v13 = vrot.slane %v434_v2, 4  ;;  %v2234_v18 = vshll.u32 %v6791_v59, 16  ;;  %v5227_v58 = vld [vmem:[%s6577_s11 + $0xc] sm:$0xe] }
  0x5e   : > { %v442_v14 = vrot.slane %v440_v5, 5  ;;  %v2227_v25 = vrot.slane %v2225_v17, 4  ;;  %v2230_v29 = vrot.slane %v2228_v10, 5  ;;  %v2238_v31 = vshrl.u32 %v6791_v59, 16 }
  0x5f   : > { %v2223_v21 = vsel %vm6603_vm4, %v2218_v7, %v2222_v50  ;;  %v428_v39 = vrot.slane %v427_v11, 4  ;;  %v437_v42 = vor.u32 %v436_v13, %v432_v0  ;;  %v2236_v43 = vrot.slane %v2234_v18, 5  ;;  %v241_v50 = vld [vmem:[%s6577_s11 + $0x68] sm:$0x1] }
  0x60   : > { %v5201_v38 = vcombine.low %v2213_v6, %v2223_v21  ;;  %v2231_v44 = vor.u32 %v2230_v29, %v2227_v25  ;;  %v2240_v45 = vrot.slane %v2238_v31, 4  ;;  %v2244_v47 = vshll.u32 %v6798_v9, 16  ;;  %v6836_v29 = vld [vmem:[%s6577_s11 + $0x70] sm:$0xf] }
  0x61   : > { %v445_v26 = vshrl.u32 %v6802_v19, 16  ;;  %v433_v48 = vsel %vm6603_vm4, %v428_v39, %v432_v0  ;;  %v438_v49 = vrot.slane %v437_v42, 4  ;;  %v448_v51 = vshll.u32 %v6802_v19, 16  ;;  %v6823_v0 = vld [vmem:[%s6577_s11 + $0x6c] sm:$0xf] }
  0x62   : > { %5810 = vmatprep.mubr.msk.bf16.mxu0 %vm686_vm3, %v5201_v38  ;;  %v454_v52 = vshll.u32 %v6808_v35, 16  ;;  %v2232_v53 = vrot.slane %v2231_v44, 4  ;;  %v2241_v55 = vor.u32 %v2240_v45, %v2236_v43  ;;  %v2246_v56 = vrot.slane %v2244_v47, 5 }
  0x63   : > { %v447_v57 = vrot.slane %v445_v26, 4  ;;  %v443_v61 = vsel %vm6603_vm4, %v438_v49, %v442_v14  ;;  %v450_v2 = vrot.slane %v448_v51, 5  ;;  %v458_v6 = vshrl.u32 %v6808_v35, 16  ;;  %v242_v26 = vld [vmem:[%s6577_s11 + $0x74] sm:$0x1] }
  0x64   : > { %v456_v5 = vrot.slane %v454_v52, 5  ;;  %v4975_v7 = vcombine.low %v433_v48, %v443_v61  ;;  %v2237_v17 = vsel %vm6603_vm4, %v2232_v53, %v2236_v43  ;;  %v2242_v10 = vrot.slane %v2241_v55, 4  ;;  %v5228_v48 = vld [vmem:[%s6577_s11 + $0x18] sm:$0xe] }
  0x65   : > { %v464_v11 = vshll.u32 %v241_v50, 16  ;;  %v451_v14 = vor.u32 %v450_v2, %v447_v57  ;;  %v460_v18 = vrot.slane %v458_v6, 4  ;;  %v5243_v21 = vrot.slane %v5227_v58, 9  ;;  %v6855_v53 = vld [vmem:[%s6577_s11 + $0x78] sm:$0xf] }
  0x66   : > { %v2802_v25 = vrot.slane %v2800_v62, 4  ;;  %5675 = vmatmul.mubr.msk.bf16.gmra.mrb[12].mxu1 %vm686_vm3, %v4975_v7  ;;  %v2247_v31 = vsel %vm6603_vm4, %v2242_v10, %v2246_v56  ;;  %v469_v39 = vshrl.u32 %v6823_v0, 16  ;;  %v472_v42 = vshll.u32 %v6823_v0, 16  ;;  %v243_v57 = vld [vmem:[%s6577_s11 + $0x80] sm:$0x1] }
  0x67   : > { %v466_v38 = vrot.slane %v464_v11, 5  ;;  %v5202_v43 = vcombine.low %v2237_v17, %v2247_v31  ;;  %v452_v44 = vrot.slane %v451_v14, 4  ;;  %v461_v45 = vor.u32 %v460_v18, %v456_v5  ;;  %v5229_v10 = vld [vmem:[%s6577_s11 + $0x24] sm:$0xe] }
  0x68   : > { %v2801_v47 = vsel %vm6829_vm7, %v5243_v21, %v2800_v62  ;;  %v2804_v49 = vsel %vm6829_vm7, %v2802_v25, %v2803_v63  ;;  %v471_v50 = vrot.slane %v469_v39, 4  ;;  %v474_v51 = vrot.slane %v472_v42, 5  ;;  %v6881_v39 = vld [vmem:[%s6577_s11 + $0x84] sm:$0xf] }
  0x69   : > { %v478_v52 = vshll.u32 %v6836_v29, 16  ;;  %5811 = vmatmul.mubr.msk.bf16.gmra.mrb[12].mxu0 %vm686_vm3, %v5202_v43  ;;  %v457_v15 = vsel %vm6603_vm4, %v452_v44, %v456_v5  ;;  %v462_v62 = vrot.slane %v461_v45, 4  ;;  %v5260_v55 = vcombine.low %v2801_v47, %v2804_v49  ;;  %v6889_v43 = vld [vmem:[%s6577_s11 + $0x88] sm:$0xf] }
  0x6a   : > { %v482_v56 = vshrl.u32 %v6836_v29, 16  ;;  %v475_v63 = vor.u32 %v474_v51, %v471_v50  ;;  %v488_v61 = vshll.u32 %v242_v26, 16  ;;  %v5244_v2 = vrot.slane %v5228_v48, 9 }
  0x6b   : > { %v480_v58 = vrot.slane %v478_v52, 5  ;;  %v467_v6 = vsel %vm6603_vm4, %v462_v62, %v466_v38  ;;  %5832 = vmatprep.mubr.msk.bf16.mxu0 %vm686_vm3, %v5260_v55  ;;  %v2811_v5 = vsel %vm6829_vm7, %v6646_v30, %v2810_v28  ;;  %v493_v17 = vshrl.u32 %v6855_v53, 16  ;;  %v244_v52 = vld [vmem:[%s6577_s11 + $0x8c] sm:$0x1] }
  0x6c   : > { %v484_v7 = vrot.slane %v482_v56, 4  ;;  %v4976_v11 = vcombine.low %v457_v15, %v467_v6  ;;  %v476_v14 = vrot.slane %v475_v63, 4  ;;  %v490_v18 = vrot.slane %v488_v61, 5 }
  0x6d   : > { %v2808_v21 = vsel %vm6829_vm7, %v5244_v2, %v2807_v22  ;;  %v495_v38 = vrot.slane %v493_v17, 4  ;;  %v496_v1 = vshll.u32 %v6855_v53, 16  ;;  %v502_v30 = vshll.u32 %v6862_v16, 16  ;;  %v6894_v22 = vld [vmem:[%s8352_s1 + $0xe] sm:$0x3] }
  0x6e   : > { %v485_v25 = vor.u32 %v484_v7, %v480_v58  ;;  %v5261_v31 = vcombine.low %v2808_v21, %v2811_v5  ;;  %5678 = vmatprep.mubr.msk.bf16.mxu1 %vm686_vm3, %v4976_v11  ;;  %v481_v28 = vsel %vm6603_vm4, %v476_v14, %v480_v58  ;;  %v506_v60 = vshrl.u32 %v6862_v16, 16  ;;  %v6913_v5 = vld [vmem:[%s6577_s11 + $0x90] sm:$0xf] }
  0x6f   : > { %v512_v42 = vshll.u32 %v243_v57, 16  ;;  %v498_v45 = vrot.slane %v496_v1, 5  ;;  %v5245_v47 = vrot.slane %v5229_v10, 9  ;;  %v2814_v26 = vrot.slane %v6653_v46, 5  ;;  %v5230_v57 = vld [vmem:[%s6577_s11 + $0x30] sm:$0xe] }
  0x70   : > { %v486_v44 = vrot.slane %v485_v25, 4  ;;  %v504_v48 = vrot.slane %v502_v30, 5  ;;  %v508_v49 = vrot.slane %v506_v60, 4  ;;  %v2817_v51 = vrot.slane %v6662_v54, 5  ;;  %v6925_v30 = vld [vmem:[%s6577_s11 + $0x94] sm:$0xf] }
  0x71   : > { %v514_v50 = vrot.slane %v512_v42, 5  ;;  %5833 = vmatmul.mubr.msk.bf16.vlgmr.msra.gmra.mrb[0].mxu0 %vm686_vm3, %v5261_v31  ;;  %v499_v62 = vor.u32 %v498_v45, %v495_v38  ;;  %v2815_v55 = vsel %vm6829_vm7, %v5245_v47, %v2814_v26  ;;  %v2816_v56 = vrot.slane %v2814_v26, 4  ;;  %v245_v60 = vld [vmem:[%s6577_s11 + $0x98] sm:$0x1]  ;;  %v5231_v26 = vld [vmem:[%s6577_s11 + $0x3c] sm:$0xe] }
  0x72   : > { %v491_v15 = vsel %vm6603_vm4, %v486_v44, %v490_v18  ;;  %5865 = vmatpush3.bf16.msra.mxu0 %v6613_v41  ;;  %v509_v46 = vor.u32 %v508_v49, %v504_v48  ;;  %v517_v58 = vshrl.u32 %v6881_v39, 16  ;;  %v520_v54 = vshll.u32 %v6881_v39, 16 }
  0x73   : > { %v4977_v63 = vcombine.low %v481_v28, %v491_v15  ;;  %v500_v61 = vrot.slane %v499_v62, 4  ;;  %v2818_v2 = vsel %vm6829_vm7, %v2816_v56, %v2817_v51  ;;  %v526_v6 = vshll.u32 %v6889_v43, 16  ;;  %6232 = vmatprep.subr.msk.bf16.mxu0 %vm735_vm0, %v6894_v22 }
  0x74   : > { %v530_v7 = vshrl.u32 %v6889_v43, 16  ;;  %v510_v41 = vrot.slane %v509_v46, 4  ;;  %v5262_v17 = vcombine.low %v2815_v55, %v2818_v2  ;;  %v519_v10 = vrot.slane %v517_v58, 4  ;;  %v6945_v46 = vld [vmem:[%s6577_s11 + $0xa0] sm:$0xf] }
  0x75   : > { %5679 = vmatmul.mubr.msk.bf16.gmra.mrb[16].mxu1 %vm686_vm3, %v4977_v63  ;;  %v522_v11 = vrot.slane %v520_v54, 5  ;;  %v505_v14 = vsel %vm6603_vm4, %v500_v61, %v504_v48  ;;  %v528_v18 = vrot.slane %v526_v6, 5  ;;  %v536_v25 = vshll.u32 %v244_v52, 16  ;;  %v6934_v52 = vld [vmem:[%s6577_s11 + $0x9c] sm:$0xf] }
  0x76   : > { %v532_v21 = vrot.slane %v530_v7, 4  ;;  %v515_v31 = vsel %vm6603_vm4, %v510_v41, %v514_v50  ;;  %5836 = vmatprep.mubr.msk.bf16.mxu0 %vm686_vm3, %v5262_v17  ;;  %v5246_v1 = vrot.slane %v5230_v57, 9  ;;  %v2821_v28 = vrot.slane %v6682_v33, 5 }
  0x77   : > { %v523_v38 = vor.u32 %v522_v11, %v519_v10  ;;  %v4978_v42 = vcombine.low %v505_v14, %v515_v31  ;;  %v538_v45 = vrot.slane %v536_v25, 5  ;;  %v2824_v47 = vrot.slane %v6690_v40, 5  ;;  %v246_v10 = vld [vmem:[%s6577_s11 + $0xa4] sm:$0x1]  ;;  %v5232_v11 = vld [vmem:[%s6577_s11 + $0x48] sm:$0xe] }
  0x78   : > { %v533_v44 = vor.u32 %v532_v21, %v528_v18  ;;  %v2822_v49 = vsel %vm6829_vm7, %v5246_v1, %v2821_v28  ;;  %v2823_v50 = vrot.slane %v2821_v28, 4  ;;  %v541_v51 = vshrl.u32 %v6913_v5, 16 }
  0x79   : > { %v524_v48 = vrot.slane %v523_v38, 4  ;;  %5682 = vmatprep.mubr.msk.bf16.mxu1 %vm686_vm3, %v4978_v42  ;;  %v544_v15 = vshll.u32 %v6913_v5, 16  ;;  %v550_v62 = vshll.u32 %v6925_v30, 16  ;;  %v554_v40 = vshrl.u32 %v6925_v30, 16 }
  0x7a   : > { %v534_v33 = vrot.slane %v533_v44, 4  ;;  %v2825_v56 = vsel %vm6829_vm7, %v2823_v50, %v2824_v47  ;;  %v543_v57 = vrot.slane %v541_v51, 4  ;;  %v560_v63 = vshll.u32 %v245_v60, 16 }
  0x7b   : > { %v529_v55 = vsel %vm6603_vm4, %v524_v48, %v528_v18  ;;  %v5263_v54 = vcombine.low %v2822_v49, %v2825_v56  ;;  %v546_v61 = vrot.slane %v544_v15, 5  ;;  %v552_v2 = vrot.slane %v550_v62, 5  ;;  %v6971_v56 = vld [vmem:[%s6577_s11 + $0xac] sm:$0xf] }
  0x7c   : > { %v539_v58 = vsel %vm6603_vm4, %v534_v33, %v538_v45  ;;  %v556_v7 = vrot.slane %v554_v40, 4  ;;  %v562_v41 = vrot.slane %v560_v63, 5  ;;  %v5247_v17 = vrot.slane %v5231_v26, 9  ;;  %v6966_v33 = vld [vmem:[%s6577_s11 + $0xa8] sm:$0xf] }
  0x7d   : > { %v4979_v6 = vcombine.low %v529_v55, %v539_v58  ;;  %5837 = vmatmul.mubr.msk.bf16.gmra.mrb[4].mxu0 %vm686_vm3, %v5263_v54  ;;  %v547_v14 = vor.u32 %v546_v61, %v543_v57  ;;  %v2828_v18 = vrot.slane %v6707_v20, 5  ;;  %v2831_v21 = vrot.slane %v6712_v34, 5  ;;  %v247_v61 = vld [vmem:[%s6577_s11 + $0xb0] sm:$0x1] }
  0x7e   : > { %v565_v25 = vshrl.u32 %v6934_v52, 16  ;;  %v557_v31 = vor.u32 %v556_v7, %v552_v2  ;;  %v568_v38 = vshll.u32 %v6934_v52, 16  ;;  %v574_v1 = vshll.u32 %v6945_v46, 16 }
  0x7f   : > { %5683 = vmatmul.mubr.msk.bf16.gmra.mrb[20].mxu1 %vm686_vm3, %v4979_v6  ;;  %v578_v28 = vshrl.u32 %v6945_v46, 16  ;;  %v548_v60 = vrot.slane %v547_v14, 4  ;;  %v2829_v42 = vsel %vm6829_vm7, %v5247_v17, %v2828_v18  ;;  %v2830_v20 = vrot.slane %v2828_v18, 4  ;;  %v6986_v14 = vld [vmem:[%s6577_s11 + $0xb4] sm:$0xf] }
  0x80   : > { %v567_v44 = vrot.slane %v565_v25, 4  ;;  %v558_v34 = vrot.slane %v557_v31, 4  ;;  %v570_v45 = vrot.slane %v568_v38, 5  ;;  %v576_v47 = vrot.slane %v574_v1, 5 }
  0x81   : > { %v580_v26 = vrot.slane %v578_v28, 4  ;;  %v553_v48 = vsel %vm6603_vm4, %v548_v60, %v552_v2  ;;  %v2832_v49 = vsel %vm6829_vm7, %v2830_v20, %v2831_v21  ;;  %v584_v50 = vshll.u32 %v246_v10, 16  ;;  %v5233_v2 = vld [vmem:[%s6577_s11 + $0x54] sm:$0xe] }
  0x82   : > { %v5248_v51 = vrot.slane %v5232_v11, 9  ;;  %v563_v15 = vsel %vm6603_vm4, %v558_v34, %v562_v41  ;;  %v5264_v62 = vcombine.low %v2829_v42, %v2832_v49  ;;  %v571_v40 = vor.u32 %v570_v45, %v567_v44  ;;  %v6995_v42 = vld [vmem:[%s6577_s11 + $0xb8] sm:$0xf]  ;;  %v248_v49 = vld [vmem:[%s6577_s11 + $0xbc] sm:$0x1] }
  0x83   : > { %v581_v55 = vor.u32 %v580_v26, %v576_v47  ;;  %v4980_v57 = vcombine.low %v553_v48, %v563_v15  ;;  %v586_v63 = vrot.slane %v584_v50, 5  ;;  %v2835_v58 = vrot.slane %v6730_v8, 5 }
  0x84   : > { %v2838_v54 = vrot.slane %v6738_v23, 5  ;;  %5840 = vmatprep.mubr.msk.bf16.mxu0 %vm686_vm3, %v5264_v62  ;;  %v572_v6 = vrot.slane %v571_v40, 4  ;;  %v589_v41 = vshrl.u32 %v6966_v33, 16  ;;  %v592_v17 = vshll.u32 %v6966_v33, 16 }
  0x85   : > { %v582_v7 = vrot.slane %v581_v55, 4  ;;  %5686 = vmatprep.mubr.msk.bf16.mxu1 %vm686_vm3, %v4980_v57  ;;  %v2836_v10 = vsel %vm6829_vm7, %v5248_v51, %v2835_v58  ;;  %v2837_v11 = vrot.slane %v2835_v58, 4  ;;  %v598_v8 = vshll.u32 %v6971_v56, 16  ;;  %v5234_v55 = vld [vmem:[%s6577_s11 + $0x60] sm:$0xe] }
  0x86   : > { %v602_v23 = vshrl.u32 %v6971_v56, 16  ;;  %v577_v18 = vsel %vm6603_vm4, %v572_v6, %v576_v47  ;;  %v591_v25 = vrot.slane %v589_v41, 4  ;;  %v594_v31 = vrot.slane %v592_v17, 5  ;;  %v5235_v6 = vld [vmem:[%s6577_s11 + $0x6c] sm:$0xe] }
  0x87   : > { %v587_v21 = vsel %vm6603_vm4, %v582_v7, %v586_v63  ;;  %v2839_v1 = vsel %vm6829_vm7, %v2837_v11, %v2838_v54  ;;  %v600_v28 = vrot.slane %v598_v8, 5  ;;  %v608_v34 = vshll.u32 %v247_v61, 16  ;;  %v5171_v11 = vld [vmem:[%s6577_s11 + $0x70] sm:$0xf]  ;;  %v5172_v8 = vld [vmem:[%s6577_s11 + $0x74] sm:$0x1] }
  0x88   : > { %v4981_v38 = vcombine.low %v577_v18, %v587_v21  ;;  %v604_v60 = vrot.slane %v602_v23, 4  ;;  %v5265_v20 = vcombine.low %v2836_v10, %v2839_v1  ;;  %v595_v44 = vor.u32 %v594_v31, %v591_v25 }
  0x89   : > { %v5249_v45 = vrot.slane %v5233_v2, 9  ;;  %v2842_v26 = vrot.slane %v6761_v4, 5  ;;  %v2845_v48 = vrot.slane %v6767_v12, 5  ;;  %v613_v50 = vshrl.u32 %v6986_v14, 16 }
  0x8a   : > { %5687 = vmatmul.mubr.msk.bf16.gmra.mrb[24].mxu1 %vm686_vm3, %v4981_v38  ;;  %v605_v47 = vor.u32 %v604_v60, %v600_v28  ;;  %5841 = vmatmul.mubr.msk.bf16.gmra.mrb[8].mxu0 %vm686_vm3, %v5265_v20  ;;  %v596_v51 = vrot.slane %v595_v44, 4  ;;  %v610_v15 = vrot.slane %v608_v34, 5  ;;  %v616_v62 = vshll.u32 %v6986_v14, 16 }
  0x8b   : > { %v622_v40 = vshll.u32 %v6995_v42, 16  ;;  %v2843_v4 = vsel %vm6829_vm7, %v5249_v45, %v2842_v26  ;;  %v2844_v12 = vrot.slane %v2842_v26, 4  ;;  %v615_v63 = vrot.slane %v613_v50, 4 }
  0x8c   : > { %v606_v57 = vrot.slane %v605_v47, 4  ;;  %v601_v58 = vsel %vm6603_vm4, %v596_v51, %v600_v28  ;;  %v618_v54 = vrot.slane %v616_v62, 5  ;;  %v626_v2 = vshrl.u32 %v6995_v42, 16  ;;  %v5236_v47 = vld [vmem:[%s6577_s11 + $0x78] sm:$0xe] }
  0x8d   : > { %v624_v61 = vrot.slane %v622_v40, 5  ;;  %v2846_v41 = vsel %vm6829_vm7, %v2844_v12, %v2845_v48  ;;  %v632_v17 = vshll.u32 %v248_v49, 16  ;;  %v5250_v10 = vrot.slane %v5234_v55, 9  ;;  %v6338_v51 = vld [vmem:[%s6577_s11] sm:$0xf] }
  0x8e   : > { %v611_v7 = vsel %vm6603_vm4, %v606_v57, %v610_v15  ;;  %v5266_v18 = vcombine.low %v2843_v4, %v2846_v41  ;;  %v619_v21 = vor.u32 %v618_v54, %v615_v63  ;;  %v628_v25 = vrot.slane %v626_v2, 4  ;;  %v7033_v15 = vld [vmem:[%s6577_s11 + $0x4] sm:$0xf]  ;;  %v7037_v40 = vld [vmem:[%s6577_s11 + $0x7c] sm:$0xf] }
  0x8f   : > { %v4982_v23 = vcombine.low %v601_v58, %v611_v7  ;;  %v634_v31 = vrot.slane %v632_v17, 5  ;;  %v2849_v38 = vrot.slane %v6791_v59, 5  ;;  %v2852_v1 = vrot.slane %v6798_v9, 5  ;;  %v7040_v55 = vld [vmem:[%s6577_s11 + $0x80] sm:$0x1] }
  0x90   : > { %v5251_v28 = vrot.slane %v5235_v6, 9  ;;  %5844 = vmatprep.mubr.msk.bf16.mxu0 %vm686_vm3, %v5266_v18  ;;  %v620_v60 = vrot.slane %v619_v21, 4  ;;  %v629_v20 = vor.u32 %v628_v25, %v624_v61  ;;  %v2856_v44 = vrot.slane %v5171_v11, 5  ;;  %v5177_v57 = vld [vmem:[%s6577_s11 + $0x88] sm:$0xf] }
  0x91   : > { %5690 = vmatprep.mubr.msk.bf16.mxu1 %vm686_vm3, %v4982_v23  ;;  %v2859_v34 = vrot.slane %v5172_v8, 5  ;;  %v2850_v45 = vsel %vm6829_vm7, %v5250_v10, %v2849_v38  ;;  %v2851_v59 = vrot.slane %v2849_v38, 4  ;;  %v5000_v62 = vcombine.low %v6338_v51, %v7033_v15  ;;  %v5178_v54 = vld [vmem:[%s6577_s11 + $0x8c] sm:$0x1]  ;;  %v5180_v17 = vld [vmem:[%s6577_s11 + $0x94] sm:$0xf] }
  0x92   : > { %v625_v9 = vsel %vm6603_vm4, %v620_v60, %v624_v61  ;;  %v630_v26 = vrot.slane %v629_v20, 4  ;;  %v2857_v48 = vsel %vm6829_vm7, %v5251_v28, %v2856_v44  ;;  %v2858_v49 = vrot.slane %v2856_v44, 4  ;;  %v5237_v61 = vld [vmem:[%s6577_s11 + $0x84] sm:$0xe]  ;;  %v5238_v23 = vld [vmem:[%s6577_s11 + $0x90] sm:$0xe] }
  0x93   : > { %v2853_v50 = vsel %vm6829_vm7, %v2851_v59, %v2852_v1  ;;  %v5252_v58 = vrot.slane %v5236_v47, 9  ;;  %v2863_v7 = vrot.slane %v7037_v40, 5  ;;  %v2866_v41 = vrot.slane %v7040_v55, 5  ;;  %v5181_v25 = vld [vmem:[%s6577_s11 + $0x98] sm:$0x1] }
  0x94   : > { %v635_v4 = vsel %vm6603_vm4, %v630_v26, %v634_v31  ;;  %v5267_v12 = vcombine.low %v2850_v45, %v2853_v50  ;;  %v2860_v63 = vsel %vm6829_vm7, %v2858_v49, %v2859_v34  ;;  %v5253_v10 = vrot.slane %v5237_v61, 9  ;;  %v5183_v31 = vld [vmem:[%s6577_s11 + $0xa0] sm:$0xf]  ;;  %v5184_v60 = vld [vmem:[%s6577_s11 + $0xa4] sm:$0x1] }
  0x95   : > { %v4983_v2 = vcombine.low %v625_v9, %v635_v4  ;;  %v5268_v6 = vcombine.low %v2857_v48, %v2860_v63  ;;  %v2870_v11 = vrot.slane %v5177_v57, 5  ;;  %v2873_v8 = vrot.slane %v5178_v54, 5  ;;  %v5239_v20 = vld [vmem:[%s6577_s11 + $0x9c] sm:$0xe]  ;;  %v6340_v44 = vld [vmem:[%s6577_s11 + $0xc] sm:$0xf] }
  0x96   : > { %5845 = vmatmul.mubr.msk.bf16.gmra.mrb[12].mxu0 %vm686_vm3, %v5267_v12  ;;  %v2864_v18 = vsel %vm6829_vm7, %v5252_v58, %v2863_v7  ;;  %v2865_v21 = vrot.slane %v2863_v7, 4  ;;  %v2877_v28 = vrot.slane %v5180_v17, 5  ;;  %v7067_v34 = vld [vmem:[%s6577_s11 + $0x10] sm:$0xf]  ;;  %v6342_v47 = vld [vmem:[%s6577_s11 + $0x18] sm:$0xf] }
  0x97   : > { %5691 = vmatmul.mubr.msk.bf16.gmra.mrb[28].mxu1 %vm686_vm3, %v4983_v2  ;;  %5848 = vmatprep.mubr.msk.bf16.mxu0 %vm686_vm3, %v5268_v6  ;;  %v2871_v38 = vsel %vm6829_vm7, %v5253_v10, %v2870_v11  ;;  %v2872_v1 = vrot.slane %v2870_v11, 4  ;;  %v5001_v45 = vcombine.low %v6340_v44, %v7067_v34  ;;  %v7074_v9 = vld [vmem:[%s6577_s11 + $0x1c] sm:$0xf]  ;;  %v5254_v48 = vrot.slane %v5238_v23, 9  ;;  %v5186_v57 = vld [vmem:[%s6577_s11 + $0xac] sm:$0xf] }
  0x98   : > { %5696 = vmatprep.mubr.msk.bf16.mxu1 %vm686_vm3, %v5000_v62  ;;  %v2867_v59 = vsel %vm6829_vm7, %v2865_v21, %v2866_v41  ;;  %v5002_v26 = vcombine.low %v6342_v47, %v7074_v9  ;;  %v2879_v51 = vrot.slane %v2877_v28, 4  ;;  %v2880_v62 = vrot.slane %v5181_v25, 5  ;;  %v6344_v54 = vld [vmem:[%s8352_s1 + $0x4] sm:$0x3]  ;;  %v5189_v2 = vld [vmem:[%s6577_s11 + $0xb8] sm:$0xf] }
  0x99   : > { %v5269_v49 = vcombine.low %v2864_v18, %v2867_v59  ;;  %v2874_v50 = vsel %vm6829_vm7, %v2872_v1, %v2873_v8  ;;  %v5255_v12 = vrot.slane %v5239_v20, 9  ;;  %v2884_v63 = vrot.slane %v5183_v31, 5  ;;  %v7089_v7 = vld [vmem:[%s8352_s1 + $0x6] sm:$0x3]  ;;  %v5187_v10 = vld [vmem:[%s6577_s11 + $0xb0] sm:$0x1] }
  0x9a   : > { %v5270_v4 = vcombine.low %v2871_v38, %v2874_v50  ;;  %v2887_v58 = vrot.slane %v5184_v60, 5  ;;  %v1454_v61 = vsel %vm735_vm0, %v6344_v54, 0  ;;  %v2878_v41 = vsel %vm6829_vm7, %v5254_v48, %v2877_v28  ;;  %v5240_v11 = vld [vmem:[%s6577_s11 + $0xa8] sm:$0xe]  ;;  %v5190_v25 = vld [vmem:[%s6577_s11 + $0xbc] sm:$0x1] }
  0x9b   : > { %v2886_v6 = vrot.slane %v2884_v63, 4  ;;  %v2881_v17 = vsel %vm6829_vm7, %v2879_v51, %v2880_v62  ;;  %v2891_v8 = vrot.slane %v5186_v57, 5  ;;  %v2885_v23 = vsel %vm6829_vm7, %v5255_v12, %v2884_v63  ;;  %v5241_v31 = vld [vmem:[%s6577_s11 + $0xb4] sm:$0xe]  ;;  %v6345_v38 = vld [vmem:[%s6577_s11 + $0x24] sm:$0xf] }
  0x9c   : > { %v2898_v21 = vrot.slane %v5189_v2, 5  ;;  %v7110_v1 = vld [vmem:[%s6577_s11 + $0x28] sm:$0xf]  ;;  %v5271_v60 = vcombine.low %v2878_v41, %v2881_v17  ;;  %v5256_v44 = vrot.slane %v5240_v11, 9  ;;  %v2894_v59 = vrot.slane %v5187_v10, 5 }
  0x9d   : > { %v2888_v18 = vsel %vm6829_vm7, %v2886_v6, %v2887_v58  ;;  %v5003_v28 = vcombine.low %v6345_v38, %v7110_v1  ;;  %v6347_v47 = vld [vmem:[%s6577_s11 + $0x30] sm:$0xf]  ;;  %v2901_v51 = vrot.slane %v5190_v25, 5  ;;  %v5192_v62 = vld [vmem:[%s6577_s11 + $0xc4] sm:$0xf]  ;;  %v2286_v25 = vshrl.u32 %v7037_v40, 16 }
  0x9e   : > { %5849 = vmatmul.mubr.msk.bf16.gmra.mrb[16].mxu0 %vm686_vm3, %v5269_v49  ;;  %v5272_v20 = vcombine.low %v2885_v23, %v2888_v18  ;;  %v5257_v49 = vrot.slane %v5241_v31, 9  ;;  %v2900_v50 = vrot.slane %v2898_v21, 4  ;;  %v2892_v57 = vsel %vm6829_vm7, %v5256_v44, %v2891_v8  ;;  %v5242_v12 = vld [vmem:[%s6577_s11 + $0xc0] sm:$0xe]  ;;  %v6349_v41 = vld [vmem:[%s6577_s11 + $0x3c] sm:$0xf] }
  0x9f   : > { %5697 = vmatmul.mubr.msk.bf16.vlgmr.msra.gmra.mrb[0].mxu1 %vm686_vm3, %v5001_v45  ;;  %5852 = vmatprep.mubr.msk.bf16.mxu0 %vm686_vm3, %v5270_v4  ;;  %v2893_v45 = vrot.slane %v2891_v8, 4  ;;  %v2905_v63 = vrot.slane %v5192_v62, 5  ;;  %v5258_v6 = vrot.slane %v5242_v12, 9  ;;  %v7135_v17 = vld [vmem:[%s6577_s11 + $0x40] sm:$0xf]  ;;  %v5006_v18 = vcombine.low %v6742_v27, %v6745_v36  ;;  %v6301_v62 = vld [vmem:[%s6577_s11 + $0x24] sm:$0xff]  }
  0xa0   : > { %5729 = vmatpush3.bf16.msra.mxu1 %v1454_v61  ;;  %5700 = vmatprep.mubr.msk.bf16.mxu1 %vm686_vm3, %v5002_v26  ;;  %v7115_v26 = vld [vmem:[%s6577_s11 + $0x34] sm:$0xf]  ;;  %v2899_v58 = vsel %vm6829_vm7, %v5257_v49, %v2898_v21  ;;  %v2902_v54 = vsel %vm6829_vm7, %v2900_v50, %v2901_v51  ;;  %v5193_v61 = vld [vmem:[%s6577_s11 + $0xc8] sm:$0x1]  ;;  %v5005_v10 = vcombine.low %v6349_v41, %v7135_v17  ;;  %v2282_v21 = vshll.u32 %v7037_v40, 16 }
  0xa1   : > { %6227 = vmatprep.subr.msk.bf16.mxu1 %vm735_vm0, %v7089_v7  ;;  %v5004_v48 = vcombine.low %v6347_v47, %v7115_v26  ;;  %v2895_v4 = vsel %vm6829_vm7, %v2893_v45, %v2894_v59  ;;  %v5274_v11 = vcombine.low %v2899_v58, %v2902_v54  ;;  %v2907_v8 = vrot.slane %v2905_v63, 4  ;;  %v1192_v45 = vld [vmem:[%s6577_s11] sm:$0xe]  ;;  %v1193_v59 = vld [vmem:[%s6577_s11 + $0xc] sm:$0xe] }
  0xa2   : > { %v5273_v2 = vcombine.low %v2892_v57, %v2895_v4  ;;  %v2908_v23 = vrot.slane %v5193_v61, 5  ;;  %v2906_v31 = vsel %vm6829_vm7, %v5258_v6, %v2905_v63  ;;  %v7150_v27 = vrot.slane %v2282_v21, 5  ;;  %v1196_v41 = vld [vmem:[%s6577_s11 + $0x30] sm:$0xe] }
  0xa3   : > { %v2288_v36 = vrot.slane %v2286_v25, 4  ;;  %v5008_v44 = vcombine.low %v6802_v19, %v6808_v35  ;;  %v2292_v47 = vshll.u32 %v7040_v55, 16  ;;  %v5032_v19 = vrot.slane %v1192_v45, 9 }
  0xa4   : > { %v2909_v38 = vsel %vm6829_vm7, %v2907_v8, %v2908_v23  ;;  %8375 = vst [vmem:[#allocation7_spill] sm:$0xff] %v7150_v27  ;;  %v5033_v35 = vrot.slane %v1193_v59, 9  ;;  %v1259_v4 = vrot.slane %v7074_v9, 5  ;;  %v1266_v12 = vrot.slane %v7110_v1, 5  ;;  %v1197_v8 = vld [vmem:[%s6577_s11 + $0x3c] sm:$0xe] }
  0xa5   : > { %v5275_v40 = vcombine.low %v2906_v31, %v2909_v38  ;;  %v2289_v49 = vor.u32 %v2288_v36, %v7150_v27  ;;  %v7170_v51 = vrot.slane %v2292_v47, 5  ;;  %v5009_v58 = vcombine.low %v6823_v0, %v6836_v29  ;;  %v1198_v31 = vld [vmem:[%s6577_s11 + $0x48] sm:$0xe]  ;;  %v6355_v59 = vld [vmem:[%s6577_s11 + $0x38] sm:$0x1] }
  0xa6   : > { %5853 = vmatmul.mubr.msk.bf16.gmra.mrb[20].mxu0 %vm686_vm3, %v5271_v60  ;;  %v5007_v60 = vcombine.low %v6771_v24, %v6777_v37  ;;  %v6352_v24 = vld [vmem:[%s6577_s11 + $0x14] sm:$0x1]  ;;  %v4094_v54 = vsel %vm735_vm0, %v6894_v22, 0  ;;  %v5010_v61 = vcombine.low %v6855_v53, %v6862_v16  ;;  %v5011_v6 = vcombine.low %v6881_v39, %v6889_v43  ;;  %v6353_v16 = vld [vmem:[%s6577_s11 + $0x20] sm:$0x1] }
  0xa7   : > { %5701 = vmatmul.mubr.msk.bf16.gmra.mrb[4].mxu1 %vm686_vm3, %v5003_v28  ;;  %5856 = vmatprep.mubr.msk.bf16.mxu0 %vm686_vm3, %v5272_v20  ;;  %v1252_v28 = vrot.slane %v7067_v34, 5  ;;  %v6299_v20 = vld [vmem:[%s6577_s11 + $0x18] sm:$0xff]   ;;  %v6351_v34 = vld [vmem:[%s6577_s11 + $0x8] sm:$0x1]  ;;  %v1255_v37 = vrot.slane %v6352_v24, 5  ;;  %8376 = vst [vmem:[#allocation8_spill] sm:$0xff] %v7170_v51  ;;  %v5012_v9 = vcombine.low %v6913_v5, %v6925_v30 }
  0xa8   : > { %5704 = vmatprep.mubr.msk.bf16.mxu1 %vm686_vm3, %v5004_v48  ;;  %v1245_v48 = vrot.slane %v7033_v15, 5  ;;  %v1248_v50 = vrot.slane %v6351_v34, 5  ;;  %v1194_v15 = vld [vmem:[%s6577_s11 + $0x18] sm:$0xe]  ;;  %v7175_v63 = vrot.slane %v2289_v49, 4  ;;  %v1262_v22 = vrot.slane %v6353_v16, 5 }
  0xa9   : > { %v1254_v55 = vrot.slane %v1252_v28, 4  ;;  %v5034_v1 = vrot.slane %v1194_v15, 9  ;;  %v7197_v29 = vsel %vm6829_vm7, %v5033_v35, %v1252_v28  ;;  %v1268_v25 = vrot.slane %v1266_v12, 4  ;;  %v5357_v24 = vld [vmem:[%s6577_s11 + $0x18] sm:$0xf] }
  0xaa   : > { %v1247_v57 = vrot.slane %v1245_v48, 4  ;;  %8377 = vst [vmem:[#allocation9_spill] sm:$0xff] %v7175_v63  ;;  %v7193_v0 = vsel %vm6829_vm7, %v5032_v19, %v1245_v48  ;;  %v1276_v47 = vrot.slane %v6355_v59, 5  ;;  %v7234_v49 = vsel %vm735_vm0, %v7089_v7, 0  ;;  %v5358_v7 = vld [vmem:[%s6577_s11 + $0x1c] sm:$0xf] }
  0xab   : > { %v7201_v53 = vsel %vm6829_vm7, %v1254_v55, %v1255_v37  ;;  %v7238_v34 = vsel %vm6829_vm7, %v5034_v1, %v1259_v4  ;;  %v6305_v37 = vld [vmem:[%s6577_s11 + $0x3c] sm:$0xff]   ;;  %v5037_v35 = vrot.slane %v1197_v8, 9  ;;  %v6356_v55 = vld [vmem:[%s6577_s11 + $0x44] sm:$0x1]  ;;  %v3615_v8 = vshll.u32 %v5357_v24, 16 }
  0xac   : > { %v7212_v23 = vsel %vm6829_vm7, %v1247_v57, %v1248_v50  ;;  %v1199_v50 = vld [vmem:[%s6577_s11 + $0x54] sm:$0xe]  ;;  %v1283_v15 = vrot.slane %v6356_v55, 5  ;;  %v5361_v39 = vld [vmem:[%s6577_s11 + $0x28] sm:$0xf] }
  0xad   : > { %v6363_v5 = vld [vmem:[%s6577_s11 + $0x70] sm:$0xf] }
  0xae   : > { %5857 = vmatmul.mubr.msk.bf16.gmra.mrb[24].mxu0 %vm686_vm3, %v5273_v2  ;;  %v1195_v2 = vld [vmem:[%s6577_s11 + $0x24] sm:$0xe]  ;;  %v1308_v30 = vrot.slane %v6363_v5, 5 }
  0xaf   : > { %5705 = vmatmul.mubr.msk.bf16.gmra.mrb[8].mxu1 %vm686_vm3, %v5005_v10  ;;  %5860 = vmatprep.mubr.msk.bf16.mxu0 %vm686_vm3, %v5274_v11  ;;  %v1273_v10 = vrot.slane %v7115_v26, 5  ;;  %v6303_v11 = vld [vmem:[%s6577_s11 + $0x30] sm:$0xff]   ;;  %v5035_v21 = vrot.slane %v1195_v2, 9 }
  0xb0   : > { %5708 = vmatprep.mubr.msk.bf16.mxu1 %vm686_vm3, %v5006_v18  ;;  %v7208_v26 = vld [vmem:[%s8352_s1 + $0x10] sm:$0x3]  ;;  %v1261_v18 = vrot.slane %v1259_v4, 4  ;;  %v1310_v48 = vrot.slane %v1308_v30, 4 }
  0xb1   : > { %v1275_v45 = vrot.slane %v1273_v10, 4  ;;  %v7245_v19 = vsel %vm6829_vm7, %v5035_v21, %v1266_v12  ;;  %v3625_v21 = vshrl.u32 %v5358_v7, 16 }
  0xb2   : > { %v7254_v4 = vsel %vm6829_vm7, %v1261_v18, %v1262_v22  ;;  %v3612_v22 = vshrl.u32 %v5357_v24, 16  ;;  %v3621_v18 = vshll.u32 %v5358_v7, 16  ;;  %v5360_v24 = vld [vmem:[%s6577_s11 + $0x24] sm:$0xf] }
  0xb3   : > { %v7267_v1 = vsel %vm6829_vm7, %v1275_v45, %v1276_v47 }
  0xb4   : > { %v3614_v43 = vrot.slane %v3612_v22, 4  ;;  %v7309_v7 = vrot.slane %v3621_v18, 5  ;;  %v3639_v22 = vshll.u32 %v5360_v24, 16  ;;  %v3649_v18 = vshrl.u32 %v5361_v39, 16 }
  0xb6   : > { %5861 = vmatmul.mubr.msk.bf16.gmra.mrb[28].mxu0 %vm686_vm3, %v5275_v40  ;;  %v6354_v40 = vld [vmem:[%s6577_s11 + $0x2c] sm:$0x1]  ;;  %v3641_v27 = vrot.slane %v3639_v22, 5 }
  0xb7   : > { %5709 = vmatmul.mubr.msk.bf16.gmra.mrb[12].mxu1 %vm686_vm3, %v5007_v60  ;;  %5866 = vmatprep.mubr.msk.bf16.mxu0 %vm686_vm3, %v6299_v20  ;;  %v1269_v28 = vrot.slane %v6354_v40, 5  ;;  %v1280_v60 = vrot.slane %v7135_v17, 5  ;;  %v6359_v40 = vld [vmem:[%s6577_s11 + $0x50] sm:$0x1]  ;;  %v6364_v17 = vld [vmem:[%s6577_s11 + $0x74] sm:$0x1] }
  0xb8   : > { %5712 = vmatprep.mubr.msk.bf16.mxu1 %vm686_vm3, %v5008_v44  ;;  %v5036_v44 = vrot.slane %v1196_v41, 9  ;;  %v5039_v41 = vrot.slane %v1199_v50, 9  ;;  %v1200_v50 = vld [vmem:[%s6577_s11 + $0x60] sm:$0xe]  ;;  %v5362_v20 = vld [vmem:[%s6577_s11 + $0x2c] sm:$0x1] }
  0xb9   : > { %v1282_v12 = vrot.slane %v1280_v60, 4  ;;  %v7280_v45 = vsel %vm6829_vm7, %v5037_v35, %v1280_v60  ;;  %v6360_v35 = vld [vmem:[%s6577_s11 + $0x5c] sm:$0x1] }
  0xba   : > { %v7263_v2 = vsel %vm6829_vm7, %v5036_v44, %v1273_v10  ;;  %v1297_v55 = vrot.slane %v6360_v35, 5  ;;  %v1201_v35 = vld [vmem:[%s6577_s11 + $0x6c] sm:$0xe] }
  0xbb   : > { %v7284_v59 = vsel %vm6829_vm7, %v1282_v12, %v1283_v15  ;;  %v6361_v15 = vld [vmem:[%s6577_s11 + $0x64] sm:$0xf]  ;;  %v3627_v12 = vrot.slane %v3625_v21, 4  ;;  %v5041_v5 = vrot.slane %v1201_v35, 9 }
  0xbc   : > { %v6311_v21 = vld [vmem:[%s6577_s11 + $0x60] sm:$0xff]  }
  0xbe   : > { %5867 = vmatmul.mubr.msk.bf16.vlgmr.msra.gmra.mrb[0].mxu0 %vm686_vm3, %v6301_v62  ;;  %v6357_v62 = vld [vmem:[%s6577_s11 + $0x4c] sm:$0xf] }
  0xbf   : > { %5713 = vmatmul.mubr.msk.bf16.gmra.mrb[16].mxu1 %vm686_vm3, %v5009_v58  ;;  %5899 = vmatpush3.bf16.msra.mxu0 %v4094_v54  ;;  %v1287_v57 = vrot.slane %v6357_v62, 5  ;;  %v7258_v58 = vsel %vm6829_vm7, %v1268_v25, %v1269_v28  ;;  %v5038_v54 = vrot.slane %v1198_v31, 9  ;;  %v1290_v28 = vrot.slane %v6359_v40, 5 }
  0xc0   : > { %5716 = vmatprep.mubr.msk.bf16.mxu1 %vm686_vm3, %v5010_v61  ;;  %5870 = vmatprep.mubr.msk.bf16.mxu0 %vm686_vm3, %v6303_v11  ;;  %v6307_v61 = vld [vmem:[%s6577_s11 + $0x48] sm:$0xff]   ;;  %v6358_v11 = vld [vmem:[%s6577_s11 + $0x58] sm:$0xf]  ;;  %v1301_v62 = vrot.slane %v6361_v15, 5  ;;  %v5364_v15 = vld [vmem:[%s6577_s11 + $0x34] sm:$0xf] }
  0xc1   : > { %6233 = vmatprep.subr.msk.bf16.mxu0 %vm735_vm0, %v7208_v26  ;;  %v1294_v16 = vrot.slane %v6358_v11, 5  ;;  %v1289_v31 = vrot.slane %v1287_v57, 4  ;;  %v7288_v47 = vsel %vm6829_vm7, %v5038_v54, %v1287_v57  ;;  %v5359_v57 = vld [vmem:[%s6577_s11 + $0x20] sm:$0x1]  ;;  %v5363_v54 = vld [vmem:[%s6577_s11 + $0x30] sm:$0xf] }
  0xc2   : > { %v5040_v11 = vrot.slane %v1200_v50, 9  ;;  %v3663_v50 = vshll.u32 %v5363_v54, 16  ;;  %v3631_v25 = vshll.u32 %v5359_v57, 16  ;;  %v3669_v36 = vshll.u32 %v5364_v15, 16 }
  0xc3   : > { %v7299_v60 = vsel %vm6829_vm7, %v5039_v41, %v1294_v16  ;;  %v7315_v41 = vsel %vm6829_vm7, %v1289_v31, %v1290_v28  ;;  %v1303_v31 = vrot.slane %v1301_v62, 4  ;;  %v3660_v28 = vshrl.u32 %v5363_v54, 16 }
  0xc4   : > { %v7357_v35 = vrot.slane %v3669_v36, 5 }
  0xc6   : > { %5871 = vmatmul.mubr.msk.bf16.gmra.mrb[4].mxu0 %vm686_vm3, %v6305_v37  ;;  %v1296_v37 = vrot.slane %v1294_v16, 4  ;;  %v6362_v16 = vld [vmem:[%s6577_s11 + $0x68] sm:$0x1] }
  0xc7   : > { %5717 = vmatmul.mubr.msk.bf16.gmra.mrb[20].mxu1 %vm686_vm3, %v5011_v6  ;;  %5874 = vmatprep.mubr.msk.bf16.mxu0 %vm686_vm3, %v6307_v61  ;;  %v3617_v6 = vrot.slane %v3615_v8, 5  ;;  %v6309_v61 = vld [vmem:[%s6577_s11 + $0x54] sm:$0xff]   ;;  %v1304_v40 = vrot.slane %v6362_v16, 5  ;;  %v3645_v8 = vshll.u32 %v5361_v39, 16  ;;  %v3628_v16 = vor.u32 %v3627_v12, %v7309_v7 }
  0xc8   : > { %5720 = vmatprep.mubr.msk.bf16.mxu1 %vm686_vm3, %v5012_v9  ;;  %v3636_v9 = vshrl.u32 %v5360_v24, 16  ;;  %v7324_v44 = vsel %vm6829_vm7, %v1296_v37, %v1297_v55  ;;  %v1311_v24 = vrot.slane %v6364_v17, 5  ;;  %v3673_v39 = vshrl.u32 %v5364_v15, 16 }
  0xc9   : > { %v3618_v10 = vor.u32 %v3617_v6, %v3614_v43  ;;  %v7330_v37 = vrot.slane %v3645_v8, 5  ;;  %v3651_v55 = vrot.slane %v3649_v18, 4  ;;  %v8378_v43 = vcombine.low %v6934_v52, %v6945_v46  ;;  %v6365_v8 = vld [vmem:[%s6577_s11 + $0x7c] sm:$0xf]  ;;  %v7366_v18 = vld [vmem:[%s6577_s11 + $0x38] sm:$0x1] }
  0xca   : > { %v3638_v38 = vrot.slane %v3636_v9, 4  ;;  %v7339_v17 = vsel %vm6829_vm7, %v5040_v11, %v1301_v62  ;;  %v7343_v57 = vsel %vm6829_vm7, %v1303_v31, %v1304_v40  ;;  %v3662_v6 = vrot.slane %v3660_v28, 4  ;;  %8380 = vst [vmem:[#allocation10_spill] sm:$0xff] %v7366_v18 }
  0xcb   : > { %v3665_v12 = vrot.slane %v3663_v50, 5  ;;  %v8379_v52 = vcombine.low %v6966_v33, %v6971_v56  ;;  %v3619_v46 = vrot.slane %v3618_v10, 4  ;;  %v3629_v54 = vrot.slane %v3628_v16, 4  ;;  %v6313_v33 = vld [vmem:[%s6577_s11 + $0x6c] sm:$0xff]   ;;  %v1203_v16 = vld [vmem:[%s6577_s11 + $0x84] sm:$0xe] }
  0xcc   : > { %v3655_v62 = vshll.u32 %v5362_v20, 16  ;;  %v7351_v11 = vsel %vm6829_vm7, %v5041_v5, %v1308_v30  ;;  %v7355_v40 = vsel %vm6829_vm7, %v1310_v48, %v1311_v24  ;;  %v3675_v9 = vrot.slane %v3673_v39, 4  ;;  %v6314_v48 = vld [vmem:[%s6577_s11 + $0x78] sm:$0xff]  }
  0xcd   : > { %v3642_v10 = vor.u32 %v3641_v27, %v3638_v38  ;;  %v3652_v20 = vor.u32 %v3651_v55, %v7330_v37  ;;  %v1315_v30 = vrot.slane %v6365_v8, 5  ;;  %v3666_v38 = vor.u32 %v3665_v12, %v3662_v6  ;;  %v5366_v5 = vld [vmem:[%s6577_s11 + $0x3c] sm:$0xf] }
  0xce   : > { %5875 = vmatmul.mubr.msk.bf16.gmra.mrb[8].mxu0 %vm686_vm3, %v6309_v61  ;;  %v3633_v61 = vrot.slane %v3631_v25, 5  ;;  %v1202_v25 = vld [vmem:[%s6577_s11 + $0x78] sm:$0xe]  ;;  %v7382_v50 = vrot.slane %v3655_v62, 5  ;;  %v3676_v39 = vor.u32 %v3675_v9, %v7357_v35  ;;  %v3679_v55 = vshll.u32 %v7366_v18, 16 }
  0xcf   : > { %5721 = vmatmul.mubr.msk.bf16.gmra.mrb[24].mxu1 %vm686_vm3, %v8378_v43  ;;  %5878 = vmatprep.mubr.msk.bf16.mxu0 %vm686_vm3, %v6311_v21  ;;  %v3624_v21 = vsel %vm6603_vm4, %v3619_v46, %v7309_v7  ;;  %v5042_v24 = vrot.slane %v1202_v25, 9  ;;  %v6366_v43 = vld [vmem:[%s6577_s11 + $0x88] sm:$0xf]  ;;  %v7390_v7 = vld [vmem:[%s6577_s11 + $0x40] sm:$0xf]  ;;  %v3643_v12 = vrot.slane %v3642_v10, 4  ;;  %v8382_v62 = vcombine.low %v6986_v14, %v6995_v42 }
  0xd0   : > { %5724 = vmatprep.mubr.msk.bf16.mxu1 %vm686_vm3, %v8379_v52  ;;  %v3634_v31 = vsel %vm6603_vm4, %v3629_v54, %v3633_v61  ;;  %v1322_v6 = vrot.slane %v6366_v43, 5  ;;  %8381 = vst [vmem:[#allocation11_spill] sm:$0xff] %v7390_v7  ;;  %v3653_v52 = vrot.slane %v3652_v20, 4  ;;  %v1317_v46 = vrot.slane %v1315_v30, 4  ;;  %v6367_v54 = vld [vmem:[%s6577_s11 + $0x80] sm:$0x1] }
  0xd1   : > { %v1318_v61 = vrot.slane %v6367_v54, 5  ;;  %v3667_v9 = vrot.slane %v3666_v38, 4  ;;  %v5043_v25 = vrot.slane %v1203_v16, 9  ;;  %v3684_v8 = vshrl.u32 %v5366_v5, 16  ;;  %v6315_v10 = vld [vmem:[%s6577_s11 + $0x84] sm:$0xff]  }
  0xd2   : > { %v3687_v43 = vshll.u32 %v5366_v5, 16  ;;  %v7404_v20 = vcombine.low %v3624_v21, %v3634_v31  ;;  %v7408_v14 = vsel %vm735_vm0, %v7208_v26, 0  ;;  %v3697_v38 = vshrl.u32 %v7390_v7, 16  ;;  %v6316_v21 = vld [vmem:[%s6577_s11 + $0x90] sm:$0xff]   ;;  %v6372_v18 = vld [vmem:[%s6577_s11 + $0xa0] sm:$0xf] }
  0xd3   : > { %v3677_v16 = vrot.slane %v3676_v39, 4  ;;  %v3681_v5 = vrot.slane %v3679_v55, 5  ;;  %v1324_v54 = vrot.slane %v1322_v6, 4  ;;  %v3648_v31 = vsel %vm6603_vm4, %v3643_v12, %v7330_v37 }
  0xd4   : > { %v3658_v26 = vsel %vm6603_vm4, %v3653_v52, %v7382_v50  ;;  %v7423_v39 = vsel %vm6829_vm7, %v5042_v24, %v1315_v30  ;;  %v7427_v55 = vsel %vm6829_vm7, %v1317_v46, %v1318_v61  ;;  %v3672_v37 = vsel %vm6603_vm4, %v3667_v9, %v7357_v35  ;;  %v5372_v30 = vld [vmem:[%s6577_s11 + $0x54] sm:$0xf]  ;;  %v7444_v24 = vld [vmem:[%s6577_s11 + $0x58] sm:$0xf]  ;;  %v7449_v61 = vld [vmem:[%s6577_s11 + $0x90] sm:$0xe] }
  0xd5   : > { %v7440_v12 = vsel %vm6829_vm7, %v5043_v25, %v1322_v6  ;;  %v3686_v50 = vrot.slane %v3684_v8, 4  ;;  %v3689_v52 = vrot.slane %v3687_v43, 5  ;;  %v3699_v46 = vrot.slane %v3697_v38, 4 }
  0xd6   : > { %5879 = vmatmul.mubr.msk.bf16.gmra.mrb[12].mxu0 %vm686_vm3, %v6313_v33  ;;  %v8383_v33 = vcombine.low %v7193_v0, %v7212_v23  ;;  %v6368_v0 = vld [vmem:[%s6577_s11 + $0x8c] sm:$0x1]  ;;  %v3682_v36 = vsel %vm6603_vm4, %v3677_v16, %v3681_v5  ;;  %v3732_v25 = vshrl.u32 %v5372_v30, 16  ;;  %v3735_v8 = vshll.u32 %v5372_v30, 16 }
  0xd7   : > { %5725 = vmatmul.mubr.msk.bf16.gmra.mrb[28].mxu1 %vm686_vm3, %v8382_v62  ;;  %5882 = vmatprep.mubr.msk.bf16.mxu0 %vm686_vm3, %v6314_v48  ;;  %v3693_v48 = vshll.u32 %v7390_v7, 16  ;;  %v1325_v23 = vrot.slane %v6368_v0, 5  ;;  %v5369_v62 = vld [vmem:[%s6577_s11 + $0x48] sm:$0xf]  ;;  %v7433_v0 = vld [vmem:[%s6577_s11 + $0x4c] sm:$0xf]  ;;  %v8385_v38 = vcombine.low %v7197_v29, %v7201_v53  ;;  %v7467_v16 = vcombine.low %v3648_v31, %v3658_v26 }
  0xd8   : > { %5730 = vmatprep.mubr.msk.bf16.mxu1 %vm686_vm3, %v8383_v33  ;;  %v7430_v33 = vld [vmem:[%s6577_s11 + $0x44] sm:$0x1]  ;;  %v3708_v27 = vshrl.u32 %v5369_v62, 16  ;;  %v3711_v15 = vshll.u32 %v5369_v62, 16  ;;  %v3717_v6 = vshll.u32 %v7433_v0, 16  ;;  %v3721_v9 = vshrl.u32 %v7433_v0, 16 }
  0xd9   : > { %8384 = vst [vmem:[#allocation12_spill] sm:$0xff] %v7430_v33  ;;  %v7446_v28 = vrot.slane %v3693_v48, 5  ;;  %v7455_v35 = vsel %vm6829_vm7, %v1324_v54, %v1325_v23  ;;  %v3741_v43 = vshll.u32 %v7444_v24, 16  ;;  %v3745_v48 = vshrl.u32 %v7444_v24, 16  ;;  %v5375_v31 = vld [vmem:[%s6577_s11 + $0x60] sm:$0xf] }
  0xda   : > { %v3703_v5 = vshll.u32 %v7430_v33, 16  ;;  %v5044_v54 = vrot.slane %v7449_v61, 9  ;;  %v8386_v23 = vcombine.low %v7238_v34, %v7254_v4  ;;  %v7478_v29 = vcombine.low %v3672_v37, %v3682_v36  ;;  %v6317_v26 = vld [vmem:[%s6577_s11 + $0x9c] sm:$0xff]   ;;  %v6318_v30 = vld [vmem:[%s6577_s11 + $0xa8] sm:$0xff]  }
  0xdb   : > { %v3690_v53 = vor.u32 %v3689_v52, %v3686_v50  ;;  %v3710_v62 = vrot.slane %v3708_v27, 4  ;;  %v7489_v34 = vrot.slane %v3717_v6, 5  ;;  %v3723_v4 = vrot.slane %v3721_v9, 4  ;;  %v6369_v36 = vld [vmem:[%s8352_s1 + $0x8] sm:$0x3] }
  0xdc   : > { %v3734_v27 = vrot.slane %v3732_v25, 4  ;;  %v3737_v37 = vrot.slane %v3735_v8, 5  ;;  %v7498_v50 = vrot.slane %v3741_v43, 5  ;;  %v3747_v52 = vrot.slane %v3745_v48, 4  ;;  %v6370_v6 = vld [vmem:[%s6577_s11 + $0x94] sm:$0xf] }
  0xdd   : > { %v7504_v9 = vld [vmem:[%s6577_s11 + $0x64] sm:$0xf]  ;;  %v3756_v61 = vshrl.u32 %v5375_v31, 16  ;;  %v7506_v22 = vrot.slane %v3690_v53, 4  ;;  %v1336_v25 = vrot.slane %v6372_v18, 5  ;;  %v3724_v43 = vor.u32 %v3723_v4, %v7489_v34 }
  0xde   : > { %5883 = vmatmul.mubr.msk.bf16.gmra.mrb[16].mxu0 %vm686_vm3, %v6315_v10  ;;  %8387 = vst [vmem:[#allocation13_spill] sm:$0xff] %v7504_v9  ;;  %v3759_v10 = vshll.u32 %v5375_v31, 16  ;;  %v3738_v31 = vor.u32 %v3737_v37, %v3734_v27  ;;  %v3748_v53 = vor.u32 %v3747_v52, %v7498_v50  ;;  %v8388_v18 = vcombine.low %v7245_v19, %v7258_v58  ;;  %v6319_v37 = vld [vmem:[%s6577_s11 + $0xb4] sm:$0xff]  }
  0xdf   : > { %5731 = vmatmul.mubr.msk.bf16.vlgmr.msra.gmra.mrb[0].mxu1 %vm686_vm3, %v8385_v38  ;;  %5886 = vmatprep.mubr.msk.bf16.mxu0 %vm686_vm3, %v6316_v21  ;;  %v3713_v21 = vrot.slane %v3711_v15, 5  ;;  %v7487_v38 = vld [vmem:[%s6577_s11 + $0x50] sm:$0x1]  ;;  %v7496_v15 = vld [vmem:[%s6577_s11 + $0x5c] sm:$0x1]  ;;  %v8389_v27 = vcombine.low %v7263_v2, %v7267_v1  ;;  %v1338_v52 = vrot.slane %v1336_v25, 4 }
  0xe0   : > { %5763 = vmatpush3.bf16.msra.mxu1 %v7234_v49  ;;  %5734 = vmatprep.mubr.msk.bf16.mxu1 %vm686_vm3, %v8386_v23  ;;  %v3700_v49 = vor.u32 %v3699_v46, %v7446_v28  ;;  %v7500_v46 = vrot.slane %v3703_v5, 5  ;;  %v1329_v23 = vrot.slane %v6370_v6, 5  ;;  %v3727_v48 = vshll.u32 %v7487_v38, 16  ;;  %v1205_v5 = vld [vmem:[%s6577_s11 + $0x9c] sm:$0xe] }
  0xe1   : > { %6229 = vmatprep.subr.msk.bf16.mxu1 %vm735_vm0, %v6369_v36  ;;  %v6371_v36 = vld [vmem:[%s6577_s11 + $0x98] sm:$0x1]  ;;  %v3714_v7 = vor.u32 %v3713_v21, %v3710_v62  ;;  %v3751_v6 = vshll.u32 %v7496_v15, 16  ;;  %v3769_v62 = vshrl.u32 %v7504_v9, 16  ;;  %v3761_v4 = vrot.slane %v3759_v10, 5 }
  0xe2   : > { %v1332_v33 = vrot.slane %v6371_v36, 5  ;;  %v3701_v8 = vrot.slane %v3700_v49, 4  ;;  %v3765_v36 = vshll.u32 %v7504_v9, 16  ;;  %v7525_v21 = vsel %vm6829_vm7, %v5044_v54, %v1329_v23  ;;  %v7536_v2 = vld [vmem:[%s6577_s11 + $0x68] sm:$0x1] }
  0xe3   : > { %v3758_v49 = vrot.slane %v3756_v61, 4  ;;  %v3715_v19 = vrot.slane %v3714_v7, 4  ;;  %v5045_v58 = vrot.slane %v1205_v5, 9  ;;  %v3725_v3 = vrot.slane %v3724_v43, 4  ;;  %8390 = vst [vmem:[#allocation14_spill] sm:$0xff] %v7536_v2  ;;  %v6320_v5 = vld [vmem:[%s6577_s11 + $0xc0] sm:$0xff]  }
  0xe4   : > { %v3729_v54 = vrot.slane %v3727_v48, 5  ;;  %v3753_v63 = vrot.slane %v3751_v6, 5  ;;  %v1343_v61 = vrot.slane %v6971_v56, 5  ;;  %v3739_v10 = vrot.slane %v3738_v31, 4  ;;  %v1207_v31 = vld [vmem:[%s6577_s11 + $0xb4] sm:$0xe] }
  0xe5   : > { %v3749_v51 = vrot.slane %v3748_v53, 4  ;;  %v7538_v1 = vrot.slane %v3765_v36, 5  ;;  %v3771_v7 = vrot.slane %v3769_v62, 4  ;;  %v3696_v43 = vsel %vm6603_vm4, %v7506_v22, %v7446_v28  ;;  %v6374_v62 = vld [vmem:[%s6577_s11 + $0xb0] sm:$0x1] }
  0xe6   : > { %5887 = vmatmul.mubr.msk.bf16.gmra.mrb[20].mxu0 %vm686_vm3, %v6317_v26  ;;  %v1331_v26 = vrot.slane %v1329_v23, 4  ;;  %v1206_v23 = vld [vmem:[%s6577_s11 + $0xa8] sm:$0xe]  ;;  %v3706_v48 = vsel %vm6603_vm4, %v3701_v8, %v7500_v46  ;;  %v3762_v6 = vor.u32 %v3761_v4, %v3758_v49  ;;  %v3720_v53 = vsel %vm6603_vm4, %v3715_v19, %v7489_v34  ;;  %v5378_v46 = vld [vmem:[%s6577_s11 + $0x6c] sm:$0xf] }
  0xe7   : > { %5735 = vmatmul.mubr.msk.bf16.gmra.mrb[4].mxu1 %vm686_vm3, %v8388_v18  ;;  %5890 = vmatprep.mubr.msk.bf16.mxu0 %vm686_vm3, %v6318_v30  ;;  %v6373_v18 = vld [vmem:[%s6577_s11 + $0xa4] sm:$0x1]  ;;  %v7558_v36 = vsel %vm6829_vm7, %v5045_v58, %v1336_v25  ;;  %v5046_v28 = vrot.slane %v1206_v23, 9  ;;  %v1345_v8 = vrot.slane %v1343_v61, 4  ;;  %v3775_v49 = vshll.u32 %v7536_v2, 16 }
  0xe8   : > { %5738 = vmatprep.mubr.msk.bf16.mxu1 %vm686_vm3, %v8389_v27  ;;  %v1339_v30 = vrot.slane %v6373_v18, 5  ;;  %v7550_v56 = vsel %vm6829_vm7, %v1331_v26, %v1332_v33  ;;  %v3730_v33 = vsel %vm6603_vm4, %v3725_v3, %v3729_v54  ;;  %v1346_v26 = vrot.slane %v6374_v62, 5  ;;  %v5381_v18 = vld [vmem:[%s6577_s11 + $0x78] sm:$0xf]  ;;  %v7613_v54 = vld [vmem:[%s6577_s11 + $0xbc] sm:$0x1] }
  0xe9   : > { %v3744_v34 = vsel %vm6603_vm4, %v3739_v10, %v7498_v50  ;;  %v3754_v25 = vsel %vm6603_vm4, %v3749_v51, %v3753_v63  ;;  %v3772_v4 = vor.u32 %v3771_v7, %v7538_v1  ;;  %v5047_v27 = vrot.slane %v1207_v31, 9  ;;  %v7587_v51 = vld [vmem:[%s6577_s11 + $0x70] sm:$0xf]  ;;  %v7617_v10 = vld [vmem:[%s6577_s11 + $0x7c] sm:$0xf] }
  0xea   : > { %v7562_v22 = vsel %vm6829_vm7, %v1338_v52, %v1339_v30  ;;  %v8392_v3 = vcombine.low %v7280_v45, %v7284_v59  ;;  %v7583_v19 = vrot.slane %v3762_v6, 4  ;;  %v1350_v50 = vrot.slane %v6995_v42, 5  ;;  %8393 = vst [vmem:[#allocation16_spill] sm:$0xff] %v7587_v51  ;;  %8395 = vst [vmem:[#allocation17_spill] sm:$0xff] %v7617_v10  ;;  %v5384_v7 = vld [vmem:[%s6577_s11 + $0x84] sm:$0xf] }
  0xeb   : > { %8391 = vst [vmem:[#allocation15_spill] sm:$0xff] %v7562_v22  ;;  %v3780_v63 = vshrl.u32 %v5378_v46, 16  ;;  %v8394_v45 = vcombine.low %v7288_v47, %v7315_v41  ;;  %v7595_v58 = vcombine.low %v3720_v53, %v3730_v33  ;;  %v7601_v42 = vsel %vm6829_vm7, %v5046_v28, %v1343_v61  ;;  %v6321_v61 = vld [vmem:[%s6577_s11 + $0xcc] sm:$0xff]   ;;  %v7629_v31 = vld [vmem:[%s6577_s11 + $0x88] sm:$0xf] }
  0xec   : > { %v7604_v30 = vcombine.low %v3744_v34, %v3754_v25  ;;  %v7608_v47 = vsel %vm6829_vm7, %v1345_v8, %v1346_v26  ;;  %v7610_v41 = vrot.slane %v3775_v49, 5  ;;  %v3789_v6 = vshll.u32 %v7587_v51, 16  ;;  %8396 = vst [vmem:[#allocation18_spill] sm:$0xff] %v7629_v31  ;;  %v5387_v62 = vld [vmem:[%s6577_s11 + $0x90] sm:$0xf] }
  0xed   : > { %v7635_v28 = vrot.slane %v1350_v50, 4  ;;  %v7637_v33 = vrot.slane %v3780_v63, 4  ;;  %v3793_v8 = vshrl.u32 %v7587_v51, 16  ;;  %v3804_v26 = vshrl.u32 %v5381_v18, 16  ;;  %v7644_v25 = vld [vmem:[%s6577_s11 + $0x94] sm:$0xf] }
  0xee   : > { %5891 = vmatmul.mubr.msk.bf16.gmra.mrb[24].mxu0 %vm686_vm3, %v6319_v37  ;;  %v7581_v37 = vcombine.low %v3696_v43, %v3706_v48  ;;  %v7625_v43 = vsel %vm6829_vm7, %v5047_v27, %v1350_v50  ;;  %v3783_v48 = vshll.u32 %v5378_v46, 16  ;;  %v3807_v49 = vshll.u32 %v5381_v18, 16  ;;  %8397 = vst [vmem:[#allocation19_spill] sm:$0xff] %v7644_v25  ;;  %v7682_v2 = vld [vmem:[%s6577_s11 + $0x8c] sm:$0x1] }
  0xef   : > { %5739 = vmatmul.mubr.msk.bf16.gmra.mrb[8].mxu1 %vm686_vm3, %v8392_v3  ;;  %5894 = vmatprep.mubr.msk.bf16.mxu0 %vm686_vm3, %v6320_v5  ;;  %v7621_v5 = vrot.slane %v3772_v4, 4  ;;  %v3813_v46 = vshll.u32 %v7617_v10, 16  ;;  %v3817_v34 = vshrl.u32 %v7617_v10, 16  ;;  %v3828_v4 = vshrl.u32 %v5384_v7, 16 }
  0xf0   : > { %5742 = vmatprep.mubr.msk.bf16.mxu1 %vm686_vm3, %v8394_v45  ;;  %v3831_v27 = vshll.u32 %v5384_v7, 16  ;;  %v3837_v3 = vshll.u32 %v7629_v31, 16  ;;  %v3841_v50 = vshrl.u32 %v7629_v31, 16  ;;  %v7654_v45 = vld [vmem:[%s6577_s11 + $0x74] sm:$0x1]  ;;  %v3785_v18 = vrot.slane %v3783_v48, 5 }
  0xf1   : > { %v3852_v52 = vshrl.u32 %v5387_v62, 16  ;;  %v3855_v53 = vshll.u32 %v5387_v62, 16  ;;  %v8398_v7 = vcombine.low %v7299_v60, %v7324_v44  ;;  %v3795_v59 = vrot.slane %v3793_v8, 4  ;;  %v5390_v48 = vld [vmem:[%s6577_s11 + $0x9c] sm:$0xf] }
  0xf2   : > { %v3861_v63 = vshll.u32 %v7644_v25, 16  ;;  %v3865_v23 = vshrl.u32 %v7644_v25, 16  ;;  %v8399_v62 = vcombine.low %v7339_v17, %v7343_v57  ;;  %v7672_v44 = vld [vmem:[%s6577_s11 + $0x80] sm:$0x1]  ;;  %v3806_v60 = vrot.slane %v3804_v26, 4 }
  0xf3   : > { %8400 = vst [vmem:[#allocation20_spill] sm:$0xff] %v7672_v44  ;;  %v3830_v31 = vrot.slane %v3828_v4, 4  ;;  %v3833_v8 = vrot.slane %v3831_v27, 5  ;;  %v7676_v10 = vrot.slane %v3837_v3, 5  ;;  %v3843_v51 = vrot.slane %v3841_v50, 4 }
  0xf4   : > { %v7679_v25 = vld [vmem:[%s6577_s11 + $0xa0] sm:$0xf]  ;;  %v3854_v17 = vrot.slane %v3852_v52, 4  ;;  %v3857_v57 = vrot.slane %v3855_v53, 5  ;;  %v3879_v9 = vshll.u32 %v5390_v48, 16  ;;  %v3786_v26 = vor.u32 %v3785_v18, %v7637_v33 }
  0xf5   : > { %v3823_v27 = vshll.u32 %v7672_v44, 16  ;;  %v7691_v3 = vld [vmem:[%s6577_s11 + $0x98] sm:$0x1]  ;;  %v3885_v50 = vshll.u32 %v7679_v25, 16  ;;  %v3889_v52 = vshrl.u32 %v7679_v25, 16  ;;  %v3834_v22 = vor.u32 %v3833_v8, %v3830_v31 }
  0xf6   : > { %5895 = vmatmul.mubr.msk.bf16.gmra.mrb[28].mxu0 %vm686_vm3, %v6321_v61  ;;  %v7662_v61 = vrot.slane %v3789_v6, 5  ;;  %v3819_v6 = vrot.slane %v3817_v34, 4  ;;  %v3867_v34 = vrot.slane %v3865_v23, 4  ;;  %v3847_v33 = vshll.u32 %v7682_v2, 16 }
  0xf7   : > { %5743 = vmatmul.mubr.msk.bf16.gmra.mrb[12].mxu1 %vm686_vm3, %v8398_v7  ;;  %5900 = vmatprep.mubr.msk.bf16.mxu0 %vm686_vm3, %v7404_v20  ;;  %v3809_v7 = vrot.slane %v3807_v49, 5  ;;  %v7674_v20 = vrot.slane %v3813_v46, 5  ;;  %v3799_v49 = vshll.u32 %v7654_v45, 16  ;;  %v7686_v46 = vrot.slane %v3861_v63, 5 }
  0xf8   : > { %5746 = vmatprep.mubr.msk.bf16.mxu1 %vm686_vm3, %v8399_v62  ;;  %v3876_v62 = vshrl.u32 %v5390_v48, 16  ;;  %v3796_v4 = vor.u32 %v3795_v59, %v7662_v61  ;;  %v3844_v23 = vor.u32 %v3843_v51, %v7676_v10  ;;  %v3858_v59 = vor.u32 %v3857_v57, %v3854_v17  ;;  %v7724_v57 = vld [vmem:[%s6577_s11 + $0xa4] sm:$0x1] }
  0xf9   : > { %v3810_v53 = vor.u32 %v3809_v7, %v3806_v60  ;;  %v3820_v48 = vor.u32 %v3819_v6, %v7674_v20  ;;  %v3881_v18 = vrot.slane %v3879_v9, 5  ;;  %v8401_v44 = vcombine.low %v7351_v11, %v7355_v40 }
  0xfa   : > { %v3878_v63 = vrot.slane %v3876_v62, 4  ;;  %v8402_v31 = vrot.slane %v7613_v54, 5  ;;  %v3801_v51 = vrot.slane %v3799_v49, 5  ;;  %v3868_v60 = vor.u32 %v3867_v34, %v7686_v46  ;;  %v7727_v34 = vld [vmem:[%s6577_s11 + $0xac] sm:$0xf] }
  0xfb   : > { %v3871_v9 = vshll.u32 %v7691_v3, 16  ;;  %v8403_v11 = vcombine.low %v7423_v39, %v7427_v55  ;;  %v3787_v40 = vrot.slane %v3786_v26, 4  ;;  %v7720_v54 = vrot.slane %v3885_v50, 5 }
  0xfc   : > { %v3811_v7 = vrot.slane %v3810_v53, 4  ;;  %v3821_v6 = vrot.slane %v3820_v48, 4  ;;  %v3825_v8 = vrot.slane %v3823_v27, 5  ;;  %v3849_v17 = vrot.slane %v3847_v33, 5  ;;  %v7737_v48 = vld [vmem:[%s6577_s11 + $0xb0] sm:$0x1] }
  0xfd   : > { %v3835_v39 = vrot.slane %v3834_v22, 4  ;;  %v3845_v55 = vrot.slane %v3844_v23, 4  ;;  %v3859_v62 = vrot.slane %v3858_v59, 4  ;;  %v3882_v49 = vor.u32 %v3881_v18, %v3878_v63 }
  0xfe   : > { %5901 = vmatmul.mubr.msk.bf16.vlgmr.msra.gmra.mrb[0].mxu0 %vm686_vm3, %v7467_v16  ;;  %v7710_v16 = vsel %vm6829_vm7, %v7635_v28, %v8402_v31  ;;  %v3891_v28 = vrot.slane %v3889_v52, 4  ;;  %v3873_v26 = vrot.slane %v3871_v9, 5  ;;  %v3792_v52 = vsel %vm6603_vm4, %v3787_v40, %v7662_v61 }
  0xff   : > { %5747 = vmatmul.mubr.msk.bf16.gmra.mrb[16].mxu1 %vm686_vm3, %v8401_v44  ;;  %5933 = vmatpush3.bf16.msra.mxu0 %v7408_v14  ;;  %v3797_v14 = vrot.slane %v3796_v4, 4  ;;  %v5393_v44 = vld [vmem:[%s6577_s11 + $0xa8] sm:$0xf]  ;;  %v3895_v22 = vshll.u32 %v7724_v57, 16  ;;  %v3816_v33 = vsel %vm6603_vm4, %v3811_v7, %v7674_v20  ;;  %v3826_v23 = vsel %vm6603_vm4, %v3821_v6, %v3825_v8 }
 0x100   : > { %5750 = vmatprep.mubr.msk.bf16.mxu1 %vm686_vm3, %v8403_v11  ;;  %5904 = vmatprep.mubr.msk.bf16.mxu0 %vm686_vm3, %v7478_v29  ;;  %v3869_v29 = vrot.slane %v3868_v60, 4  ;;  %v3900_v4 = vshrl.u32 %v5393_v44, 16  ;;  %v3903_v50 = vshll.u32 %v5393_v44, 16  ;;  %v3892_v53 = vor.u32 %v3891_v28, %v7720_v54  ;;  %v5442_v11 = vld [vmem:[%s6577_s11 + $0x48] sm:$0xe] }
 0x101   : > { %v3802_v27 = vsel %vm6603_vm4, %v3797_v14, %v3801_v51  ;;  %v3909_v59 = vshll.u32 %v7727_v34, 16  ;;  %v3913_v61 = vshrl.u32 %v7727_v34, 16  ;;  %v3840_v63 = vsel %vm6603_vm4, %v3835_v39, %v7676_v10  ;;  %v7802_v39 = vld [vmem:[%s6577_s11 + $0xb8] sm:$0xf] }
 0x102   : > { %v3850_v18 = vsel %vm6603_vm4, %v3845_v55, %v3849_v17  ;;  %v3864_v20 = vsel %vm6603_vm4, %v3859_v62, %v7686_v46  ;;  %v3883_v31 = vrot.slane %v3882_v49, 4  ;;  %v8404_v51 = vcombine.low %v7440_v12, %v7455_v35 }
 0x103   : > { %v3902_v10 = vrot.slane %v3900_v4, 4  ;;  %v3905_v60 = vrot.slane %v3903_v50, 5  ;;  %v3919_v9 = vshll.u32 %v7737_v48, 16  ;;  %v8405_v46 = vcombine.low %v7525_v21, %v7550_v56  ;;  %v5396_v21 = vld [vmem:[%s6577_s11 + $0xb4] sm:$0xf] }
 0x104   : > { %v5063_v12 = vcombine.low %v7601_v42, %v7608_v47  ;;  %v8406_v35 = vsel %vm6603_vm4, %v7621_v5, %v7610_v41  ;;  %v3893_v14 = vrot.slane %v3892_v53, 4  ;;  %v3897_v28 = vrot.slane %v3895_v22, 5  ;;  %v5444_v4 = vld [vmem:[%s6577_s11 + $0x60] sm:$0xe]  ;;  %v5445_v53 = vld [vmem:[%s6577_s11 + $0x6c] sm:$0xe] }
 0x105   : > { %v5064_v56 = vcombine.low %v7625_v43, %v7710_v16  ;;  %v7785_v44 = vcombine.low %v3792_v52, %v3802_v27  ;;  %v7787_v42 = vrot.slane %v3909_v59, 5  ;;  %v3915_v47 = vrot.slane %v3913_v61, 4  ;;  %v8415_v16 = vld [vmem:[#allocation8_spill] sm:$0xff] }
 0x106   : > { %5905 = vmatmul.mubr.msk.bf16.gmra.mrb[4].mxu0 %vm686_vm3, %v7581_v37  ;;  %v3874_v37 = vsel %vm6603_vm4, %v3869_v29, %v3873_v26  ;;  %v7789_v41 = vcombine.low %v3816_v33, %v3826_v23  ;;  %v7791_v5 = vcombine.low %v3840_v63, %v3850_v18  ;;  %v3888_v6 = vsel %vm6603_vm4, %v3883_v31, %v7720_v54  ;;  %v8408_v23 = vld [vmem:[#allocation15_spill] sm:$0xff]  ;;  %v8410_v18 = vld [vmem:[#allocation13_spill] sm:$0xff]  ;;  %v8411_v31 = vld [vmem:[#allocation14_spill] sm:$0xff] }
 0x107   : > { %5751 = vmatmul.mubr.msk.bf16.gmra.mrb[20].mxu1 %vm686_vm3, %v8404_v51  ;;  %5908 = vmatprep.mubr.msk.bf16.mxu0 %vm686_vm3, %v7595_v58  ;;  %v8407_v58 = vsel %vm6603_vm4, %v7583_v19, %v7538_v1  ;;  %v7793_v7 = vcombine.low %v3864_v20, %v3874_v37  ;;  %v5458_v1 = vrot.slane %v5442_v11, 9  ;;  %v5443_v19 = vld [vmem:[%s6577_s11 + $0x54] sm:$0xe]  ;;  %v3906_v8 = vor.u32 %v3905_v60, %v3902_v10  ;;  %v5399_v63 = vld [vmem:[%s6577_s11 + $0xc0] sm:$0xf] }
 0x108   : > { %5754 = vmatprep.mubr.msk.bf16.mxu1 %vm686_vm3, %v8405_v46  ;;  %v5412_v40 = vcombine.low %v8407_v58, %v8406_v35  ;;  %v7799_v17 = vrot.slane %v3919_v9, 5  ;;  %v3924_v55 = vshrl.u32 %v5396_v21, 16  ;;  %v3898_v62 = vsel %vm6603_vm4, %v3893_v14, %v3897_v28  ;;  %v8412_v9 = vld [vmem:[#allocation16_spill] sm:$0xff]  ;;  %v7851_v35 = vld [vmem:[%s6577_s11 + $0xbc] sm:$0x1] }
 0x109   : > { %v3927_v49 = vshll.u32 %v5396_v21, 16  ;;  %v4383_v29 = vrot.slane %v7433_v0, 5  ;;  %v4386_v26 = vrot.slane %v7487_v38, 5  ;;  %v3916_v50 = vor.u32 %v3915_v47, %v7787_v42  ;;  %v7854_v58 = vld [vmem:[%s6577_s11 + $0xc4] sm:$0xf] }
 0x10a   : > { %v5459_v52 = vrot.slane %v5443_v19, 9  ;;  %v4390_v54 = vrot.slane %v7444_v24, 5  ;;  %v4393_v27 = vrot.slane %v7496_v15, 5  ;;  %v3933_v22 = vshll.u32 %v7802_v39, 16  ;;  %v5446_v19 = vld [vmem:[%s6577_s11 + $0x78] sm:$0xe] }
 0x10b   : > { %v3937_v33 = vshrl.u32 %v7802_v39, 16  ;;  %v7819_v0 = vsel %vm6829_vm7, %v5458_v1, %v4383_v29  ;;  %v4385_v38 = vrot.slane %v4383_v29, 4  ;;  %v8409_v59 = vcombine.low %v7558_v36, %v8408_v23  ;;  %v8413_v23 = vld [vmem:[#allocation17_spill] sm:$0xff] }
 0x10c   : > { %v7826_v24 = vcombine.low %v3888_v6, %v3898_v62  ;;  %v7830_v15 = vsel %vm6829_vm7, %v5459_v52, %v4390_v54  ;;  %v5460_v61 = vrot.slane %v5444_v4, 9  ;;  %v4397_v20 = vrot.slane %v8410_v18, 5  ;;  %v6322_v6 = vld [vmem:[%s6577_s11 + $0xc] sm:$0xff]  }
 0x10d   : > { %v7836_v36 = vsel %vm6829_vm7, %v4385_v38, %v4386_v26  ;;  %v4400_v51 = vrot.slane %v8411_v31, 5  ;;  %v5461_v37 = vrot.slane %v5445_v53, 9  ;;  %v4404_v11 = vrot.slane %v8412_v9, 5 }
 0x10e   : > { %5909 = vmatmul.mubr.msk.bf16.gmra.mrb[8].mxu0 %vm686_vm3, %v7604_v30  ;;  %v4392_v30 = vrot.slane %v4390_v54, 4  ;;  %v5475_v10 = vcombine.low %v7819_v0, %v7836_v36  ;;  %v4407_v46 = vrot.slane %v7654_v45, 5  ;;  %v7860_v14 = vsel %vm6829_vm7, %v5460_v61, %v4397_v20 }
 0x10f   : > { %5755 = vmatmul.mubr.msk.bf16.gmra.mrb[24].mxu1 %vm686_vm3, %v8409_v59  ;;  %5912 = vmatprep.mubr.msk.bf16.mxu0 %vm686_vm3, %v5412_v40  ;;  %v4399_v28 = vrot.slane %v4397_v20, 4  ;;  %v7862_v21 = vrot.slane %v3924_v55, 4  ;;  %v3948_v47 = vshrl.u32 %v5399_v63, 16  ;;  %v7866_v45 = vsel %vm6829_vm7, %v5461_v37, %v4404_v11  ;;  %v5173_v55 = vld [vmem:[%s6577_s11 + $0x78] sm:$0xf]  ;;  %v8414_v59 = vld [vmem:[#allocation20_spill] sm:$0xff] }
 0x110   : > { %5758 = vmatprep.mubr.msk.bf16.mxu1 %vm686_vm3, %v5063_v12  ;;  %v7844_v60 = vsel %vm6829_vm7, %v4392_v30, %v4393_v27  ;;  %v7848_v12 = vrot.slane %v3906_v8, 4  ;;  %v4406_v1 = vrot.slane %v4404_v11, 4  ;;  %v7870_v8 = vrot.slane %v3916_v50, 4 }
 0x111   : > { %v5476_v40 = vcombine.low %v7830_v15, %v7844_v60  ;;  %v7872_v62 = vrot.slane %v3927_v49, 5  ;;  %v3951_v29 = vshll.u32 %v5399_v63, 16  ;;  %v7876_v26 = vsel %vm6829_vm7, %v4399_v28, %v4400_v51  ;;  %v8417_v28 = vld [vmem:[#allocation18_spill] sm:$0xff]  ;;  %v6385_v60 = vld [vmem:[%s6577_s11 + $0xa0] sm:$0xf] }
 0x112   : > { %v7879_v4 = vrot.slane %v3933_v22, 5  ;;  %v7881_v52 = vrot.slane %v3937_v33, 4  ;;  %v5477_v54 = vcombine.low %v7860_v14, %v7876_v26  ;;  %v7887_v27 = vsel %vm6829_vm7, %v4406_v1, %v4407_v46  ;;  %v5447_v33 = vld [vmem:[%s6577_s11 + $0x84] sm:$0xe]  ;;  %v6323_v1 = vld [vmem:[%s6577_s11 + $0x18] sm:$0xff]  }
 0x113   : > { %v3943_v49 = vshll.u32 %v7851_v35, 16  ;;  %v3957_v50 = vshll.u32 %v7854_v58, 16  ;;  %v5478_v53 = vcombine.low %v7866_v45, %v7887_v27  ;;  %v5462_v22 = vrot.slane %v5446_v19, 9  ;;  %v6389_v27 = vld [vmem:[%s6577_s11 + $0xac] sm:$0xf] }
 0x114   : > { %v3950_v38 = vrot.slane %v3948_v47, 4  ;;  %v4414_v30 = vrot.slane %v8414_v59, 5  ;;  %v2273_v61 = vshrl.u32 %v5173_v55, 16  ;;  %v3953_v63 = vrot.slane %v3951_v29, 5  ;;  %v5402_v29 = vld [vmem:[%s6577_s11 + $0xcc] sm:$0xf] }
 0x115   : > { %v3961_v18 = vshrl.u32 %v7854_v58, 16  ;;  %v2276_v43 = vshll.u32 %v5173_v55, 16  ;;  %v5463_v37 = vrot.slane %v5447_v33, 9  ;;  %v3912_v9 = vsel %vm6603_vm4, %v7848_v12, %v7787_v42  ;;  %v7930_v55 = vld [vmem:[%s6577_s11 + $0xd0] sm:$0xf] }
 0x116   : > { %5913 = vmatmul.mubr.msk.bf16.gmra.mrb[12].mxu0 %vm686_vm3, %v7785_v44  ;;  %v4411_v44 = vrot.slane %v8413_v23, 5  ;;  %v2275_v51 = vrot.slane %v2273_v61, 4  ;;  %v3930_v11 = vor.u32 %v7872_v62, %v7862_v21  ;;  %v4418_v47 = vrot.slane %v8417_v28, 5  ;;  %v6324_v21 = vld [vmem:[%s6577_s11 + $0x24] sm:$0xff]  }
 0x117   : > { %5759 = vmatmul.mubr.msk.bf16.gmra.mrb[28].mxu1 %vm686_vm3, %v5064_v56  ;;  %5916 = vmatprep.mubr.msk.bf16.mxu0 %vm686_vm3, %v7789_v41  ;;  %v8416_v56 = vld [vmem:[#allocation9_spill] sm:$0xff]  ;;  %v2278_v46 = vrot.slane %v2276_v43, 5  ;;  %v3922_v19 = vsel %vm6603_vm4, %v7870_v8, %v7799_v17  ;;  %v4421_v12 = vrot.slane %v7682_v2, 5  ;;  %v7938_v62 = vrot.slane %v3957_v50, 5 }
 0x118   : > { %5764 = vmatprep.mubr.msk.bf16.mxu1 %vm686_vm3, %v6322_v6  ;;  %v2295_v41 = vsel %vm6603_vm4, %v8416_v56, %v8415_v16  ;;  %v7912_v20 = vsel %vm6829_vm7, %v5462_v22, %v4411_v44  ;;  %v4413_v31 = vrot.slane %v4411_v44, 4  ;;  %v3940_v6 = vor.u32 %v7881_v52, %v7879_v4  ;;  %v5448_v8 = vld [vmem:[%s6577_s11 + $0x90] sm:$0xe]  ;;  %v7944_v52 = vld [vmem:[%s6577_s11 + $0xc8] sm:$0x1] }
 0x119   : > { %v3963_v22 = vrot.slane %v3961_v18, 4  ;;  %v2279_v17 = vor.u32 %v2278_v46, %v2275_v51  ;;  %v3945_v23 = vrot.slane %v3943_v49, 5  ;;  %v3954_v44 = vor.u32 %v3953_v63, %v3950_v38  ;;  %v8419_v16 = vld [vmem:[#allocation6_spill] sm:$0xff]  ;;  %v8420_v51 = vld [vmem:[#allocation7_spill] sm:$0xff] }
 0x11a   : > { %v7934_v42 = vsel %vm6829_vm7, %v4413_v31, %v4414_v30  ;;  %v7948_v59 = vsel %vm6829_vm7, %v5463_v37, %v4418_v47  ;;  %v4420_v30 = vrot.slane %v4418_v47, 4  ;;  %v3972_v2 = vshrl.u32 %v5402_v29, 16 }
 0x11b   : > { %v5479_v33 = vcombine.low %v7912_v20, %v7934_v42  ;;  %v3975_v50 = vshll.u32 %v5402_v29, 16  ;;  %v3981_v61 = vshll.u32 %v7930_v55, 16  ;;  %v2280_v18 = vrot.slane %v2279_v17, 4  ;;  %v6325_v29 = vld [vmem:[%s6577_s11 + $0x30] sm:$0xff]  }
 0x11c   : > { %v3985_v49 = vshrl.u32 %v7930_v55, 16  ;;  %v7959_v38 = vsel %vm6829_vm7, %v4420_v30, %v4421_v12  ;;  %v5464_v63 = vrot.slane %v5448_v8, 9  ;;  %v3964_v56 = vor.u32 %v3963_v22, %v7938_v62 }
 0x11d   : > { %v3967_v31 = vshll.u32 %v7944_v52, 16  ;;  %v5480_v37 = vcombine.low %v7948_v59, %v7959_v38  ;;  %v5418_v46 = vcombine.low %v3912_v9, %v3922_v19  ;;  %v3931_v28 = vrot.slane %v3930_v11, 4  ;;  %v5449_v11 = vld [vmem:[%s6577_s11 + $0x9c] sm:$0xe] }
 0x11e   : > { %5917 = vmatmul.mubr.msk.bf16.gmra.mrb[16].mxu0 %vm686_vm3, %v7791_v5  ;;  %v8418_v5 = vld [vmem:[#allocation19_spill] sm:$0xff]  ;;  %v3941_v47 = vrot.slane %v3940_v6, 4  ;;  %v3955_v12 = vrot.slane %v3954_v44, 4  ;;  %v4428_v8 = vrot.slane %v7691_v3, 5  ;;  %v3974_v30 = vrot.slane %v3972_v2, 4 }
 0x11f   : > { %5765 = vmatmul.mubr.msk.bf16.vlgmr.msra.gmra.mrb[0].mxu1 %vm686_vm3, %v6323_v1  ;;  %5920 = vmatprep.mubr.msk.bf16.mxu0 %vm686_vm3, %v7793_v7  ;;  %v4425_v43 = vrot.slane %v8418_v5, 5  ;;  %v2285_v7 = vsel %vm6603_vm4, %v2280_v18, %v8420_v51  ;;  %v3977_v18 = vrot.slane %v3975_v50, 5  ;;  %v7982_v5 = vrot.slane %v3981_v61, 5  ;;  %v6326_v19 = vld [vmem:[%s6577_s11 + $0x3c] sm:$0xff]  }
 0x120   : > { %5967 = vmatpush3.bf16.msra.mxu1 %v8419_v16  ;;  %5768 = vmatprep.mubr.msk.bf16.mxu1 %vm686_vm3, %v6324_v21  ;;  %v7971_v1 = vcombine.low %v2285_v7, %v2295_v41  ;;  %v7975_v21 = vld [vmem:[%s6577_s11 + $0xd4] sm:$0x1]  ;;  %v3987_v9 = vrot.slane %v3985_v49, 4  ;;  %v3965_v41 = vrot.slane %v3964_v56, 4  ;;  %v3969_v6 = vrot.slane %v3967_v31, 5 }
 0x121   : > { %v7979_v22 = vsel %vm6829_vm7, %v5464_v63, %v4425_v43  ;;  %v4427_v17 = vrot.slane %v4425_v43, 4  ;;  %v3936_v63 = vsel %vm6603_vm4, %v3931_v28, %v7879_v4  ;;  %v3946_v2 = vsel %vm6603_vm4, %v3941_v47, %v3945_v23  ;;  %v6376_v16 = vld [vmem:[%s6577_s11 + $0x1c] sm:$0xf]  ;;  %v5450_v28 = vld [vmem:[%s6577_s11 + $0xa8] sm:$0xe] }
 0x122   : > { %v3991_v50 = vshll.u32 %v7975_v21, 16  ;;  %v5465_v61 = vrot.slane %v5449_v11, 9  ;;  %v4432_v49 = vrot.slane %v7679_v25, 5  ;;  %v3960_v4 = vsel %vm6603_vm4, %v3955_v12, %v7938_v62  ;;  %v5438_v62 = vld [vmem:[%s6577_s11 + $0x18] sm:$0xe]  ;;  %v6327_v47 = vld [vmem:[%s6577_s11 + $0x48] sm:$0xff]  }
 0x123   : > { %v7988_v44 = vsel %vm6829_vm7, %v4427_v17, %v4428_v8  ;;  %v3988_v43 = vor.u32 %v3987_v9, %v7982_v5  ;;  %v4435_v23 = vrot.slane %v7724_v57, 5  ;;  %v3970_v25 = vsel %vm6603_vm4, %v3965_v41, %v3969_v6  ;;  %v6377_v11 = vld [vmem:[%s6577_s11 + $0x20] sm:$0x1] }
 0x124   : > { %v5481_v3 = vcombine.low %v7979_v22, %v7988_v44  ;;  %v4355_v56 = vrot.slane %v6376_v16, 5  ;;  %v8014_v31 = vsel %vm6829_vm7, %v5465_v61, %v4432_v49  ;;  %v4434_v51 = vrot.slane %v4432_v49, 4  ;;  %v5451_v49 = vld [vmem:[%s6577_s11 + $0xb4] sm:$0xe] }
 0x125   : > { %v5419_v7 = vcombine.low %v3936_v63, %v3946_v2  ;;  %v3989_v17 = vrot.slane %v3988_v43, 4  ;;  %v5466_v41 = vrot.slane %v5450_v28, 9  ;;  %v4439_v6 = vrot.slane %v7727_v34, 5  ;;  %v5439_v2 = vld [vmem:[%s6577_s11 + $0x24] sm:$0xe] }
 0x126   : > { %5921 = vmatmul.mubr.msk.bf16.gmra.mrb[20].mxu0 %vm686_vm3, %v7826_v24  ;;  %v3978_v24 = vor.u32 %v3977_v18, %v3974_v30  ;;  %v8019_v57 = vsel %vm6829_vm7, %v4434_v51, %v4435_v23  ;;  %v6328_v30 = vld [vmem:[%s6577_s11 + $0x54] sm:$0xff]   ;;  %v5454_v18 = vrot.slane %v5438_v62, 9  ;;  %v4357_v9 = vrot.slane %v4355_v56, 4  ;;  %v6380_v28 = vld [vmem:[%s6577_s11 + $0x2c] sm:$0x1] }
 0x127   : > { %5769 = vmatmul.mubr.msk.bf16.gmra.mrb[4].mxu1 %vm686_vm3, %v6325_v29  ;;  %5924 = vmatprep.mubr.msk.bf16.mxu0 %vm686_vm3, %v5418_v46  ;;  %v3993_v46 = vrot.slane %v3991_v50, 5  ;;  %v5420_v29 = vcombine.low %v3960_v4, %v3970_v25  ;;  %v5482_v8 = vcombine.low %v8014_v31, %v8019_v57  ;;  %v4442_v63 = vrot.slane %v7737_v48, 5  ;;  %v6378_v50 = vld [vmem:[%s6577_s11 + $0x28] sm:$0xf]  ;;  %v5440_v25 = vld [vmem:[%s6577_s11 + $0x30] sm:$0xe] }
 0x128   : > { %5772 = vmatprep.mubr.msk.bf16.mxu1 %vm686_vm3, %v6326_v19  ;;  %v3979_v12 = vrot.slane %v3978_v24, 4  ;;  %v4358_v19 = vrot.slane %v6377_v11, 5  ;;  %v4362_v61 = vrot.slane %v6378_v50, 5  ;;  %v8042_v48 = vsel %vm6829_vm7, %v5466_v41, %v4439_v6  ;;  %v6330_v11 = vld [vmem:[%s6577_s11 + $0x6c] sm:$0xff]   ;;  %v5452_v50 = vld [vmem:[%s6577_s11 + $0xc0] sm:$0xe] }
 0x129   : > { %v3994_v34 = vsel %vm6603_vm4, %v3989_v17, %v3993_v46  ;;  %v4441_v24 = vrot.slane %v4439_v6, 4  ;;  %v4356_v43 = vsel %vm6829_vm7, %v5454_v18, %v4355_v56  ;;  %v5455_v51 = vrot.slane %v5439_v2, 9  ;;  %v8421_v41 = vld [vmem:[#allocation10_spill] sm:$0xff]  ;;  %v6394_v31 = vld [vmem:[%s6577_s11 + $0xc8] sm:$0x1] }
 0x12a   : > { %v3984_v4 = vsel %vm6603_vm4, %v3979_v12, %v7982_v5  ;;  %v4359_v23 = vsel %vm6829_vm7, %v4357_v9, %v4358_v19  ;;  %v6379_v5 = vld [vmem:[%s6577_s11 + $0x34] sm:$0xf]  ;;  %v6329_v12 = vld [vmem:[%s6577_s11 + $0x60] sm:$0xff]   ;;  %v5456_v18 = vrot.slane %v5440_v25, 9  ;;  %v4449_v9 = vrot.slane %v7851_v35, 5 }
 0x12b   : > { %v4369_v16 = vrot.slane %v6379_v5, 5  ;;  %v8053_v62 = vsel %vm6829_vm7, %v4441_v24, %v4442_v63  ;;  %v5421_v46 = vcombine.low %v3984_v4, %v3994_v34  ;;  %v5471_v17 = vcombine.low %v4356_v43, %v4359_v23  ;;  %v5441_v24 = vld [vmem:[%s6577_s11 + $0x3c] sm:$0xe] }
 0x12c   : > { %v5483_v56 = vcombine.low %v8042_v48, %v8053_v62  ;;  %v4372_v6 = vrot.slane %v8421_v41, 5  ;;  %v4363_v35 = vsel %vm6829_vm7, %v5455_v51, %v4362_v61  ;;  %v5468_v5 = vrot.slane %v5452_v50, 9 }
 0x12d   : > { %v4371_v19 = vrot.slane %v4369_v16, 4  ;;  %v4370_v23 = vsel %vm6829_vm7, %v5456_v18, %v4369_v16  ;;  %v4456_v51 = vrot.slane %v7944_v52, 5  ;;  %v2436_v57 = vshll.u32 %v6394_v31, 16 }
 0x12e   : > { %5925 = vmatmul.mubr.msk.bf16.gmra.mrb[24].mxu0 %vm686_vm3, %v5419_v7  ;;  %v5467_v7 = vrot.slane %v5451_v49, 9 }
 0x12f   : > { %5773 = vmatmul.mubr.msk.bf16.gmra.mrb[8].mxu1 %vm686_vm3, %v6327_v47  ;;  %5928 = vmatprep.mubr.msk.bf16.mxu0 %vm686_vm3, %v5420_v29  ;;  %v4365_v47 = vrot.slane %v6380_v28, 5  ;;  %v4446_v29 = vrot.slane %v7802_v39, 5  ;;  %v8422_v39 = vld [vmem:[#allocation11_spill] sm:$0xff]  ;;  %v4373_v25 = vsel %vm6829_vm7, %v4371_v19, %v4372_v6  ;;  %v5457_v28 = vrot.slane %v5441_v24, 9 }
 0x130   : > { %5776 = vmatprep.mubr.msk.bf16.mxu1 %vm686_vm3, %v6328_v30  ;;  %v4364_v30 = vrot.slane %v4362_v61, 4  ;;  %v4376_v49 = vrot.slane %v8422_v39, 5  ;;  %v4453_v61 = vrot.slane %v7854_v58, 5  ;;  %v6381_v39 = vld [vmem:[%s6577_s11 + $0x70] sm:$0xf]  ;;  %v4460_v24 = vrot.slane %v7930_v55, 5 }
 0x131   : > { %v8065_v63 = vsel %vm6829_vm7, %v5467_v7, %v4446_v29  ;;  %v4448_v2 = vrot.slane %v4446_v29, 4  ;;  %v5170_v7 = vld [vmem:[%s6577_s11 + $0x6c] sm:$0xf]  ;;  %v8423_v29 = vld [vmem:[#allocation12_spill] sm:$0xff] }
 0x132   : > { %v4366_v34 = vsel %vm6829_vm7, %v4364_v30, %v4365_v47  ;;  %v4378_v47 = vrot.slane %v4376_v49, 4  ;;  %v6331_v30 = vld [vmem:[%s6577_s11 + $0x78] sm:$0xff]   ;;  %v8096_v16 = vsel %vm6829_vm7, %v5468_v5, %v4453_v61  ;;  %v4455_v18 = vrot.slane %v4453_v61, 4 }
 0x133   : > { %v8072_v4 = vsel %vm6829_vm7, %v4448_v2, %v4449_v9  ;;  %v5473_v9 = vcombine.low %v4370_v23, %v4373_v25  ;;  %v2249_v19 = vshrl.u32 %v5170_v7, 16  ;;  %v2252_v41 = vshll.u32 %v5170_v7, 16 }
 0x134   : > { %v5484_v43 = vcombine.low %v8065_v63, %v8072_v4  ;;  %v8101_v58 = vsel %vm6829_vm7, %v4455_v18, %v4456_v51  ;;  %v4377_v6 = vsel %vm6829_vm7, %v5457_v28, %v4376_v49  ;;  %v4463_v49 = vrot.slane %v7975_v21, 5  ;;  %v6333_v51 = vld [vmem:[%s6577_s11 + $0x90] sm:$0xff]   ;;  %v6334_v21 = vld [vmem:[%s6577_s11 + $0x9c] sm:$0xff]  }
 0x135   : > { %v5485_v50 = vcombine.low %v8096_v16, %v8101_v58  ;;  %v2251_v23 = vrot.slane %v2249_v19, 4  ;;  %v2254_v25 = vrot.slane %v2252_v41, 5  ;;  %v4462_v7 = vrot.slane %v4460_v24, 4 }
 0x136   : > { %5929 = vmatmul.mubr.msk.bf16.gmra.mrb[28].mxu0 %vm686_vm3, %v5421_v46  ;;  %v5472_v46 = vcombine.low %v4363_v35, %v4366_v34  ;;  %v2258_v35 = vshll.u32 %v6381_v39, 16  ;;  %v2262_v34 = vshrl.u32 %v6381_v39, 16 }
 0x137   : > { %5777 = vmatmul.mubr.msk.bf16.gmra.mrb[12].mxu1 %vm686_vm3, %v6329_v12  ;;  %5934 = vmatprep.mubr.msk.bf16.mxu0 %vm686_vm3, %v5471_v17  ;;  %v4379_v12 = vrot.slane %v8423_v29, 5  ;;  %v5453_v17 = vld [vmem:[%s6577_s11 + $0xcc] sm:$0xe]  ;;  %v8123_v55 = vsel %vm6829_vm7, %v4462_v7, %v4463_v49 }
 0x138   : > { %5780 = vmatprep.mubr.msk.bf16.mxu1 %vm686_vm3, %v6330_v11  ;;  %v6332_v11 = vld [vmem:[%s6577_s11 + $0x84] sm:$0xff]   ;;  %v5469_v52 = vrot.slane %v5453_v17, 9  ;;  %v2264_v28 = vrot.slane %v2262_v34, 4  ;;  %v6382_v17 = vld [vmem:[%s6577_s11 + $0x74] sm:$0x1] }
 0x139   : > { %v4380_v2 = vsel %vm6829_vm7, %v4378_v47, %v4379_v12  ;;  %v5176_v47 = vld [vmem:[%s6577_s11 + $0x84] sm:$0xf]  ;;  %v2255_v12 = vor.u32 %v2254_v25, %v2251_v23  ;;  %v6336_v34 = vld [vmem:[%s6577_s11 + $0xb4] sm:$0xff]  }
 0x13a   : > { %v8118_v5 = vsel %vm6829_vm7, %v5469_v52, %v4460_v24  ;;  %v5474_v61 = vcombine.low %v4377_v6, %v4380_v2  ;;  %v2300_v18 = vshll.u32 %v5176_v47, 16  ;;  %v5179_v6 = vld [vmem:[%s6577_s11 + $0x90] sm:$0xf]  ;;  %v6335_v2 = vld [vmem:[%s6577_s11 + $0xa8] sm:$0xff]  }
 0x13b   : > { %v5486_v29 = vcombine.low %v8118_v5, %v8123_v55  ;;  %v2256_v52 = vrot.slane %v2255_v12, 4  ;;  %v2321_v23 = vshrl.u32 %v5179_v6, 16  ;;  %v2324_v25 = vshll.u32 %v5179_v6, 16 }
 0x13c   : > { %v2354_v12 = vshll.u32 %v6385_v60, 16 }
 0x13d   : > { %v2326_v14 = vrot.slane %v2324_v25, 5  ;;  %v6388_v25 = vld [vmem:[%s6577_s11 + $0xa4] sm:$0x1] }
 0x13e   : > { %5935 = vmatmul.mubr.msk.bf16.vlgmr.msra.gmra.mrb[0].mxu0 %vm686_vm3, %v5472_v46  ;;  %v2260_v46 = vrot.slane %v2258_v35, 5  ;;  %v5182_v35 = vld [vmem:[%s6577_s11 + $0x9c] sm:$0xf]  ;;  %v8165_v6 = vrot.slane %v2354_v12, 5 }
 0x13f   : > { %5781 = vmatmul.mubr.msk.bf16.gmra.mrb[16].mxu1 %vm686_vm3, %v6331_v30  ;;  %5938 = vmatprep.mubr.msk.bf16.mxu0 %vm686_vm3, %v5473_v9  ;;  %v2268_v30 = vshll.u32 %v6382_v17, 16  ;;  %v2297_v9 = vshrl.u32 %v5176_v47, 16  ;;  %v2348_v47 = vshll.u32 %v5182_v35, 16  ;;  %v6386_v17 = vld [vmem:[%s6577_s11 + $0x8c] sm:$0x1] }
 0x140   : > { %5784 = vmatprep.mubr.msk.bf16.mxu1 %vm686_vm3, %v6332_v11  ;;  %v2265_v13 = vor.u32 %v2264_v28, %v2260_v46  ;;  %v6383_v11 = vld [vmem:[%s6577_s11 + $0x88] sm:$0xf]  ;;  %v2261_v7 = vsel %vm6603_vm4, %v2256_v52, %v2260_v46 }
 0x141   : > { %v2306_v19 = vshll.u32 %v6383_v11, 16  ;;  %v2310_v41 = vshrl.u32 %v6383_v11, 16  ;;  %v2270_v0 = vrot.slane %v2268_v30, 5  ;;  %v2299_v36 = vrot.slane %v2297_v9, 4 }
 0x142   : > { %v2266_v39 = vrot.slane %v2265_v13, 4  ;;  %v2316_v30 = vshll.u32 %v6386_v17, 16  ;;  %v2323_v9 = vrot.slane %v2321_v23, 4  ;;  %v2350_v11 = vrot.slane %v2348_v47, 5 }
 0x143   : > { %v8142_v24 = vrot.slane %v2306_v19, 5  ;;  %v2312_v49 = vrot.slane %v2310_v41, 4  ;;  %v6337_v19 = vld [vmem:[%s6577_s11 + $0xc0] sm:$0xff]  }
 0x144   : > { %v2271_v46 = vsel %vm6603_vm4, %v2266_v39, %v2270_v0  ;;  %v5185_v39 = vld [vmem:[%s6577_s11 + $0xa8] sm:$0xf] }
 0x145   : > { %v2313_v13 = vor.u32 %v2312_v49, %v8142_v24  ;;  %v5203_v41 = vcombine.low %v2261_v7, %v2271_v46  ;;  %v2364_v7 = vshll.u32 %v6388_v25, 16  ;;  %v2372_v45 = vshll.u32 %v5185_v39, 16 }
 0x146   : > { %5939 = vmatmul.mubr.msk.bf16.gmra.mrb[4].mxu0 %vm686_vm3, %v5474_v61  ;;  %v6384_v61 = vld [vmem:[%s6577_s11 + $0x94] sm:$0xf] }
 0x147   : > { %5785 = vmatmul.mubr.msk.bf16.gmra.mrb[20].mxu1 %vm686_vm3, %v6333_v51  ;;  %5942 = vmatprep.mubr.msk.bf16.mxu0 %vm686_vm3, %v5475_v10  ;;  %v2302_v10 = vrot.slane %v2300_v18, 5  ;;  %v2330_v51 = vshll.u32 %v6384_v61, 16  ;;  %v2334_v28 = vshrl.u32 %v6384_v61, 16  ;;  %v2314_v0 = vrot.slane %v2313_v13, 4 }
 0x148   : > { %5788 = vmatprep.mubr.msk.bf16.mxu1 %vm686_vm3, %v6334_v21  ;;  %v2345_v21 = vshrl.u32 %v5182_v35, 16  ;;  %v6387_v35 = vld [vmem:[%s6577_s11 + $0x98] sm:$0x1]  ;;  %v2369_v61 = vshrl.u32 %v5185_v39, 16  ;;  %v5191_v39 = vld [vmem:[%s6577_s11 + $0xc0] sm:$0xf] }
 0x149   : > { %v2303_v15 = vor.u32 %v2302_v10, %v2299_v36  ;;  %v8162_v26 = vrot.slane %v2330_v51, 5  ;;  %v2318_v36 = vrot.slane %v2316_v30, 5  ;;  %v2327_v10 = vor.u32 %v2326_v14, %v2323_v9  ;;  %v5188_v51 = vld [vmem:[%s6577_s11 + $0xb4] sm:$0xf] }
 0x14a   : > { %v2347_v18 = vrot.slane %v2345_v21, 4  ;;  %v2382_v21 = vshrl.u32 %v6389_v27, 16  ;;  %v2393_v20 = vshrl.u32 %v5188_v51, 16  ;;  %v2396_v42 = vshll.u32 %v5188_v51, 16 }
 0x14b   : > { %v2304_v52 = vrot.slane %v2303_v15, 4  ;;  %v2319_v46 = vsel %vm6603_vm4, %v2314_v0, %v2318_v36  ;;  %v2328_v15 = vrot.slane %v2327_v10, 4  ;;  %v2366_v30 = vrot.slane %v2364_v7, 5 }
 0x14c   : > { %v2351_v23 = vor.u32 %v2350_v11, %v2347_v18  ;;  %v2371_v9 = vrot.slane %v2369_v61, 4  ;;  %v2384_v11 = vrot.slane %v2382_v21, 4  ;;  %v6393_v61 = vld [vmem:[%s6577_s11 + $0xbc] sm:$0x1] }
 0x14d   : > { %v2309_v47 = vsel %vm6603_vm4, %v2304_v52, %v8142_v24  ;;  %v2333_v0 = vsel %vm6603_vm4, %v2328_v15, %v8162_v26  ;;  %v2412_v22 = vshll.u32 %v6393_v61, 16 }
 0x14e   : > { %5943 = vmatmul.mubr.msk.bf16.gmra.mrb[8].mxu0 %vm686_vm3, %v5476_v40  ;;  %v2358_v40 = vshrl.u32 %v6385_v60, 16  ;;  %v2352_v17 = vrot.slane %v2351_v23, 4  ;;  %v5205_v24 = vcombine.low %v2309_v47, %v2319_v46 }
 0x14f   : > { %5789 = vmatmul.mubr.msk.bf16.gmra.mrb[24].mxu1 %vm686_vm3, %v6335_v2  ;;  %5946 = vmatprep.mubr.msk.bf16.mxu0 %vm686_vm3, %v5477_v54  ;;  %v2336_v54 = vrot.slane %v2334_v28, 4 }
 0x150   : > { %5792 = vmatprep.mubr.msk.bf16.mxu1 %vm686_vm3, %v6336_v34  ;;  %v2360_v2 = vrot.slane %v2358_v40, 4  ;;  %v2340_v34 = vshll.u32 %v6387_v35, 16  ;;  %v2357_v10 = vsel %vm6603_vm4, %v2352_v17, %v8165_v6  ;;  %v2438_v17 = vrot.slane %v2436_v57, 5 }
 0x151   : > { %v2337_v49 = vor.u32 %v2336_v54, %v8162_v26  ;;  %v2374_v54 = vrot.slane %v2372_v45, 5  ;;  %v6391_v26 = vld [vmem:[%s6577_s11 + $0xb0] sm:$0x1] }
 0x152   : > { %v2361_v28 = vor.u32 %v2360_v2, %v8165_v6  ;;  %v2342_v60 = vrot.slane %v2340_v34, 5  ;;  %v2388_v35 = vshll.u32 %v6391_v26, 16  ;;  %v2417_v34 = vshrl.u32 %v5191_v39, 16 }
 0x153   : > { %v2338_v13 = vrot.slane %v2337_v49, 4  ;;  %v2375_v38 = vor.u32 %v2374_v54, %v2371_v9  ;;  %v2420_v6 = vshll.u32 %v5191_v39, 16  ;;  %v6392_v49 = vld [vmem:[%s6577_s11 + $0xc4] sm:$0xf]  ;;  %v8262_v39 = vld [vmem:[%s8353_s2] ss:$0 sm:$0xff] }
 0x154   : > { %v2362_v14 = vrot.slane %v2361_v28, 4  ;;  %v2426_v23 = vshll.u32 %v6392_v49, 16  ;;  %v2430_v25 = vshrl.u32 %v6392_v49, 16  ;;  %v2390_v45 = vrot.slane %v2388_v35, 5 }
 0x155   : > { %v2343_v36 = vsel %vm6603_vm4, %v2338_v13, %v2342_v60  ;;  %v2376_v51 = vrot.slane %v2375_v38, 4  ;;  %v2414_v60 = vrot.slane %v2412_v22, 5 }
 0x156   : > { %5947 = vmatmul.mubr.msk.bf16.gmra.mrb[12].mxu0 %vm686_vm3, %v5478_v53  ;;  %v2378_v53 = vshll.u32 %v6389_v27, 16  ;;  %v2367_v59 = vsel %vm6603_vm4, %v2362_v14, %v2366_v30  ;;  %v5206_v44 = vcombine.low %v2333_v0, %v2343_v36  ;;  %v2419_v27 = vrot.slane %v2417_v34, 4 }
 0x157   : > { %5793 = vmatmul.mubr.msk.bf16.gmra.mrb[28].mxu1 %vm686_vm3, %v6337_v19  ;;  %5950 = vmatprep.mubr.msk.bf16.mxu0 %vm686_vm3, %v5479_v33  ;;  %v6390_v33 = vld [vmem:[%s6577_s11 + $0xb8] sm:$0xf]  ;;  %v2395_v19 = vrot.slane %v2393_v20, 4  ;;  %v2428_v21 = vrot.slane %v2426_v23, 5  ;;  %v2432_v47 = vrot.slane %v2430_v25, 4  ;;  %s183_s11 = sand.u32 1, %s6457_s13  }
 0x158   : > { %5814 = vmatprep.mubr.msk.bf16.mxu1 %vm686_vm3, %v5203_v41  ;;  %v2402_v12 = vshll.u32 %v6390_v33, 16  ;;  %v2406_v40 = vshrl.u32 %v6390_v33, 16  ;;  %v2380_v18 = vrot.slane %v2378_v53, 5  ;;  %v2398_v41 = vrot.slane %v2396_v42, 5  ;;  %s184_s19 = scalar_lea.vmem [#allocation3], %s183_s11  ;;  %s4877_s28 = scalar_lea.sflag [#allocation4], %s183_s11 }
 0x159   : > { %v2422_v53 = vrot.slane %v2420_v6, 5  ;;  %s4889_s21 = sshll.u32 %s184_s19, 4  ;;  %s8306_s21 = int_to_ptr.vmem [resolvable:$true] %s4889_s21 }
 0x15a   : > { %v2404_v52 = vrot.slane %v2402_v12, 5  ;;  %v2408_v2 = vrot.slane %v2406_v40, 4  ;;  %v2381_v20 = vsel %vm6603_vm4, %v2376_v51, %v2380_v18  ;;  %v2433_v12 = vor.u32 %v2432_v47, %v2428_v21  ;;  %s6395_s29 = scalar_lea.vmem %s8306_s21, 16  ;;  %p6402_p1 = scmp.lt.s32.totalorder %s8306_s21, %s6400_s30 }
 0x15b   : > { %v2423_v33 = vor.u32 %v2422_v53, %v2419_v27  ;;  %p6396_p12 = scmp.ne.s32.totalorder %s8306_s21, %s6395_s29  ;;  %p6403_p2 = scmp.lt.s32.totalorder %s6401_s4, %s6395_s29 }
 0x15c   : > { %v2409_v7 = vor.u32 %v2408_v2, %v2404_v52  ;;  %v2434_v13 = vrot.slane %v2433_v12, 4 }
 0x15d   : > { %v2424_v40 = vrot.slane %v2423_v33, 4  ;;  %p6397_p13 = pnand %p6396_p12, %p6536_p4  ;;  %p6404_p3 = por %p6403_p2, %p6402_p1 }
 0x15e   : > { %5951 = vmatmul.mubr.msk.bf16.gmra.mrb[16].mxu0 %vm686_vm3, %v5480_v37  ;;  %v2385_v37 = vor.u32 %v2384_v11, %v2380_v18  ;;  %v2410_v15 = vrot.slane %v2409_v7, 4  ;;  %v2439_v9 = vsel %vm6603_vm4, %v2434_v13, %v2438_v17 }
 0x15f   : > { %5815 = vmatmul.mubr.msk.bf16.vlgmr.msra.gmra.mrb[16].mxu1 %vm686_vm3, %v7971_v1  ;;  %5954 = vmatprep.mubr.msk.bf16.mxu0 %vm686_vm3, %v5481_v3  ;;  %v2399_v1 = vor.u32 %v2398_v41, %v2395_v19  ;;  %v5207_v3 = vcombine.low %v2357_v10, %v2367_v59  ;;  %v2429_v30 = vsel %vm6603_vm4, %v2424_v40, %v2428_v21  ;;  %p6398_p0 = pneg %p6397_p13 }
 0x160   : > { %5818 = vmatprep.mubr.msk.bf16.mxu1 %vm686_vm3, %v5205_v24  ;;  %v2386_v28 = vrot.slane %v2385_v37, 4  ;;  %v2415_v48 = vsel %vm6603_vm4, %v2410_v15, %v2414_v60  ;;  %v5210_v14 = vcombine.low %v2429_v30, %v2439_v9 }
 0x161   : > { %v2400_v46 = vrot.slane %v2399_v1, 4  ;;  %p6405_p5 = pnand %p6404_p3, %p6398_p0 }
 0x162   : > { %v2391_v42 = vsel %vm6603_vm4, %v2386_v28, %v2390_v45 }
 0x163   : > { %v5208_v62 = vcombine.low %v2381_v20, %v2391_v42 }
 0x166   : > { %5955 = vmatmul.mubr.msk.bf16.gmra.mrb[20].mxu0 %vm686_vm3, %v5482_v8  ;;  %v2405_v8 = vsel %vm6603_vm4, %v2400_v46, %v2404_v52 }
 0x167   : > { %5819 = vmatmul.mubr.msk.bf16.gmra.mrb[20].mxu1 %vm686_vm3, %v5206_v44  ;;  %5958 = vmatprep.mubr.msk.bf16.mxu0 %vm686_vm3, %v5483_v56  ;;  %v5209_v56 = vcombine.low %v2405_v8, %v2415_v48 }
 0x168   : > { %5822 = vmatprep.mubr.msk.bf16.mxu1 %vm686_vm3, %v5207_v3 }
 0x16e   : > { %5959 = vmatmul.mubr.msk.bf16.gmra.mrb[24].mxu0 %vm686_vm3, %v5484_v43 }
 0x16f   : > { %5823 = vmatmul.mubr.msk.bf16.gmra.mrb[24].mxu1 %vm686_vm3, %v5208_v62  ;;  %5962 = vmatprep.mubr.msk.bf16.mxu0 %vm686_vm3, %v5485_v50 }
 0x170   : > { %5826 = vmatprep.mubr.msk.bf16.mxu1 %vm686_vm3, %v5209_v56 }
 0x176   : > { %5963 = vmatmul.mubr.msk.bf16.gmra.mrb[28].mxu0 %vm686_vm3, %v5486_v29 }
 0x177   : > { %5827 = vmatmul.mubr.msk.bf16.gmra.mrb[28].mxu1 %vm686_vm3, %v5210_v14 }
 0x1f2   : > { %v5766_v63 = vpop.f32.mrb[0].mxu1 }
 0x1f3   : > { %v1849_v4 = vpop.f32.mrb[1].mxu1 }
 0x1f4   : > { %v5767_v43 = vpop.f32.mrb[2].mxu1 }
 0x1f5   : > { %v1852_v16 = vpop.f32.mrb[3].mxu1 }
 0x1fa   : > { %v5770_v58 = vpop.f32.mrb[4].mxu1 }
 0x1fb   : > { %v1865_v50 = vpop.f32.mrb[5].mxu1 }
 0x1fc   : > { %v5771_v54 = vpop.f32.mrb[6].mxu1 }
 0x1fd   : > { %v1868_v18 = vpop.f32.mrb[7].mxu1 }
 0x202   : > { %v5774_v11 = vpop.f32.mrb[8].mxu1 }
 0x203   : > { %v1881_v24 = vpop.f32.mrb[9].mxu1 }
 0x204   : > { %v5775_v32 = vpop.f32.mrb[10].mxu1 }
 0x205   : > { %v1884_v19 = vpop.f32.mrb[11].mxu1 }
 0x20a   : > { %v5778_v41 = vpop.f32.mrb[12].mxu1 }
 0x20b   : > { %v8253_v52 = vpop.f32.mrb[13].mxu1 }
 0x20c   : > { %v8255_v5 = vpop.f32.mrb[14].mxu1 }
 0x20d   : > { %v8257_v55 = vpop.f32.mrb[15].mxu1 }
 0x211   : > { %v5936_v29 = vpop.f32.mrb[0].mxu0 }
 0x212   : > { %v5968_v2 = vadd.f32 %v5936_v29, %v5766_v63  ;;  %v4600_v0 = vpop.f32.mrb[1].mxu0 }
 0x213   : > { %v5969_v36 = vadd.f32 %v4600_v0, %v1849_v4  ;;  %v5937_v10 = vpop.f32.mrb[2].mxu0 }
 0x214   : > { %v5970_v59 = vadd.f32 %v5937_v10, %v5767_v43  ;;  %v4603_v38 = vpop.f32.mrb[3].mxu0  ;;  %v4768_v35 = vadd.f32 %v5968_v2, %v8262_v39 }
 0x215   : > { %v4766_v37 = vadd.f32 %v5969_v36, %v8262_v39  ;;  %v5971_v26 = vadd.f32 %v4603_v38, %v1852_v16 }
 0x216   : > { %v4769_v49 = vadd.f32 %v5970_v59, %v8262_v39  ;;  %v4800_v61 = vmax.f32 %v4768_v35, 0.0 }
 0x217   : > { %v4767_v34 = vadd.f32 %v5971_v26, %v8262_v39  ;;  %v4798_v6 = vmax.f32 %v4766_v37, 0.0 }
 0x218   : > { %v4801_v45 = vmax.f32 %v4769_v49, 0.0 }
 0x219   : > { %v4799_v23 = vmax.f32 %v4767_v34, 0.0  ;;  %v5940_v25 = vpop.f32.mrb[4].mxu0 }
 0x21a   : > { %v5972_v1 = vadd.f32 %v5940_v25, %v5770_v58  ;;  %v4616_v7 = vpop.f32.mrb[5].mxu0 }
 0x21b   : > { %v4831_v22 = vadd.f32 %v4799_v23, %v4798_v6  ;;  %v5973_v44 = vadd.f32 %v4616_v7, %v1865_v50  ;;  %v5941_v3 = vpop.f32.mrb[6].mxu0 }
 0x21c   : > { %v5974_v51 = vadd.f32 %v5941_v3, %v5771_v54  ;;  %v4619_v28 = vpop.f32.mrb[7].mxu0  ;;  %v4772_v47 = vadd.f32 %v5972_v1, %v8262_v39 }
 0x21d   : > { %v4832_v27 = vadd.f32 %v4831_v22, %v4800_v61  ;;  %v4770_v53 = vadd.f32 %v5973_v44, %v8262_v39  ;;  %v5975_v21 = vadd.f32 %v4619_v28, %v1868_v18 }
 0x21e   : > { %v4773_v42 = vadd.f32 %v5974_v51, %v8262_v39  ;;  %v4804_v8 = vmax.f32 %v4772_v47, 0.0 }
 0x21f   : > { %v4802_v46 = vmax.f32 %v4770_v53, 0.0  ;;  %v4833_v15 = vadd.f32 %v4832_v27, %v4801_v45  ;;  %v4771_v60 = vadd.f32 %v5975_v21, %v8262_v39 }
 0x220   : > { %v4805_v17 = vmax.f32 %v4773_v42, 0.0 }
 0x221   : > { %v4834_v20 = vadd.f32 %v4833_v15, %v4802_v46  ;;  %v4803_v33 = vmax.f32 %v4771_v60, 0.0  ;;  %v5944_v12 = vpop.f32.mrb[8].mxu0 }
 0x222   : > { %v5976_v31 = vadd.f32 %v5944_v12, %v5774_v11  ;;  %v4632_v57 = vpop.f32.mrb[9].mxu0 }
 0x223   : > { %v4835_v48 = vadd.f32 %v4834_v20, %v4803_v33  ;;  %v5977_v62 = vadd.f32 %v4632_v57, %v1881_v24  ;;  %v5945_v56 = vpop.f32.mrb[10].mxu0 }
 0x224   : > { %v5978_v40 = vadd.f32 %v5945_v56, %v5775_v32  ;;  %v4635_v13 = vpop.f32.mrb[11].mxu0  ;;  %v4776_v63 = vadd.f32 %v5976_v31, %v8262_v39 }
 0x225   : > { %v4836_v30 = vadd.f32 %v4835_v48, %v4804_v8  ;;  %v4774_v9 = vadd.f32 %v5977_v62, %v8262_v39  ;;  %v5979_v14 = vadd.f32 %v4635_v13, %v1884_v19 }
 0x226   : > { %v4777_v50 = vadd.f32 %v5978_v40, %v8262_v39  ;;  %v4808_v32 = vmax.f32 %v4776_v63, 0.0 }
 0x227   : > { %v4806_v4 = vmax.f32 %v4774_v9, 0.0  ;;  %v4837_v43 = vadd.f32 %v4836_v30, %v4805_v17  ;;  %v4775_v16 = vadd.f32 %v5979_v14, %v8262_v39 }
 0x228   : > { %v4809_v10 = vmax.f32 %v4777_v50, 0.0 }
 0x229   : > { %v4838_v58 = vadd.f32 %v4837_v43, %v4806_v4  ;;  %v4807_v54 = vmax.f32 %v4775_v16, 0.0  ;;  %v5948_v18 = vpop.f32.mrb[12].mxu0 }
 0x22a   : > { %v5980_v11 = vadd.f32 %v5948_v18, %v5778_v41  ;;  %v4648_v24 = vpop.f32.mrb[13].mxu0 }
 0x22b   : > { %v4839_v29 = vadd.f32 %v4838_v58, %v4807_v54  ;;  %v5981_v2 = vadd.f32 %v4648_v24, %v8253_v52  ;;  %v5949_v0 = vpop.f32.mrb[14].mxu0 }
 0x22c   : > { %v5982_v19 = vadd.f32 %v5949_v0, %v8255_v5  ;;  %v4651_v36 = vpop.f32.mrb[15].mxu0  ;;  %v4780_v26 = vadd.f32 %v5980_v11, %v8262_v39 }
 0x22d   : > { %v4840_v59 = vadd.f32 %v4839_v29, %v4808_v32  ;;  %v4778_v38 = vadd.f32 %v5981_v2, %v8262_v39  ;;  %v5983_v37 = vadd.f32 %v4651_v36, %v8257_v55 }
 0x22e   : > { %v4781_v49 = vadd.f32 %v5982_v19, %v8262_v39  ;;  %v4812_v1 = vmax.f32 %v4780_v26, 0.0 }
 0x22f   : > { %v4810_v35 = vmax.f32 %v4778_v38, 0.0  ;;  %v4841_v34 = vadd.f32 %v4840_v59, %v4809_v10  ;;  %v4779_v41 = vadd.f32 %v5983_v37, %v8262_v39 }
 0x230   : > { %v4813_v28 = vmax.f32 %v4781_v49, 0.0 }
 0x231   : > { %v4842_v6 = vadd.f32 %v4841_v34, %v4810_v35  ;;  %v4811_v52 = vmax.f32 %v4779_v41, 0.0  ;;  %v5952_v23 = vpop.f32.mrb[16].mxu0 }
 0x232   : > { %v5816_v25 = vpop.f32.mrb[16].mxu1  ;;  %v4664_v5 = vpop.f32.mrb[17].mxu0 }
 0x233   : > { %v4843_v7 = vadd.f32 %v4842_v6, %v4811_v52  ;;  %v5984_v61 = vadd.f32 %v5952_v23, %v5816_v25  ;;  %v2639_v22 = vpop.f32.mrb[17].mxu1  ;;  %v5953_v44 = vpop.f32.mrb[18].mxu0 }
 0x234   : > { %v5985_v3 = vadd.f32 %v4664_v5, %v2639_v22  ;;  %v5817_v55 = vpop.f32.mrb[18].mxu1  ;;  %v4667_v51 = vpop.f32.mrb[19].mxu0 }
 0x235   : > { %v4844_v45 = vadd.f32 %v4843_v7, %v4812_v1  ;;  %v5986_v27 = vadd.f32 %v5953_v44, %v5817_v55  ;;  %v2642_v53 = vpop.f32.mrb[19].mxu1  ;;  %v4784_v15 = vadd.f32 %v5984_v61, %v8262_v39 }
 0x236   : > { %v4782_v21 = vadd.f32 %v5985_v3, %v8262_v39  ;;  %v5987_v47 = vadd.f32 %v4667_v51, %v2642_v53 }
 0x237   : > { %v4845_v46 = vadd.f32 %v4844_v45, %v4813_v28  ;;  %v4785_v12 = vadd.f32 %v5986_v27, %v8262_v39  ;;  %v4816_v40 = vmax.f32 %v4784_v15, 0.0 }
 0x238   : > { %v4814_v60 = vmax.f32 %v4782_v21, 0.0  ;;  %v4783_v20 = vadd.f32 %v5987_v47, %v8262_v39 }
 0x239   : > { %v5956_v42 = vpop.f32.mrb[20].mxu0  ;;  %v4817_v4 = vmax.f32 %v4785_v12, 0.0 }
 0x23a   : > { %v4846_v33 = vadd.f32 %v4845_v46, %v4814_v60  ;;  %v4815_v31 = vmax.f32 %v4783_v20, 0.0  ;;  %v5820_v57 = vpop.f32.mrb[20].mxu1  ;;  %v4680_v8 = vpop.f32.mrb[21].mxu0 }
 0x23b   : > { %v5988_v48 = vadd.f32 %v5956_v42, %v5820_v57  ;;  %v2655_v62 = vpop.f32.mrb[21].mxu1  ;;  %v5957_v56 = vpop.f32.mrb[22].mxu0 }
 0x23c   : > { %v4847_v13 = vadd.f32 %v4846_v33, %v4815_v31  ;;  %v5989_v17 = vadd.f32 %v4680_v8, %v2655_v62  ;;  %v5821_v30 = vpop.f32.mrb[22].mxu1  ;;  %v4683_v9 = vpop.f32.mrb[23].mxu0 }
 0x23d   : > { %v5990_v14 = vadd.f32 %v5957_v56, %v5821_v30  ;;  %v2658_v63 = vpop.f32.mrb[23].mxu1  ;;  %v4788_v50 = vadd.f32 %v5988_v48, %v8262_v39 }
 0x23e   : > { %v4848_v43 = vadd.f32 %v4847_v13, %v4816_v40  ;;  %v4786_v16 = vadd.f32 %v5989_v17, %v8262_v39  ;;  %v5991_v58 = vadd.f32 %v4683_v9, %v2658_v63 }
 0x23f   : > { %v4789_v29 = vadd.f32 %v5990_v14, %v8262_v39  ;;  %v4820_v38 = vmax.f32 %v4788_v50, 0.0 }
 0x240   : > { %v4818_v54 = vmax.f32 %v4786_v16, 0.0  ;;  %v4849_v18 = vadd.f32 %v4848_v43, %v4817_v4  ;;  %v4787_v11 = vadd.f32 %v5991_v58, %v8262_v39 }
 0x241   : > { %v5960_v24 = vpop.f32.mrb[24].mxu0  ;;  %v4821_v49 = vmax.f32 %v4789_v29, 0.0 }
 0x242   : > { %v4850_v32 = vadd.f32 %v4849_v18, %v4818_v54  ;;  %v4819_v2 = vmax.f32 %v4787_v11, 0.0  ;;  %v5824_v0 = vpop.f32.mrb[24].mxu1  ;;  %v4696_v19 = vpop.f32.mrb[25].mxu0 }
 0x243   : > { %v5992_v36 = vadd.f32 %v5960_v24, %v5824_v0  ;;  %v2671_v10 = vpop.f32.mrb[25].mxu1  ;;  %v5961_v59 = vpop.f32.mrb[26].mxu0 }
 0x244   : > { %v4851_v37 = vadd.f32 %v4850_v32, %v4819_v2  ;;  %v5993_v26 = vadd.f32 %v4696_v19, %v2671_v10  ;;  %v5825_v35 = vpop.f32.mrb[26].mxu1  ;;  %v4699_v34 = vpop.f32.mrb[27].mxu0 }
 0x245   : > { %v5994_v41 = vadd.f32 %v5961_v59, %v5825_v35  ;;  %v2674_v6 = vpop.f32.mrb[27].mxu1  ;;  %v4792_v5 = vadd.f32 %v5992_v36, %v8262_v39 }
 0x246   : > { %v4852_v52 = vadd.f32 %v4851_v37, %v4820_v38  ;;  %v4790_v23 = vadd.f32 %v5993_v26, %v8262_v39  ;;  %v5995_v25 = vadd.f32 %v4699_v34, %v2674_v6 }
 0x247   : > { %v4793_v3 = vadd.f32 %v5994_v41, %v8262_v39  ;;  %v4824_v21 = vmax.f32 %v4792_v5, 0.0 }
 0x248   : > { %v4822_v1 = vmax.f32 %v4790_v23, 0.0  ;;  %v4853_v7 = vadd.f32 %v4852_v52, %v4821_v49  ;;  %v4791_v61 = vadd.f32 %v5995_v25, %v8262_v39 }
 0x249   : > { %v5964_v22 = vpop.f32.mrb[28].mxu0  ;;  %v4825_v33 = vmax.f32 %v4793_v3, 0.0 }
 0x24a   : > { %v4854_v44 = vadd.f32 %v4853_v7, %v4822_v1  ;;  %v4823_v55 = vmax.f32 %v4791_v61, 0.0  ;;  %v5828_v51 = vpop.f32.mrb[28].mxu1  ;;  %v4712_v28 = vpop.f32.mrb[29].mxu0 }
 0x24b   : > { %v5996_v45 = vadd.f32 %v5964_v22, %v5828_v51  ;;  %v2687_v27 = vpop.f32.mrb[29].mxu1  ;;  %v5965_v53 = vpop.f32.mrb[30].mxu0 }
 0x24c   : > { %v4855_v47 = vadd.f32 %v4854_v44, %v4823_v55  ;;  %v5997_v46 = vadd.f32 %v4712_v28, %v2687_v27  ;;  %v5829_v15 = vpop.f32.mrb[30].mxu1  ;;  %v4715_v60 = vpop.f32.mrb[31].mxu0 }
 0x24d   : > { %v5998_v20 = vadd.f32 %v5965_v53, %v5829_v15  ;;  %v2690_v42 = vpop.f32.mrb[31].mxu1  ;;  %v4796_v8 = vadd.f32 %v5996_v45, %v8262_v39 }
 0x24e   : > { %v4856_v12 = vadd.f32 %v4855_v47, %v4824_v21  ;;  %v4794_v31 = vadd.f32 %v5997_v46, %v8262_v39  ;;  %v5999_v57 = vadd.f32 %v4715_v60, %v2690_v42 }
 0x24f   : > { %v4797_v13 = vadd.f32 %v5998_v20, %v8262_v39  ;;  %v4828_v30 = vmax.f32 %v4796_v8, 0.0 }
 0x250   : > { %v4826_v48 = vmax.f32 %v4794_v31, 0.0  ;;  %v4857_v62 = vadd.f32 %v4856_v12, %v4825_v33  ;;  %v4795_v56 = vadd.f32 %v5999_v57, %v8262_v39 }
 0x251   : > { %v4829_v14 = vmax.f32 %v4797_v13, 0.0 }
 0x252   : > { %v4858_v40 = vadd.f32 %v4857_v62, %v4826_v48  ;;  %v4827_v17 = vmax.f32 %v4795_v56, 0.0 }
 0x254   : > { %v4859_v9 = vadd.f32 %v4858_v40, %v4827_v17 }
 0x256   : > { %v4860_v63 = vadd.f32 %v4859_v9, %v4828_v30 }
 0x258   : > { %v4861_v4 = vadd.f32 %v4860_v63, %v4829_v14 }
 0x25a   : > { %v4868_v43 = vrot.slane %v4861_v4, 4 }
 0x25c   : > { %v4869_v16 = vadd.f32 %v4868_v43, %v4861_v4 }
 0x25e   : > { %v4870_v58 = vrot.slane %v4869_v16, 2 }
 0x260   : > { %v4871_v50 = vadd.f32 %v4870_v58, %v4869_v16 }
 0x262   : > { %v4872_v54 = vrot.slane %v4871_v50, 1 }
 0x264   : > { %v4873_v18 = vadd.f32 %v4872_v54, %v4871_v50 }
 0x266   : > { %v4874_v11 = vmul.f32 0.00390625, %v4873_v18 }
 0x268   : > { %4875 = vst [vmem:[%s184_s19] sm:$0x1] %v4874_v11 }
 0x269   : > { %6408 = shalt.err (!%p6405_p5)
}
 0x26a   : > { %s6409_s5 = scalar_lea.hbm %s8304_s27, 16  ;;  %s6413_s8 = scalar_lea.hbm %s8354_s3, 32 }
 0x26b   : > { %p6410_p6 = scmp.ne.s32.totalorder %s8304_s27, %s6409_s5  ;;  %p6414_p10 = scmp.lt.u32.totalorder %s8304_s27, %s8354_s3 }
 0x26c   : > { %p6415_p11 = scmp.lt.u32.totalorder %s6413_s8, %s6409_s5  ;;  %p6417_p13 = scmp.lt.u32.totalorder %s6409_s5, %s8304_s27 }
 0x26d   : > { %p6411_p7 = pnand %p6410_p6, %p6536_p4 }
 0x26e   : > { %p6416_p12 = por %p6415_p11, %p6414_p10 }
 0x26f   : > { %p6412_p9 = pneg %p6411_p7 }
 0x270   : > { %p6418_p0 = por %p6417_p13, %p6416_p12 }
 0x272   : > { %p6419_p1 = pnand %p6418_p0, %p6412_p9 }
 0x274   : > { %6422 = shalt.err (!%p6419_p1)
}
 0x275   : > { %6235 = dma.vmem_to_hbm [thread:$0]  (%p6536_p4), %s8306_s21, 16, %s8304_s27, %s4877_s28  }
 0x276 PF: > { %p6241_p2 = scmp.ge.s32.totalorder %s6473_s17, 2  ;;  %s4901_s11 = sand.u32 1, %s6453_s12  }
 0x277   : > { %s4902_s18 = scalar_lea.sflag [#allocation4], %s4901_s11 }
 0x278   : > { %p6238_p3 = pnand %p6241_p2, %p6543_p8 }
 0x27a   : > { %6448 = dma.done.wait (!%p6238_p3), %s4902_s18, 16  }
 0x27b   : > { %6450 = vsyncadd (!%p6238_p3), %s4902_s18, 4294967280  ;;  %s16_s17 = sadd.s32 1, %s6473_s17   ;;  %s8424_s12 = smov %s6457_s13 }
 0x27c   : > { %p13_p5 = scmp.ge.s32.totalorder %s16_s17, 4   ;;  %s8425_s13 = smov %s6461_s14 }
 0x27d   : > { %s8426_s14 = smov %s6549_s25  ;;  %s8427_s15 = smov %s6469_s16 }
 0x27e   : > { %s8428_s16 = smov %s8430_s20  ;;  %15 = sbr.rel (!%p13_p5) target bundleno = 4 (0x4), region = 85 }
 0x285   :  { %4906 = vsyncpa [#allocation4], 1 }
 0x286   :  { %4908 = vsyncpa [#allocation4 + $0x1], 1 }

</bundles_post_ra>
